<compile_context>
chip_gen: v5e
topology: v5e:2x2
jax: 0.10.0
libtpu: 0.0.40
codegen_flags: <defaults>
</compile_context>

<pallas_src>
import functools

import jax
import jax.numpy as jnp
import numpy as np
from jax.experimental import pallas as pl
from jax.experimental.pallas import tpu as pltpu

# ---------------------------------------------------------------------------
# Fused DecoderBlock kernel: one grid step per batch element.
# ---------------------------------------------------------------------------


def _decoder_block_kernel(
    x_ref, enc_ref, tmask_ref, smask_ref,
    wq1_ref, bq1_ref, wo1_ref, bo1_ref, ln1w_ref, ln1b_ref,
    wq2_ref, bq2_ref, wo2_ref, bo2_ref, ln2w_ref, ln2b_ref,
    wf1_ref, bf1_ref, wf2_ref, bf2_ref, ln3w_ref, ln3b_ref,
    o_ref, *, heads,
):
    x = x_ref[...]            # (L, D)
    enc = enc_ref[...]        # (Ls, D)
    tmask = tmask_ref[...]    # (L, L)
    smask = smask_ref[...]    # (1, Ls)

    D = x.shape[-1]
    dh = D // heads
    scale = 1.0 / (dh ** 0.5)

    def mha_core(pq, pkv, mask, wo, bo):
        # pq:  (Lq, D)  projected queries  (fc_q applied)
        # pkv: (Lk, D)  projected keys/values (fc_q applied; k and v identical)
        lq, lk = pq.shape[0], pkv.shape[0]
        mask_b = jnp.broadcast_to(mask, (lq, lk))
        v_sum = jnp.sum(pkv, axis=0, keepdims=True)               # (1, D)
        outs = []
        for h in range(heads):
            sl = slice(h * dh, (h + 1) * dh)
            qh = pq[:, sl]                                        # (Lq, dh)
            kh = pkv[:, sl]                                       # (Lk, dh)
            e = jnp.dot(qh, kh.T, preferred_element_type=jnp.float32)
            e = jnp.where(mask_b == 0, -jnp.inf, e)
            s = e * scale
            m = jnp.max(s, axis=-1, keepdims=True)
            p = jnp.exp(s - m)
            attn = p / jnp.sum(p, axis=-1, keepdims=True)         # softmax over k
            # torch.einsum('nhqk,nvhd->nqhd') == (sum_k attn) outer (sum_v v)
            row_sum = jnp.sum(attn, axis=-1, keepdims=True)       # (Lq, 1)
            outs.append(row_sum * v_sum[:, sl])                   # (Lq, dh)
        out = jnp.concatenate(outs, axis=-1)                      # (Lq, D)
        return jnp.dot(out, wo, preferred_element_type=jnp.float32) + bo

    def add_ln(a, b, w, bias):
        z = a + b
        mean = jnp.mean(z, axis=-1, keepdims=True)
        var = jnp.mean((z - mean) ** 2, axis=-1, keepdims=True)
        return (z - mean) * jax.lax.rsqrt(var + 1e-5) * w + bias

    # --- masked self-attention: q, k, v all come from x via fc_q -> one GEMM.
    p_self = jnp.dot(x, wq1_ref[...], preferred_element_type=jnp.float32) + bq1_ref[...]
    msa = mha_core(p_self, p_self, tmask, wo1_ref[...], bo1_ref[...])
    x1 = add_ln(x, msa, ln1w_ref[...], ln1b_ref[...])

    # --- cross-attention: q from x1, k==v from enc_src; project each once.
    wq2 = wq2_ref[...]
    bq2 = bq2_ref[...]
    pq2 = jnp.dot(x1, wq2, preferred_element_type=jnp.float32) + bq2
    pkv2 = jnp.dot(enc, wq2, preferred_element_type=jnp.float32) + bq2
    ca = mha_core(pq2, pkv2, smask, wo2_ref[...], bo2_ref[...])
    x2 = add_ln(x1, ca, ln2w_ref[...], ln2b_ref[...])

    # --- position-wise FFN.
    h = jnp.dot(x2, wf1_ref[...], preferred_element_type=jnp.float32) + bf1_ref[...]
    h = jnp.maximum(h, 0.0)
    ff = jnp.dot(h, wf2_ref[...], preferred_element_type=jnp.float32) + bf2_ref[...]
    o_ref[...] = add_ln(x2, ff, ln3w_ref[...], ln3b_ref[...])


def decoder_block(x, trg_mask, enc_src, src_mask, p, heads):
    """One fused pallas_call for the whole block. x: (N, L, D)."""
    N, L, D = x.shape
    Ls = enc_src.shape[1]

    def wspec(shape):
        nd = len(shape)
        return pl.BlockSpec(shape, lambda n, _nd=nd: (0,) * _nd)

    weights = [
        p["attn1"]["wq"], p["attn1"]["bq"].reshape(1, -1),
        p["attn1"]["wo"], p["attn1"]["bo"].reshape(1, -1),
        p["ln1_w"].reshape(1, -1), p["ln1_b"].reshape(1, -1),
        p["attn2"]["wq"], p["attn2"]["bq"].reshape(1, -1),
        p["attn2"]["wo"], p["attn2"]["bo"].reshape(1, -1),
        p["ln2_w"].reshape(1, -1), p["ln2_b"].reshape(1, -1),
        p["w_ff1"], p["b_ff1"].reshape(1, -1),
        p["w_ff2"], p["b_ff2"].reshape(1, -1),
        p["ln3_w"].reshape(1, -1), p["ln3_b"].reshape(1, -1),
    ]

    in_specs = [
        pl.BlockSpec((None, L, D), lambda n: (n, 0, 0)),        # x  (per batch)
        pl.BlockSpec((None, Ls, D), lambda n: (n, 0, 0)),       # enc_src
        pl.BlockSpec((None, None, L, L), lambda n: (n, 0, 0, 0)),   # trg_mask
        pl.BlockSpec((None, None, 1, Ls), lambda n: (n, 0, 0, 0)),  # src_mask
    ] + [wspec(w.shape) for w in weights]

    return pl.pallas_call(
        functools.partial(_decoder_block_kernel, heads=heads),
        out_shape=jax.ShapeDtypeStruct((N, L, D), jnp.float32),
        grid=(N,),
        in_specs=in_specs,
        out_specs=pl.BlockSpec((None, L, D), lambda n: (n, 0, 0)),
        compiler_params=pltpu.CompilerParams(
            dimension_semantics=("parallel",)),
    )(x, enc_src, trg_mask, src_mask, *weights)


# ---------------------------------------------------------------------------
# Final output projection (fc_out), lane-dense (vocab padded to 128 lanes).
# ---------------------------------------------------------------------------


def _linear_kernel(x_ref, w_ref, b_ref, o_ref):
    o_ref[...] = (jnp.dot(x_ref[...], w_ref[...],
                          preferred_element_type=jnp.float32) + b_ref[...])


def output_projection(x2d, w, b):
    """y = x2d @ w + b with the output padded to a multiple of 128 lanes."""
    M, K = x2d.shape
    V = w.shape[1]
    Vp = ((V + 127) // 128) * 128
    w_p = jnp.zeros((K, Vp), jnp.float32).at[:, :V].set(w)
    b_p = jnp.zeros((1, Vp), jnp.float32).at[:, :V].set(b.reshape(1, -1))
    out = pl.pallas_call(
        _linear_kernel,
        out_shape=jax.ShapeDtypeStruct((M, Vp), jnp.float32),
        grid=(1,),
        in_specs=[
            pl.BlockSpec((M, K), lambda i: (0, 0)),
            pl.BlockSpec((K, Vp), lambda i: (0, 0)),
            pl.BlockSpec((1, Vp), lambda i: (0, 0)),
        ],
        out_specs=pl.BlockSpec((M, Vp), lambda i: (0, 0)),
        compiler_params=pltpu.CompilerParams(
            dimension_semantics=("arbitrary",)),
    )(x2d, w_p, b_p)
    return out[:, :V]


# ---------------------------------------------------------------------------
# Model glue (plain JAX): embedding gather + block loop + output head.
# ---------------------------------------------------------------------------


def decoder_forward(trg_tokens, trg_mask, enc_src, src_mask, params, *, heads):
    N, L = trg_tokens.shape
    D = params["tok_emb"].shape[1]
    # Embedding gather kept in JAX glue (dropout is identity in eval mode).
    # TODO(synk): embedding gather left to XLA; a DMA-gather Pallas kernel is
    # not worthwhile at these sizes.
    pos = jnp.arange(L)
    x = params["tok_emb"][trg_tokens] + params["pos_emb"][pos][None, :, :]
    for bp in params["blocks"]:
        x = decoder_block(x, trg_mask, enc_src, src_mask, bp, heads)
    logits = output_projection(x.reshape(-1, D), params["w_out"], params["b_out"])
    return logits.reshape(N, L, -1)


decoder_forward_jit = jax.jit(decoder_forward, static_argnames=("heads",))


# ---------------------------------------------------------------------------
# Deterministic parameter init
# ---------------------------------------------------------------------------


def make_params(key, vocab, d_emb, max_len, d_ff, n_blocks):
    def nrm(k, shape, scale=0.05):
        return scale * jax.random.normal(k, shape, dtype=jnp.float32)

    keys = jax.random.split(key, 4 + n_blocks)
    params = {
        "tok_emb": nrm(keys[0], (vocab, d_emb), 1.0),
        "pos_emb": nrm(keys[1], (max_len, d_emb), 1.0),
        "w_out": nrm(keys[2], (d_emb, vocab)),
        "b_out": nrm(keys[3], (vocab,)),
        "blocks": [],
    }
    for bi in range(n_blocks):
        bk = jax.random.split(keys[4 + bi], 10)

        def attn_params(k):
            kk = jax.random.split(k, 4)
            # fc_k / fc_v exist in the PyTorch module but are never used in
            # forward, so they are omitted here.
            return {
                "wq": nrm(kk[0], (d_emb, d_emb)),
                "bq": nrm(kk[1], (d_emb,)),
                "wo": nrm(kk[2], (d_emb, d_emb)),
                "bo": nrm(kk[3], (d_emb,)),
            }

        params["blocks"].append({
            "attn1": attn_params(bk[0]),
            "attn2": attn_params(bk[1]),
            "ln1_w": jnp.ones((d_emb,), jnp.float32),
            "ln1_b": jnp.zeros((d_emb,), jnp.float32),
            "ln2_w": jnp.ones((d_emb,), jnp.float32),
            "ln2_b": jnp.zeros((d_emb,), jnp.float32),
            "ln3_w": jnp.ones((d_emb,), jnp.float32),
            "ln3_b": jnp.zeros((d_emb,), jnp.float32),
            "w_ff1": nrm(bk[2], (d_emb, d_ff)),
            "b_ff1": nrm(bk[3], (d_ff,)),
            "w_ff2": nrm(bk[4], (d_ff, d_emb)),
            "b_ff2": nrm(bk[5], (d_emb,)),
        })
    return params


# ---------------------------------------------------------------------------
# Pure-JAX reference mirroring the PyTorch forward (for verification)
# ---------------------------------------------------------------------------


def _ref_mha(xq, xk, xv, mask, p, heads):
    N, Lq, D = xq.shape
    Dh = D // heads
    lin = lambda x, w, b: x @ w + b
    q = lin(xq, p["wq"], p["bq"]).reshape(N, Lq, heads, Dh)
    k = lin(xk, p["wq"], p["bq"]).reshape(N, xk.shape[1], heads, Dh)
    v = lin(xv, p["wq"], p["bq"]).reshape(N, xv.shape[1], heads, Dh)
    energy = jnp.einsum("nqhd,nkhd->nhqk", q, k)
    energy = jnp.where(mask == 0, -jnp.inf, energy)
    attn = jax.nn.softmax(energy / (Dh ** 0.5), axis=3)
    out = jnp.einsum("nhqk,nvhd->nqhd", attn, v).reshape(N, Lq, D)
    return lin(out, p["wo"], p["bo"])


def _ref_ln(x, w, b):
    mean = jnp.mean(x, axis=-1, keepdims=True)
    var = jnp.mean((x - mean) ** 2, axis=-1, keepdims=True)
    return (x - mean) / jnp.sqrt(var + 1e-5) * w + b


def ref_forward(trg_tokens, trg_mask, enc_src, src_mask, params, heads):
    N, L = trg_tokens.shape
    pos = jnp.broadcast_to(jnp.arange(L), (N, L))
    x = params["tok_emb"][trg_tokens] + params["pos_emb"][pos]
    for p in params["blocks"]:
        msa = _ref_mha(x, x, x, trg_mask, p["attn1"], heads)
        x1 = _ref_ln(x + msa, p["ln1_w"], p["ln1_b"])
        ca = _ref_mha(x1, enc_src, enc_src, src_mask, p["attn2"], heads)
        x2 = _ref_ln(x1 + ca, p["ln2_w"], p["ln2_b"])
        ff = jnp.maximum(x2 @ p["w_ff1"] + p["b_ff1"], 0.0) @ p["w_ff2"] + p["b_ff2"]
        x = _ref_ln(x2 + ff, p["ln3_w"], p["ln3_b"])
    return x @ params["w_out"] + params["b_out"]


# ---------------------------------------------------------------------------


if __name__ == "__main__":
    # Small config: vocab=50, d_emb=32, max_len=16, heads=4, d_ff=64, n_blocks=2
    VOCAB, D_EMB, MAX_LEN, HEADS, D_FF, N_BLOCKS = 50, 32, 16, 4, 64, 2
    N, TRG_LEN, SRC_LEN = 2, 8, 8

    root = jax.random.PRNGKey(0)
    k_par, k_trg, k_src = jax.random.split(root, 3)

    params = make_params(k_par, VOCAB, D_EMB, MAX_LEN, D_FF, N_BLOCKS)

    trg = jax.random.randint(k_trg, (N, TRG_LEN), 0, VOCAB, dtype=jnp.int32)
    encoded_src = jax.random.normal(k_src, (N, SRC_LEN, D_EMB), dtype=jnp.float32)
    # Causal target mask (N, 1, trg_len, trg_len); full source mask (N, 1, 1, src_len).
    trg_mask = jnp.tril(jnp.ones((TRG_LEN, TRG_LEN), jnp.float32))[None, None]
    trg_mask = jnp.broadcast_to(trg_mask, (N, 1, TRG_LEN, TRG_LEN))
    src_mask = jnp.ones((N, 1, 1, SRC_LEN), jnp.float32)

    out = decoder_forward_jit(trg, trg_mask, encoded_src, src_mask, params,
                              heads=HEADS)
    out = jax.block_until_ready(out)

    ref = ref_forward(trg, trg_mask, encoded_src, src_mask, params, HEADS)
    np.testing.assert_allclose(np.asarray(out), np.asarray(ref), rtol=1e-3, atol=1e-3)

    assert out.shape == (N, TRG_LEN, VOCAB)
    print("KERNEL_OK")
</pallas_src>

<mosaic_0001>
module attributes {stable_mosaic.version = 11 : i64} {
  func.func @_decoder_block_kernel(%arg0: i32, %arg1: memref<1x8x32xf32, #tpu.memory_space<vmem>>, %arg2: memref<1x8x32xf32, #tpu.memory_space<vmem>>, %arg3: memref<1x1x8x8xf32, #tpu.memory_space<vmem>>, %arg4: memref<1x1x1x8xf32, #tpu.memory_space<vmem>>, %arg5: memref<32x32xf32, #tpu.memory_space<vmem>>, %arg6: memref<1x32xf32, #tpu.memory_space<vmem>>, %arg7: memref<32x32xf32, #tpu.memory_space<vmem>>, %arg8: memref<1x32xf32, #tpu.memory_space<vmem>>, %arg9: memref<1x32xf32, #tpu.memory_space<vmem>>, %arg10: memref<1x32xf32, #tpu.memory_space<vmem>>, %arg11: memref<32x32xf32, #tpu.memory_space<vmem>>, %arg12: memref<1x32xf32, #tpu.memory_space<vmem>>, %arg13: memref<32x32xf32, #tpu.memory_space<vmem>>, %arg14: memref<1x32xf32, #tpu.memory_space<vmem>>, %arg15: memref<1x32xf32, #tpu.memory_space<vmem>>, %arg16: memref<1x32xf32, #tpu.memory_space<vmem>>, %arg17: memref<32x64xf32, #tpu.memory_space<vmem>>, %arg18: memref<1x64xf32, #tpu.memory_space<vmem>>, %arg19: memref<64x32xf32, #tpu.memory_space<vmem>>, %arg20: memref<1x32xf32, #tpu.memory_space<vmem>>, %arg21: memref<1x32xf32, #tpu.memory_space<vmem>>, %arg22: memref<1x32xf32, #tpu.memory_space<vmem>>, %arg23: memref<1x8x32xf32, #tpu.memory_space<vmem>>) attributes {dimension_semantics = [#tpu.dimension_semantics<parallel>], iteration_bounds = array<i64: 2>, scalar_prefetch = 0 : i64, scratch_operands = 0 : i64, tpu.core_type = #tpu.core_type<tc>, window_params = [{transform_indices = @transform_0, window_bounds = array<i64: 1, 8, 32>}, {transform_indices = @transform_1, window_bounds = array<i64: 1, 8, 32>}, {transform_indices = @transform_2, window_bounds = array<i64: 1, 1, 8, 8>}, {transform_indices = @transform_3, window_bounds = array<i64: 1, 1, 1, 8>}, {pipeline_mode = #tpu.pipeline_mode<synchronous>, transform_indices = @transform_4, window_bounds = array<i64: 32, 32>}, {pipeline_mode = #tpu.pipeline_mode<synchronous>, transform_indices = @transform_5, window_bounds = array<i64: 1, 32>}, {pipeline_mode = #tpu.pipeline_mode<synchronous>, transform_indices = @transform_6, window_bounds = array<i64: 32, 32>}, {pipeline_mode = #tpu.pipeline_mode<synchronous>, transform_indices = @transform_7, window_bounds = array<i64: 1, 32>}, {pipeline_mode = #tpu.pipeline_mode<synchronous>, transform_indices = @transform_8, window_bounds = array<i64: 1, 32>}, {pipeline_mode = #tpu.pipeline_mode<synchronous>, transform_indices = @transform_9, window_bounds = array<i64: 1, 32>}, {pipeline_mode = #tpu.pipeline_mode<synchronous>, transform_indices = @transform_10, window_bounds = array<i64: 32, 32>}, {pipeline_mode = #tpu.pipeline_mode<synchronous>, transform_indices = @transform_11, window_bounds = array<i64: 1, 32>}, {pipeline_mode = #tpu.pipeline_mode<synchronous>, transform_indices = @transform_12, window_bounds = array<i64: 32, 32>}, {pipeline_mode = #tpu.pipeline_mode<synchronous>, transform_indices = @transform_13, window_bounds = array<i64: 1, 32>}, {pipeline_mode = #tpu.pipeline_mode<synchronous>, transform_indices = @transform_14, window_bounds = array<i64: 1, 32>}, {pipeline_mode = #tpu.pipeline_mode<synchronous>, transform_indices = @transform_15, window_bounds = array<i64: 1, 32>}, {pipeline_mode = #tpu.pipeline_mode<synchronous>, transform_indices = @transform_16, window_bounds = array<i64: 32, 64>}, {pipeline_mode = #tpu.pipeline_mode<synchronous>, transform_indices = @transform_17, window_bounds = array<i64: 1, 64>}, {pipeline_mode = #tpu.pipeline_mode<synchronous>, transform_indices = @transform_18, window_bounds = array<i64: 64, 32>}, {pipeline_mode = #tpu.pipeline_mode<synchronous>, transform_indices = @transform_19, window_bounds = array<i64: 1, 32>}, {pipeline_mode = #tpu.pipeline_mode<synchronous>, transform_indices = @transform_20, window_bounds = array<i64: 1, 32>}, {pipeline_mode = #tpu.pipeline_mode<synchronous>, transform_indices = @transform_21, window_bounds = array<i64: 1, 32>}, {transform_indices = @transform_22, window_bounds = array<i64: 1, 8, 32>}]} {
    %c0 = arith.constant 0 : index
    %c0_0 = arith.constant 0 : index
    %c0_1 = arith.constant 0 : index
    %0 = vector.load %arg1[%c0, %c0_0, %c0_1] : memref<1x8x32xf32, #tpu.memory_space<vmem>>, vector<1x8x32xf32>
    %1 = vector.shape_cast %0 : vector<1x8x32xf32> to vector<8x32xf32>
    %c0_2 = arith.constant 0 : index
    %c0_3 = arith.constant 0 : index
    %c0_4 = arith.constant 0 : index
    %2 = vector.load %arg2[%c0_2, %c0_3, %c0_4] : memref<1x8x32xf32, #tpu.memory_space<vmem>>, vector<1x8x32xf32>
    %3 = vector.shape_cast %2 : vector<1x8x32xf32> to vector<8x32xf32>
    %c0_5 = arith.constant 0 : index
    %c0_6 = arith.constant 0 : index
    %c0_7 = arith.constant 0 : index
    %c0_8 = arith.constant 0 : index
    %4 = vector.load %arg3[%c0_5, %c0_6, %c0_7, %c0_8] : memref<1x1x8x8xf32, #tpu.memory_space<vmem>>, vector<1x1x8x8xf32>
    %5 = vector.shape_cast %4 : vector<1x1x8x8xf32> to vector<8x8xf32>
    %c0_9 = arith.constant 0 : index
    %c0_10 = arith.constant 0 : index
    %c0_11 = arith.constant 0 : index
    %c0_12 = arith.constant 0 : index
    %6 = vector.load %arg4[%c0_9, %c0_10, %c0_11, %c0_12] : memref<1x1x1x8xf32, #tpu.memory_space<vmem>>, vector<1x1x1x8xf32>
    %7 = vector.shape_cast %6 : vector<1x1x1x8xf32> to vector<1x8xf32>
    %c0_13 = arith.constant 0 : index
    %c0_14 = arith.constant 0 : index
    %8 = vector.load %arg5[%c0_13, %c0_14] : memref<32x32xf32, #tpu.memory_space<vmem>>, vector<32x32xf32>
    %cst = arith.constant dense<0.000000e+00> : vector<8x32xf32>
    %9 = tpu.matmul %1, %8, %cst {dimension_numbers = #tpu.dot_dimension_numbers<[1], [0], [0], [1], [0, 0, 1, 1], [], []>} : vector<8x32xf32>, vector<32x32xf32>, vector<8x32xf32> -> vector<8x32xf32>
    %c0_15 = arith.constant 0 : index
    %c0_16 = arith.constant 0 : index
    %10 = vector.load %arg6[%c0_15, %c0_16] : memref<1x32xf32, #tpu.memory_space<vmem>>, vector<1x32xf32>
    %11 = vector.broadcast %10 : vector<1x32xf32> to vector<8x32xf32>
    %12 = arith.addf %9, %11 : vector<8x32xf32>
    %c0_17 = arith.constant 0 : index
    %c0_18 = arith.constant 0 : index
    %13 = vector.load %arg7[%c0_17, %c0_18] : memref<32x32xf32, #tpu.memory_space<vmem>>, vector<32x32xf32>
    %c0_19 = arith.constant 0 : index
    %c0_20 = arith.constant 0 : index
    %14 = vector.load %arg8[%c0_19, %c0_20] : memref<1x32xf32, #tpu.memory_space<vmem>>, vector<1x32xf32>
    %cst_21 = arith.constant dense<0.000000e+00> : vector<32xf32>
    %15 = vector.multi_reduction <add>, %12, %cst_21 [0] : vector<8x32xf32> to vector<32xf32>
    %16 = vector.shape_cast %15 : vector<32xf32> to vector<1x32xf32>
    %17 = vector.extract_strided_slice %12 {offsets = [0, 0], sizes = [8, 8], strides = [1, 1]} : vector<8x32xf32> to vector<8x8xf32>
    %18 = vector.extract_strided_slice %12 {offsets = [0, 0], sizes = [8, 8], strides = [1, 1]} : vector<8x32xf32> to vector<8x8xf32>
    %19 = tpu.transpose %18, [1, 0] : vector<8x8xf32> -> vector<8x8xf32>
    %cst_22 = arith.constant dense<0.000000e+00> : vector<8x8xf32>
    %20 = tpu.matmul %17, %19, %cst_22 {dimension_numbers = #tpu.dot_dimension_numbers<[1], [0], [0], [1], [0, 0, 1, 1], [], []>} : vector<8x8xf32>, vector<8x8xf32>, vector<8x8xf32> -> vector<8x8xf32>
    %cst_23 = arith.constant 0.000000e+00 : f32
    %21 = vector.broadcast %cst_23 : f32 to vector<8x8xf32>
    %22 = arith.cmpf oeq, %5, %21 : vector<8x8xf32>
    %cst_24 = arith.constant 0xFF800000 : f32
    %23 = vector.broadcast %cst_24 : f32 to vector<8x8xf32>
    %24 = arith.select %22, %23, %20 : vector<8x8xi1>, vector<8x8xf32>
    %cst_25 = arith.constant 0.353553385 : f32
    %25 = vector.broadcast %cst_25 : f32 to vector<8x8xf32>
    %26 = arith.mulf %24, %25 : vector<8x8xf32>
    %cst_26 = arith.constant dense<0xFF800000> : vector<8xf32>
    %27 = vector.multi_reduction <maximumf>, %26, %cst_26 [1] : vector<8x8xf32> to vector<8xf32>
    %28 = vector.shape_cast %27 : vector<8xf32> to vector<8x1xf32>
    %29 = vector.broadcast %28 : vector<8x1xf32> to vector<8x8xf32>
    %30 = arith.subf %26, %29 : vector<8x8xf32>
    %31 = math.exp %30 : vector<8x8xf32>
    %cst_27 = arith.constant dense<0.000000e+00> : vector<8xf32>
    %32 = vector.multi_reduction <add>, %31, %cst_27 [1] : vector<8x8xf32> to vector<8xf32>
    %33 = vector.shape_cast %32 : vector<8xf32> to vector<8x1xf32>
    %34 = vector.broadcast %33 : vector<8x1xf32> to vector<8x8xf32>
    %35 = arith.divf %31, %34 : vector<8x8xf32>
    %cst_28 = arith.constant dense<0.000000e+00> : vector<8xf32>
    %36 = vector.multi_reduction <add>, %35, %cst_28 [1] : vector<8x8xf32> to vector<8xf32>
    %37 = vector.shape_cast %36 : vector<8xf32> to vector<8x1xf32>
    %38 = vector.extract_strided_slice %16 {offsets = [0, 0], sizes = [1, 8], strides = [1, 1]} : vector<1x32xf32> to vector<1x8xf32>
    %39 = vector.broadcast %37 : vector<8x1xf32> to vector<8x8xf32>
    %40 = vector.broadcast %38 : vector<1x8xf32> to vector<8x8xf32>
    %41 = arith.mulf %39, %40 : vector<8x8xf32>
    %42 = vector.extract_strided_slice %12 {offsets = [0, 8], sizes = [8, 8], strides = [1, 1]} : vector<8x32xf32> to vector<8x8xf32>
    %43 = vector.extract_strided_slice %12 {offsets = [0, 8], sizes = [8, 8], strides = [1, 1]} : vector<8x32xf32> to vector<8x8xf32>
    %44 = tpu.transpose %43, [1, 0] : vector<8x8xf32> -> vector<8x8xf32>
    %cst_29 = arith.constant dense<0.000000e+00> : vector<8x8xf32>
    %45 = tpu.matmul %42, %44, %cst_29 {dimension_numbers = #tpu.dot_dimension_numbers<[1], [0], [0], [1], [0, 0, 1, 1], [], []>} : vector<8x8xf32>, vector<8x8xf32>, vector<8x8xf32> -> vector<8x8xf32>
    %cst_30 = arith.constant 0.000000e+00 : f32
    %46 = vector.broadcast %cst_30 : f32 to vector<8x8xf32>
    %47 = arith.cmpf oeq, %5, %46 : vector<8x8xf32>
    %cst_31 = arith.constant 0xFF800000 : f32
    %48 = vector.broadcast %cst_31 : f32 to vector<8x8xf32>
    %49 = arith.select %47, %48, %45 : vector<8x8xi1>, vector<8x8xf32>
    %cst_32 = arith.constant 0.353553385 : f32
    %50 = vector.broadcast %cst_32 : f32 to vector<8x8xf32>
    %51 = arith.mulf %49, %50 : vector<8x8xf32>
    %cst_33 = arith.constant dense<0xFF800000> : vector<8xf32>
    %52 = vector.multi_reduction <maximumf>, %51, %cst_33 [1] : vector<8x8xf32> to vector<8xf32>
    %53 = vector.shape_cast %52 : vector<8xf32> to vector<8x1xf32>
    %54 = vector.broadcast %53 : vector<8x1xf32> to vector<8x8xf32>
    %55 = arith.subf %51, %54 : vector<8x8xf32>
    %56 = math.exp %55 : vector<8x8xf32>
    %cst_34 = arith.constant dense<0.000000e+00> : vector<8xf32>
    %57 = vector.multi_reduction <add>, %56, %cst_34 [1] : vector<8x8xf32> to vector<8xf32>
    %58 = vector.shape_cast %57 : vector<8xf32> to vector<8x1xf32>
    %59 = vector.broadcast %58 : vector<8x1xf32> to vector<8x8xf32>
    %60 = arith.divf %56, %59 : vector<8x8xf32>
    %cst_35 = arith.constant dense<0.000000e+00> : vector<8xf32>
    %61 = vector.multi_reduction <add>, %60, %cst_35 [1] : vector<8x8xf32> to vector<8xf32>
    %62 = vector.shape_cast %61 : vector<8xf32> to vector<8x1xf32>
    %63 = vector.extract_strided_slice %16 {offsets = [0, 8], sizes = [1, 8], strides = [1, 1]} : vector<1x32xf32> to vector<1x8xf32>
    %64 = vector.broadcast %62 : vector<8x1xf32> to vector<8x8xf32>
    %65 = vector.broadcast %63 : vector<1x8xf32> to vector<8x8xf32>
    %66 = arith.mulf %64, %65 : vector<8x8xf32>
    %67 = vector.extract_strided_slice %12 {offsets = [0, 16], sizes = [8, 8], strides = [1, 1]} : vector<8x32xf32> to vector<8x8xf32>
    %68 = vector.extract_strided_slice %12 {offsets = [0, 16], sizes = [8, 8], strides = [1, 1]} : vector<8x32xf32> to vector<8x8xf32>
    %69 = tpu.transpose %68, [1, 0] : vector<8x8xf32> -> vector<8x8xf32>
    %cst_36 = arith.constant dense<0.000000e+00> : vector<8x8xf32>
    %70 = tpu.matmul %67, %69, %cst_36 {dimension_numbers = #tpu.dot_dimension_numbers<[1], [0], [0], [1], [0, 0, 1, 1], [], []>} : vector<8x8xf32>, vector<8x8xf32>, vector<8x8xf32> -> vector<8x8xf32>
    %cst_37 = arith.constant 0.000000e+00 : f32
    %71 = vector.broadcast %cst_37 : f32 to vector<8x8xf32>
    %72 = arith.cmpf oeq, %5, %71 : vector<8x8xf32>
    %cst_38 = arith.constant 0xFF800000 : f32
    %73 = vector.broadcast %cst_38 : f32 to vector<8x8xf32>
    %74 = arith.select %72, %73, %70 : vector<8x8xi1>, vector<8x8xf32>
    %cst_39 = arith.constant 0.353553385 : f32
    %75 = vector.broadcast %cst_39 : f32 to vector<8x8xf32>
    %76 = arith.mulf %74, %75 : vector<8x8xf32>
    %cst_40 = arith.constant dense<0xFF800000> : vector<8xf32>
    %77 = vector.multi_reduction <maximumf>, %76, %cst_40 [1] : vector<8x8xf32> to vector<8xf32>
    %78 = vector.shape_cast %77 : vector<8xf32> to vector<8x1xf32>
    %79 = vector.broadcast %78 : vector<8x1xf32> to vector<8x8xf32>
    %80 = arith.subf %76, %79 : vector<8x8xf32>
    %81 = math.exp %80 : vector<8x8xf32>
    %cst_41 = arith.constant dense<0.000000e+00> : vector<8xf32>
    %82 = vector.multi_reduction <add>, %81, %cst_41 [1] : vector<8x8xf32> to vector<8xf32>
    %83 = vector.shape_cast %82 : vector<8xf32> to vector<8x1xf32>
    %84 = vector.broadcast %83 : vector<8x1xf32> to vector<8x8xf32>
    %85 = arith.divf %81, %84 : vector<8x8xf32>
    %cst_42 = arith.constant dense<0.000000e+00> : vector<8xf32>
    %86 = vector.multi_reduction <add>, %85, %cst_42 [1] : vector<8x8xf32> to vector<8xf32>
    %87 = vector.shape_cast %86 : vector<8xf32> to vector<8x1xf32>
    %88 = vector.extract_strided_slice %16 {offsets = [0, 16], sizes = [1, 8], strides = [1, 1]} : vector<1x32xf32> to vector<1x8xf32>
    %89 = vector.broadcast %87 : vector<8x1xf32> to vector<8x8xf32>
    %90 = vector.broadcast %88 : vector<1x8xf32> to vector<8x8xf32>
    %91 = arith.mulf %89, %90 : vector<8x8xf32>
    %92 = vector.extract_strided_slice %12 {offsets = [0, 24], sizes = [8, 8], strides = [1, 1]} : vector<8x32xf32> to vector<8x8xf32>
    %93 = vector.extract_strided_slice %12 {offsets = [0, 24], sizes = [8, 8], strides = [1, 1]} : vector<8x32xf32> to vector<8x8xf32>
    %94 = tpu.transpose %93, [1, 0] : vector<8x8xf32> -> vector<8x8xf32>
    %cst_43 = arith.constant dense<0.000000e+00> : vector<8x8xf32>
    %95 = tpu.matmul %92, %94, %cst_43 {dimension_numbers = #tpu.dot_dimension_numbers<[1], [0], [0], [1], [0, 0, 1, 1], [], []>} : vector<8x8xf32>, vector<8x8xf32>, vector<8x8xf32> -> vector<8x8xf32>
    %cst_44 = arith.constant 0.000000e+00 : f32
    %96 = vector.broadcast %cst_44 : f32 to vector<8x8xf32>
    %97 = arith.cmpf oeq, %5, %96 : vector<8x8xf32>
    %cst_45 = arith.constant 0xFF800000 : f32
    %98 = vector.broadcast %cst_45 : f32 to vector<8x8xf32>
    %99 = arith.select %97, %98, %95 : vector<8x8xi1>, vector<8x8xf32>
    %cst_46 = arith.constant 0.353553385 : f32
    %100 = vector.broadcast %cst_46 : f32 to vector<8x8xf32>
    %101 = arith.mulf %99, %100 : vector<8x8xf32>
    %cst_47 = arith.constant dense<0xFF800000> : vector<8xf32>
    %102 = vector.multi_reduction <maximumf>, %101, %cst_47 [1] : vector<8x8xf32> to vector<8xf32>
    %103 = vector.shape_cast %102 : vector<8xf32> to vector<8x1xf32>
    %104 = vector.broadcast %103 : vector<8x1xf32> to vector<8x8xf32>
    %105 = arith.subf %101, %104 : vector<8x8xf32>
    %106 = math.exp %105 : vector<8x8xf32>
    %cst_48 = arith.constant dense<0.000000e+00> : vector<8xf32>
    %107 = vector.multi_reduction <add>, %106, %cst_48 [1] : vector<8x8xf32> to vector<8xf32>
    %108 = vector.shape_cast %107 : vector<8xf32> to vector<8x1xf32>
    %109 = vector.broadcast %108 : vector<8x1xf32> to vector<8x8xf32>
    %110 = arith.divf %106, %109 : vector<8x8xf32>
    %cst_49 = arith.constant dense<0.000000e+00> : vector<8xf32>
    %111 = vector.multi_reduction <add>, %110, %cst_49 [1] : vector<8x8xf32> to vector<8xf32>
    %112 = vector.shape_cast %111 : vector<8xf32> to vector<8x1xf32>
    %113 = vector.extract_strided_slice %16 {offsets = [0, 24], sizes = [1, 8], strides = [1, 1]} : vector<1x32xf32> to vector<1x8xf32>
    %114 = vector.broadcast %112 : vector<8x1xf32> to vector<8x8xf32>
    %115 = vector.broadcast %113 : vector<1x8xf32> to vector<8x8xf32>
    %116 = arith.mulf %114, %115 : vector<8x8xf32>
    %117 = tpu.concatenate %41, %66, %91, %116 in 1 : vector<8x8xf32>, vector<8x8xf32>, vector<8x8xf32>, vector<8x8xf32> -> vector<8x32xf32>
    %cst_50 = arith.constant dense<0.000000e+00> : vector<8x32xf32>
    %118 = tpu.matmul %117, %13, %cst_50 {dimension_numbers = #tpu.dot_dimension_numbers<[1], [0], [0], [1], [0, 0, 1, 1], [], []>} : vector<8x32xf32>, vector<32x32xf32>, vector<8x32xf32> -> vector<8x32xf32>
    %119 = vector.broadcast %14 : vector<1x32xf32> to vector<8x32xf32>
    %120 = arith.addf %118, %119 : vector<8x32xf32>
    %c0_51 = arith.constant 0 : index
    %c0_52 = arith.constant 0 : index
    %121 = vector.load %arg9[%c0_51, %c0_52] : memref<1x32xf32, #tpu.memory_space<vmem>>, vector<1x32xf32>
    %c0_53 = arith.constant 0 : index
    %c0_54 = arith.constant 0 : index
    %122 = vector.load %arg10[%c0_53, %c0_54] : memref<1x32xf32, #tpu.memory_space<vmem>>, vector<1x32xf32>
    %123 = arith.addf %1, %120 : vector<8x32xf32>
    %cst_55 = arith.constant dense<0.000000e+00> : vector<8xf32>
    %124 = vector.multi_reduction <add>, %123, %cst_55 [1] : vector<8x32xf32> to vector<8xf32>
    %125 = vector.shape_cast %124 : vector<8xf32> to vector<8x1xf32>
    %cst_56 = arith.constant 3.200000e+01 : f32
    %126 = vector.broadcast %cst_56 : f32 to vector<8x1xf32>
    %127 = arith.divf %125, %126 : vector<8x1xf32>
    %128 = vector.broadcast %127 : vector<8x1xf32> to vector<8x32xf32>
    %129 = arith.subf %123, %128 : vector<8x32xf32>
    %130 = arith.mulf %129, %129 : vector<8x32xf32>
    %cst_57 = arith.constant dense<0.000000e+00> : vector<8xf32>
    %131 = vector.multi_reduction <add>, %130, %cst_57 [1] : vector<8x32xf32> to vector<8xf32>
    %132 = vector.shape_cast %131 : vector<8xf32> to vector<8x1xf32>
    %cst_58 = arith.constant 3.200000e+01 : f32
    %133 = vector.broadcast %cst_58 : f32 to vector<8x1xf32>
    %134 = arith.divf %132, %133 : vector<8x1xf32>
    %135 = vector.broadcast %127 : vector<8x1xf32> to vector<8x32xf32>
    %136 = arith.subf %123, %135 : vector<8x32xf32>
    %cst_59 = arith.constant 9.99999974E-6 : f32
    %137 = vector.broadcast %cst_59 : f32 to vector<8x1xf32>
    %138 = arith.addf %134, %137 : vector<8x1xf32>
    %139 = math.rsqrt %138 : vector<8x1xf32>
    %140 = vector.broadcast %139 : vector<8x1xf32> to vector<8x32xf32>
    %141 = arith.mulf %136, %140 : vector<8x32xf32>
    %142 = vector.broadcast %121 : vector<1x32xf32> to vector<8x32xf32>
    %143 = arith.mulf %141, %142 : vector<8x32xf32>
    %144 = vector.broadcast %122 : vector<1x32xf32> to vector<8x32xf32>
    %145 = arith.addf %143, %144 : vector<8x32xf32>
    %c0_60 = arith.constant 0 : index
    %c0_61 = arith.constant 0 : index
    %146 = vector.load %arg11[%c0_60, %c0_61] : memref<32x32xf32, #tpu.memory_space<vmem>>, vector<32x32xf32>
    %c0_62 = arith.constant 0 : index
    %c0_63 = arith.constant 0 : index
    %147 = vector.load %arg12[%c0_62, %c0_63] : memref<1x32xf32, #tpu.memory_space<vmem>>, vector<1x32xf32>
    %cst_64 = arith.constant dense<0.000000e+00> : vector<8x32xf32>
    %148 = tpu.matmul %145, %146, %cst_64 {dimension_numbers = #tpu.dot_dimension_numbers<[1], [0], [0], [1], [0, 0, 1, 1], [], []>} : vector<8x32xf32>, vector<32x32xf32>, vector<8x32xf32> -> vector<8x32xf32>
    %149 = vector.broadcast %147 : vector<1x32xf32> to vector<8x32xf32>
    %150 = arith.addf %148, %149 : vector<8x32xf32>
    %cst_65 = arith.constant dense<0.000000e+00> : vector<8x32xf32>
    %151 = tpu.matmul %3, %146, %cst_65 {dimension_numbers = #tpu.dot_dimension_numbers<[1], [0], [0], [1], [0, 0, 1, 1], [], []>} : vector<8x32xf32>, vector<32x32xf32>, vector<8x32xf32> -> vector<8x32xf32>
    %152 = vector.broadcast %147 : vector<1x32xf32> to vector<8x32xf32>
    %153 = arith.addf %151, %152 : vector<8x32xf32>
    %c0_66 = arith.constant 0 : index
    %c0_67 = arith.constant 0 : index
    %154 = vector.load %arg13[%c0_66, %c0_67] : memref<32x32xf32, #tpu.memory_space<vmem>>, vector<32x32xf32>
    %c0_68 = arith.constant 0 : index
    %c0_69 = arith.constant 0 : index
    %155 = vector.load %arg14[%c0_68, %c0_69] : memref<1x32xf32, #tpu.memory_space<vmem>>, vector<1x32xf32>
    %156 = vector.shape_cast %7 : vector<1x8xf32> to vector<1x8xf32>
    %157 = vector.broadcast %156 : vector<1x8xf32> to vector<8x8xf32>
    %cst_70 = arith.constant dense<0.000000e+00> : vector<32xf32>
    %158 = vector.multi_reduction <add>, %153, %cst_70 [0] : vector<8x32xf32> to vector<32xf32>
    %159 = vector.shape_cast %158 : vector<32xf32> to vector<1x32xf32>
    %160 = vector.extract_strided_slice %150 {offsets = [0, 0], sizes = [8, 8], strides = [1, 1]} : vector<8x32xf32> to vector<8x8xf32>
    %161 = vector.extract_strided_slice %153 {offsets = [0, 0], sizes = [8, 8], strides = [1, 1]} : vector<8x32xf32> to vector<8x8xf32>
    %162 = tpu.transpose %161, [1, 0] : vector<8x8xf32> -> vector<8x8xf32>
    %cst_71 = arith.constant dense<0.000000e+00> : vector<8x8xf32>
    %163 = tpu.matmul %160, %162, %cst_71 {dimension_numbers = #tpu.dot_dimension_numbers<[1], [0], [0], [1], [0, 0, 1, 1], [], []>} : vector<8x8xf32>, vector<8x8xf32>, vector<8x8xf32> -> vector<8x8xf32>
    %cst_72 = arith.constant 0.000000e+00 : f32
    %164 = vector.broadcast %cst_72 : f32 to vector<8x8xf32>
    %165 = arith.cmpf oeq, %157, %164 : vector<8x8xf32>
    %cst_73 = arith.constant 0xFF800000 : f32
    %166 = vector.broadcast %cst_73 : f32 to vector<8x8xf32>
    %167 = arith.select %165, %166, %163 : vector<8x8xi1>, vector<8x8xf32>
    %cst_74 = arith.constant 0.353553385 : f32
    %168 = vector.broadcast %cst_74 : f32 to vector<8x8xf32>
    %169 = arith.mulf %167, %168 : vector<8x8xf32>
    %cst_75 = arith.constant dense<0xFF800000> : vector<8xf32>
    %170 = vector.multi_reduction <maximumf>, %169, %cst_75 [1] : vector<8x8xf32> to vector<8xf32>
    %171 = vector.shape_cast %170 : vector<8xf32> to vector<8x1xf32>
    %172 = vector.broadcast %171 : vector<8x1xf32> to vector<8x8xf32>
    %173 = arith.subf %169, %172 : vector<8x8xf32>
    %174 = math.exp %173 : vector<8x8xf32>
    %cst_76 = arith.constant dense<0.000000e+00> : vector<8xf32>
    %175 = vector.multi_reduction <add>, %174, %cst_76 [1] : vector<8x8xf32> to vector<8xf32>
    %176 = vector.shape_cast %175 : vector<8xf32> to vector<8x1xf32>
    %177 = vector.broadcast %176 : vector<8x1xf32> to vector<8x8xf32>
    %178 = arith.divf %174, %177 : vector<8x8xf32>
    %cst_77 = arith.constant dense<0.000000e+00> : vector<8xf32>
    %179 = vector.multi_reduction <add>, %178, %cst_77 [1] : vector<8x8xf32> to vector<8xf32>
    %180 = vector.shape_cast %179 : vector<8xf32> to vector<8x1xf32>
    %181 = vector.extract_strided_slice %159 {offsets = [0, 0], sizes = [1, 8], strides = [1, 1]} : vector<1x32xf32> to vector<1x8xf32>
    %182 = vector.broadcast %180 : vector<8x1xf32> to vector<8x8xf32>
    %183 = vector.broadcast %181 : vector<1x8xf32> to vector<8x8xf32>
    %184 = arith.mulf %182, %183 : vector<8x8xf32>
    %185 = vector.extract_strided_slice %150 {offsets = [0, 8], sizes = [8, 8], strides = [1, 1]} : vector<8x32xf32> to vector<8x8xf32>
    %186 = vector.extract_strided_slice %153 {offsets = [0, 8], sizes = [8, 8], strides = [1, 1]} : vector<8x32xf32> to vector<8x8xf32>
    %187 = tpu.transpose %186, [1, 0] : vector<8x8xf32> -> vector<8x8xf32>
    %cst_78 = arith.constant dense<0.000000e+00> : vector<8x8xf32>
    %188 = tpu.matmul %185, %187, %cst_78 {dimension_numbers = #tpu.dot_dimension_numbers<[1], [0], [0], [1], [0, 0, 1, 1], [], []>} : vector<8x8xf32>, vector<8x8xf32>, vector<8x8xf32> -> vector<8x8xf32>
    %cst_79 = arith.constant 0.000000e+00 : f32
    %189 = vector.broadcast %cst_79 : f32 to vector<8x8xf32>
    %190 = arith.cmpf oeq, %157, %189 : vector<8x8xf32>
    %cst_80 = arith.constant 0xFF800000 : f32
    %191 = vector.broadcast %cst_80 : f32 to vector<8x8xf32>
    %192 = arith.select %190, %191, %188 : vector<8x8xi1>, vector<8x8xf32>
    %cst_81 = arith.constant 0.353553385 : f32
    %193 = vector.broadcast %cst_81 : f32 to vector<8x8xf32>
    %194 = arith.mulf %192, %193 : vector<8x8xf32>
    %cst_82 = arith.constant dense<0xFF800000> : vector<8xf32>
    %195 = vector.multi_reduction <maximumf>, %194, %cst_82 [1] : vector<8x8xf32> to vector<8xf32>
    %196 = vector.shape_cast %195 : vector<8xf32> to vector<8x1xf32>
    %197 = vector.broadcast %196 : vector<8x1xf32> to vector<8x8xf32>
    %198 = arith.subf %194, %197 : vector<8x8xf32>
    %199 = math.exp %198 : vector<8x8xf32>
    %cst_83 = arith.constant dense<0.000000e+00> : vector<8xf32>
    %200 = vector.multi_reduction <add>, %199, %cst_83 [1] : vector<8x8xf32> to vector<8xf32>
    %201 = vector.shape_cast %200 : vector<8xf32> to vector<8x1xf32>
    %202 = vector.broadcast %201 : vector<8x1xf32> to vector<8x8xf32>
    %203 = arith.divf %199, %202 : vector<8x8xf32>
    %cst_84 = arith.constant dense<0.000000e+00> : vector<8xf32>
    %204 = vector.multi_reduction <add>, %203, %cst_84 [1] : vector<8x8xf32> to vector<8xf32>
    %205 = vector.shape_cast %204 : vector<8xf32> to vector<8x1xf32>
    %206 = vector.extract_strided_slice %159 {offsets = [0, 8], sizes = [1, 8], strides = [1, 1]} : vector<1x32xf32> to vector<1x8xf32>
    %207 = vector.broadcast %205 : vector<8x1xf32> to vector<8x8xf32>
    %208 = vector.broadcast %206 : vector<1x8xf32> to vector<8x8xf32>
    %209 = arith.mulf %207, %208 : vector<8x8xf32>
    %210 = vector.extract_strided_slice %150 {offsets = [0, 16], sizes = [8, 8], strides = [1, 1]} : vector<8x32xf32> to vector<8x8xf32>
    %211 = vector.extract_strided_slice %153 {offsets = [0, 16], sizes = [8, 8], strides = [1, 1]} : vector<8x32xf32> to vector<8x8xf32>
    %212 = tpu.transpose %211, [1, 0] : vector<8x8xf32> -> vector<8x8xf32>
    %cst_85 = arith.constant dense<0.000000e+00> : vector<8x8xf32>
    %213 = tpu.matmul %210, %212, %cst_85 {dimension_numbers = #tpu.dot_dimension_numbers<[1], [0], [0], [1], [0, 0, 1, 1], [], []>} : vector<8x8xf32>, vector<8x8xf32>, vector<8x8xf32> -> vector<8x8xf32>
    %cst_86 = arith.constant 0.000000e+00 : f32
    %214 = vector.broadcast %cst_86 : f32 to vector<8x8xf32>
    %215 = arith.cmpf oeq, %157, %214 : vector<8x8xf32>
    %cst_87 = arith.constant 0xFF800000 : f32
    %216 = vector.broadcast %cst_87 : f32 to vector<8x8xf32>
    %217 = arith.select %215, %216, %213 : vector<8x8xi1>, vector<8x8xf32>
    %cst_88 = arith.constant 0.353553385 : f32
    %218 = vector.broadcast %cst_88 : f32 to vector<8x8xf32>
    %219 = arith.mulf %217, %218 : vector<8x8xf32>
    %cst_89 = arith.constant dense<0xFF800000> : vector<8xf32>
    %220 = vector.multi_reduction <maximumf>, %219, %cst_89 [1] : vector<8x8xf32> to vector<8xf32>
    %221 = vector.shape_cast %220 : vector<8xf32> to vector<8x1xf32>
    %222 = vector.broadcast %221 : vector<8x1xf32> to vector<8x8xf32>
    %223 = arith.subf %219, %222 : vector<8x8xf32>
    %224 = math.exp %223 : vector<8x8xf32>
    %cst_90 = arith.constant dense<0.000000e+00> : vector<8xf32>
    %225 = vector.multi_reduction <add>, %224, %cst_90 [1] : vector<8x8xf32> to vector<8xf32>
    %226 = vector.shape_cast %225 : vector<8xf32> to vector<8x1xf32>
    %227 = vector.broadcast %226 : vector<8x1xf32> to vector<8x8xf32>
    %228 = arith.divf %224, %227 : vector<8x8xf32>
    %cst_91 = arith.constant dense<0.000000e+00> : vector<8xf32>
    %229 = vector.multi_reduction <add>, %228, %cst_91 [1] : vector<8x8xf32> to vector<8xf32>
    %230 = vector.shape_cast %229 : vector<8xf32> to vector<8x1xf32>
    %231 = vector.extract_strided_slice %159 {offsets = [0, 16], sizes = [1, 8], strides = [1, 1]} : vector<1x32xf32> to vector<1x8xf32>
    %232 = vector.broadcast %230 : vector<8x1xf32> to vector<8x8xf32>
    %233 = vector.broadcast %231 : vector<1x8xf32> to vector<8x8xf32>
    %234 = arith.mulf %232, %233 : vector<8x8xf32>
    %235 = vector.extract_strided_slice %150 {offsets = [0, 24], sizes = [8, 8], strides = [1, 1]} : vector<8x32xf32> to vector<8x8xf32>
    %236 = vector.extract_strided_slice %153 {offsets = [0, 24], sizes = [8, 8], strides = [1, 1]} : vector<8x32xf32> to vector<8x8xf32>
    %237 = tpu.transpose %236, [1, 0] : vector<8x8xf32> -> vector<8x8xf32>
    %cst_92 = arith.constant dense<0.000000e+00> : vector<8x8xf32>
    %238 = tpu.matmul %235, %237, %cst_92 {dimension_numbers = #tpu.dot_dimension_numbers<[1], [0], [0], [1], [0, 0, 1, 1], [], []>} : vector<8x8xf32>, vector<8x8xf32>, vector<8x8xf32> -> vector<8x8xf32>
    %cst_93 = arith.constant 0.000000e+00 : f32
    %239 = vector.broadcast %cst_93 : f32 to vector<8x8xf32>
    %240 = arith.cmpf oeq, %157, %239 : vector<8x8xf32>
    %cst_94 = arith.constant 0xFF800000 : f32
    %241 = vector.broadcast %cst_94 : f32 to vector<8x8xf32>
    %242 = arith.select %240, %241, %238 : vector<8x8xi1>, vector<8x8xf32>
    %cst_95 = arith.constant 0.353553385 : f32
    %243 = vector.broadcast %cst_95 : f32 to vector<8x8xf32>
    %244 = arith.mulf %242, %243 : vector<8x8xf32>
    %cst_96 = arith.constant dense<0xFF800000> : vector<8xf32>
    %245 = vector.multi_reduction <maximumf>, %244, %cst_96 [1] : vector<8x8xf32> to vector<8xf32>
    %246 = vector.shape_cast %245 : vector<8xf32> to vector<8x1xf32>
    %247 = vector.broadcast %246 : vector<8x1xf32> to vector<8x8xf32>
    %248 = arith.subf %244, %247 : vector<8x8xf32>
    %249 = math.exp %248 : vector<8x8xf32>
    %cst_97 = arith.constant dense<0.000000e+00> : vector<8xf32>
    %250 = vector.multi_reduction <add>, %249, %cst_97 [1] : vector<8x8xf32> to vector<8xf32>
    %251 = vector.shape_cast %250 : vector<8xf32> to vector<8x1xf32>
    %252 = vector.broadcast %251 : vector<8x1xf32> to vector<8x8xf32>
    %253 = arith.divf %249, %252 : vector<8x8xf32>
    %cst_98 = arith.constant dense<0.000000e+00> : vector<8xf32>
    %254 = vector.multi_reduction <add>, %253, %cst_98 [1] : vector<8x8xf32> to vector<8xf32>
    %255 = vector.shape_cast %254 : vector<8xf32> to vector<8x1xf32>
    %256 = vector.extract_strided_slice %159 {offsets = [0, 24], sizes = [1, 8], strides = [1, 1]} : vector<1x32xf32> to vector<1x8xf32>
    %257 = vector.broadcast %255 : vector<8x1xf32> to vector<8x8xf32>
    %258 = vector.broadcast %256 : vector<1x8xf32> to vector<8x8xf32>
    %259 = arith.mulf %257, %258 : vector<8x8xf32>
    %260 = tpu.concatenate %184, %209, %234, %259 in 1 : vector<8x8xf32>, vector<8x8xf32>, vector<8x8xf32>, vector<8x8xf32> -> vector<8x32xf32>
    %cst_99 = arith.constant dense<0.000000e+00> : vector<8x32xf32>
    %261 = tpu.matmul %260, %154, %cst_99 {dimension_numbers = #tpu.dot_dimension_numbers<[1], [0], [0], [1], [0, 0, 1, 1], [], []>} : vector<8x32xf32>, vector<32x32xf32>, vector<8x32xf32> -> vector<8x32xf32>
    %262 = vector.broadcast %155 : vector<1x32xf32> to vector<8x32xf32>
    %263 = arith.addf %261, %262 : vector<8x32xf32>
    %c0_100 = arith.constant 0 : index
    %c0_101 = arith.constant 0 : index
    %264 = vector.load %arg15[%c0_100, %c0_101] : memref<1x32xf32, #tpu.memory_space<vmem>>, vector<1x32xf32>
    %c0_102 = arith.constant 0 : index
    %c0_103 = arith.constant 0 : index
    %265 = vector.load %arg16[%c0_102, %c0_103] : memref<1x32xf32, #tpu.memory_space<vmem>>, vector<1x32xf32>
    %266 = arith.addf %145, %263 : vector<8x32xf32>
    %cst_104 = arith.constant dense<0.000000e+00> : vector<8xf32>
    %267 = vector.multi_reduction <add>, %266, %cst_104 [1] : vector<8x32xf32> to vector<8xf32>
    %268 = vector.shape_cast %267 : vector<8xf32> to vector<8x1xf32>
    %cst_105 = arith.constant 3.200000e+01 : f32
    %269 = vector.broadcast %cst_105 : f32 to vector<8x1xf32>
    %270 = arith.divf %268, %269 : vector<8x1xf32>
    %271 = vector.broadcast %270 : vector<8x1xf32> to vector<8x32xf32>
    %272 = arith.subf %266, %271 : vector<8x32xf32>
    %273 = arith.mulf %272, %272 : vector<8x32xf32>
    %cst_106 = arith.constant dense<0.000000e+00> : vector<8xf32>
    %274 = vector.multi_reduction <add>, %273, %cst_106 [1] : vector<8x32xf32> to vector<8xf32>
    %275 = vector.shape_cast %274 : vector<8xf32> to vector<8x1xf32>
    %cst_107 = arith.constant 3.200000e+01 : f32
    %276 = vector.broadcast %cst_107 : f32 to vector<8x1xf32>
    %277 = arith.divf %275, %276 : vector<8x1xf32>
    %278 = vector.broadcast %270 : vector<8x1xf32> to vector<8x32xf32>
    %279 = arith.subf %266, %278 : vector<8x32xf32>
    %cst_108 = arith.constant 9.99999974E-6 : f32
    %280 = vector.broadcast %cst_108 : f32 to vector<8x1xf32>
    %281 = arith.addf %277, %280 : vector<8x1xf32>
    %282 = math.rsqrt %281 : vector<8x1xf32>
    %283 = vector.broadcast %282 : vector<8x1xf32> to vector<8x32xf32>
    %284 = arith.mulf %279, %283 : vector<8x32xf32>
    %285 = vector.broadcast %264 : vector<1x32xf32> to vector<8x32xf32>
    %286 = arith.mulf %284, %285 : vector<8x32xf32>
    %287 = vector.broadcast %265 : vector<1x32xf32> to vector<8x32xf32>
    %288 = arith.addf %286, %287 : vector<8x32xf32>
    %c0_109 = arith.constant 0 : index
    %c0_110 = arith.constant 0 : index
    %289 = vector.load %arg17[%c0_109, %c0_110] : memref<32x64xf32, #tpu.memory_space<vmem>>, vector<32x64xf32>
    %cst_111 = arith.constant dense<0.000000e+00> : vector<8x64xf32>
    %290 = tpu.matmul %288, %289, %cst_111 {dimension_numbers = #tpu.dot_dimension_numbers<[1], [0], [0], [1], [0, 0, 1, 1], [], []>} : vector<8x32xf32>, vector<32x64xf32>, vector<8x64xf32> -> vector<8x64xf32>
    %c0_112 = arith.constant 0 : index
    %c0_113 = arith.constant 0 : index
    %291 = vector.load %arg18[%c0_112, %c0_113] : memref<1x64xf32, #tpu.memory_space<vmem>>, vector<1x64xf32>
    %292 = vector.broadcast %291 : vector<1x64xf32> to vector<8x64xf32>
    %293 = arith.addf %290, %292 : vector<8x64xf32>
    %cst_114 = arith.constant 0.000000e+00 : f32
    %294 = vector.broadcast %cst_114 : f32 to vector<8x64xf32>
    %295 = arith.maximumf %293, %294 : vector<8x64xf32>
    %c0_115 = arith.constant 0 : index
    %c0_116 = arith.constant 0 : index
    %296 = vector.load %arg19[%c0_115, %c0_116] : memref<64x32xf32, #tpu.memory_space<vmem>>, vector<64x32xf32>
    %cst_117 = arith.constant dense<0.000000e+00> : vector<8x32xf32>
    %297 = tpu.matmul %295, %296, %cst_117 {dimension_numbers = #tpu.dot_dimension_numbers<[1], [0], [0], [1], [0, 0, 1, 1], [], []>} : vector<8x64xf32>, vector<64x32xf32>, vector<8x32xf32> -> vector<8x32xf32>
    %c0_118 = arith.constant 0 : index
    %c0_119 = arith.constant 0 : index
    %298 = vector.load %arg20[%c0_118, %c0_119] : memref<1x32xf32, #tpu.memory_space<vmem>>, vector<1x32xf32>
    %299 = vector.broadcast %298 : vector<1x32xf32> to vector<8x32xf32>
    %300 = arith.addf %297, %299 : vector<8x32xf32>
    %c0_120 = arith.constant 0 : index
    %c0_121 = arith.constant 0 : index
    %301 = vector.load %arg21[%c0_120, %c0_121] : memref<1x32xf32, #tpu.memory_space<vmem>>, vector<1x32xf32>
    %c0_122 = arith.constant 0 : index
    %c0_123 = arith.constant 0 : index
    %302 = vector.load %arg22[%c0_122, %c0_123] : memref<1x32xf32, #tpu.memory_space<vmem>>, vector<1x32xf32>
    %303 = arith.addf %288, %300 : vector<8x32xf32>
    %cst_124 = arith.constant dense<0.000000e+00> : vector<8xf32>
    %304 = vector.multi_reduction <add>, %303, %cst_124 [1] : vector<8x32xf32> to vector<8xf32>
    %305 = vector.shape_cast %304 : vector<8xf32> to vector<8x1xf32>
    %cst_125 = arith.constant 3.200000e+01 : f32
    %306 = vector.broadcast %cst_125 : f32 to vector<8x1xf32>
    %307 = arith.divf %305, %306 : vector<8x1xf32>
    %308 = vector.broadcast %307 : vector<8x1xf32> to vector<8x32xf32>
    %309 = arith.subf %303, %308 : vector<8x32xf32>
    %310 = arith.mulf %309, %309 : vector<8x32xf32>
    %cst_126 = arith.constant dense<0.000000e+00> : vector<8xf32>
    %311 = vector.multi_reduction <add>, %310, %cst_126 [1] : vector<8x32xf32> to vector<8xf32>
    %312 = vector.shape_cast %311 : vector<8xf32> to vector<8x1xf32>
    %cst_127 = arith.constant 3.200000e+01 : f32
    %313 = vector.broadcast %cst_127 : f32 to vector<8x1xf32>
    %314 = arith.divf %312, %313 : vector<8x1xf32>
    %315 = vector.broadcast %307 : vector<8x1xf32> to vector<8x32xf32>
    %316 = arith.subf %303, %315 : vector<8x32xf32>
    %cst_128 = arith.constant 9.99999974E-6 : f32
    %317 = vector.broadcast %cst_128 : f32 to vector<8x1xf32>
    %318 = arith.addf %314, %317 : vector<8x1xf32>
    %319 = math.rsqrt %318 : vector<8x1xf32>
    %320 = vector.broadcast %319 : vector<8x1xf32> to vector<8x32xf32>
    %321 = arith.mulf %316, %320 : vector<8x32xf32>
    %322 = vector.broadcast %301 : vector<1x32xf32> to vector<8x32xf32>
    %323 = arith.mulf %321, %322 : vector<8x32xf32>
    %324 = vector.broadcast %302 : vector<1x32xf32> to vector<8x32xf32>
    %325 = arith.addf %323, %324 : vector<8x32xf32>
    %c0_129 = arith.constant 0 : index
    %c0_130 = arith.constant 0 : index
    %c0_131 = arith.constant 0 : index
    %326 = vector.load %arg23[%c0_129, %c0_130, %c0_131] : memref<1x8x32xf32, #tpu.memory_space<vmem>>, vector<1x8x32xf32>
    %327 = vector.shape_cast %326 : vector<1x8x32xf32> to vector<8x32xf32>
    %328 = vector.shape_cast %325 : vector<8x32xf32> to vector<1x8x32xf32>
    tpu.vector_store %arg23[%c0_129, %c0_130, %c0_131], %328 {strides = array<i32>} : memref<1x8x32xf32, #tpu.memory_space<vmem>>, vector<1x8x32xf32>,
    return
  }
  func.func @transform_0(%arg0: i32) -> (i32, i32, i32) {
    %c0_i32 = arith.constant 0 : i32
    %c0_i32_0 = arith.constant 0 : i32
    %c0_i32_1 = arith.constant 0 : i32
    return %arg0, %c0_i32, %c0_i32_0 : i32, i32, i32
  }
  func.func @transform_1(%arg0: i32) -> (i32, i32, i32) {
    %c0_i32 = arith.constant 0 : i32
    %c0_i32_0 = arith.constant 0 : i32
    %c0_i32_1 = arith.constant 0 : i32
    return %arg0, %c0_i32, %c0_i32_0 : i32, i32, i32
  }
  func.func @transform_2(%arg0: i32) -> (i32, i32, i32, i32) {
    %c0_i32 = arith.constant 0 : i32
    %c0_i32_0 = arith.constant 0 : i32
    %c0_i32_1 = arith.constant 0 : i32
    %c0_i32_2 = arith.constant 0 : i32
    return %arg0, %c0_i32, %c0_i32_0, %c0_i32_1 : i32, i32, i32, i32
  }
  func.func @transform_3(%arg0: i32) -> (i32, i32, i32, i32) {
    %c0_i32 = arith.constant 0 : i32
    %c0_i32_0 = arith.constant 0 : i32
    %c0_i32_1 = arith.constant 0 : i32
    %c0_i32_2 = arith.constant 0 : i32
    return %arg0, %c0_i32, %c0_i32_0, %c0_i32_1 : i32, i32, i32, i32
  }
  func.func @transform_4(%arg0: i32) -> (i32, i32) {
    %c0_i32 = arith.constant 0 : i32
    %c0_i32_0 = arith.constant 0 : i32
    %c0_i32_1 = arith.constant 0 : i32
    return %c0_i32, %c0_i32_0 : i32, i32
  }
  func.func @transform_5(%arg0: i32) -> (i32, i32) {
    %c0_i32 = arith.constant 0 : i32
    %c0_i32_0 = arith.constant 0 : i32
    %c0_i32_1 = arith.constant 0 : i32
    return %c0_i32, %c0_i32_0 : i32, i32
  }
  func.func @transform_6(%arg0: i32) -> (i32, i32) {
    %c0_i32 = arith.constant 0 : i32
    %c0_i32_0 = arith.constant 0 : i32
    %c0_i32_1 = arith.constant 0 : i32
    return %c0_i32, %c0_i32_0 : i32, i32
  }
  func.func @transform_7(%arg0: i32) -> (i32, i32) {
    %c0_i32 = arith.constant 0 : i32
    %c0_i32_0 = arith.constant 0 : i32
    %c0_i32_1 = arith.constant 0 : i32
    return %c0_i32, %c0_i32_0 : i32, i32
  }
  func.func @transform_8(%arg0: i32) -> (i32, i32) {
    %c0_i32 = arith.constant 0 : i32
    %c0_i32_0 = arith.constant 0 : i32
    %c0_i32_1 = arith.constant 0 : i32
    return %c0_i32, %c0_i32_0 : i32, i32
  }
  func.func @transform_9(%arg0: i32) -> (i32, i32) {
    %c0_i32 = arith.constant 0 : i32
    %c0_i32_0 = arith.constant 0 : i32
    %c0_i32_1 = arith.constant 0 : i32
    return %c0_i32, %c0_i32_0 : i32, i32
  }
  func.func @transform_10(%arg0: i32) -> (i32, i32) {
    %c0_i32 = arith.constant 0 : i32
    %c0_i32_0 = arith.constant 0 : i32
    %c0_i32_1 = arith.constant 0 : i32
    return %c0_i32, %c0_i32_0 : i32, i32
  }
  func.func @transform_11(%arg0: i32) -> (i32, i32) {
    %c0_i32 = arith.constant 0 : i32
    %c0_i32_0 = arith.constant 0 : i32
    %c0_i32_1 = arith.constant 0 : i32
    return %c0_i32, %c0_i32_0 : i32, i32
  }
  func.func @transform_12(%arg0: i32) -> (i32, i32) {
    %c0_i32 = arith.constant 0 : i32
    %c0_i32_0 = arith.constant 0 : i32
    %c0_i32_1 = arith.constant 0 : i32
    return %c0_i32, %c0_i32_0 : i32, i32
  }
  func.func @transform_13(%arg0: i32) -> (i32, i32) {
    %c0_i32 = arith.constant 0 : i32
    %c0_i32_0 = arith.constant 0 : i32
    %c0_i32_1 = arith.constant 0 : i32
    return %c0_i32, %c0_i32_0 : i32, i32
  }
  func.func @transform_14(%arg0: i32) -> (i32, i32) {
    %c0_i32 = arith.constant 0 : i32
    %c0_i32_0 = arith.constant 0 : i32
    %c0_i32_1 = arith.constant 0 : i32
    return %c0_i32, %c0_i32_0 : i32, i32
  }
  func.func @transform_15(%arg0: i32) -> (i32, i32) {
    %c0_i32 = arith.constant 0 : i32
    %c0_i32_0 = arith.constant 0 : i32
    %c0_i32_1 = arith.constant 0 : i32
    return %c0_i32, %c0_i32_0 : i32, i32
  }
  func.func @transform_16(%arg0: i32) -> (i32, i32) {
    %c0_i32 = arith.constant 0 : i32
    %c0_i32_0 = arith.constant 0 : i32
    %c0_i32_1 = arith.constant 0 : i32
    return %c0_i32, %c0_i32_0 : i32, i32
  }
  func.func @transform_17(%arg0: i32) -> (i32, i32) {
    %c0_i32 = arith.constant 0 : i32
    %c0_i32_0 = arith.constant 0 : i32
    %c0_i32_1 = arith.constant 0 : i32
    return %c0_i32, %c0_i32_0 : i32, i32
  }
  func.func @transform_18(%arg0: i32) -> (i32, i32) {
    %c0_i32 = arith.constant 0 : i32
    %c0_i32_0 = arith.constant 0 : i32
    %c0_i32_1 = arith.constant 0 : i32
    return %c0_i32, %c0_i32_0 : i32, i32
  }
  func.func @transform_19(%arg0: i32) -> (i32, i32) {
    %c0_i32 = arith.constant 0 : i32
    %c0_i32_0 = arith.constant 0 : i32
    %c0_i32_1 = arith.constant 0 : i32
    return %c0_i32, %c0_i32_0 : i32, i32
  }
  func.func @transform_20(%arg0: i32) -> (i32, i32) {
    %c0_i32 = arith.constant 0 : i32
    %c0_i32_0 = arith.constant 0 : i32
    %c0_i32_1 = arith.constant 0 : i32
    return %c0_i32, %c0_i32_0 : i32, i32
  }
  func.func @transform_21(%arg0: i32) -> (i32, i32) {
    %c0_i32 = arith.constant 0 : i32
    %c0_i32_0 = arith.constant 0 : i32
    %c0_i32_1 = arith.constant 0 : i32
    return %c0_i32, %c0_i32_0 : i32, i32
  }
  func.func @transform_22(%arg0: i32) -> (i32, i32, i32) {
    %c0_i32 = arith.constant 0 : i32
    %c0_i32_0 = arith.constant 0 : i32
    %c0_i32_1 = arith.constant 0 : i32
    return %arg0, %c0_i32, %c0_i32_0 : i32, i32, i32
  }
}

module attributes {stable_mosaic.version = 11 : i64} {
  func.func @_decoder_block_kernel(%arg0: i32, %arg1: memref<1x8x32xf32, #tpu.memory_space<vmem>>, %arg2: memref<1x8x32xf32, #tpu.memory_space<vmem>>, %arg3: memref<1x1x8x8xf32, #tpu.memory_space<vmem>>, %arg4: memref<1x1x1x8xf32, #tpu.memory_space<vmem>>, %arg5: memref<32x32xf32, #tpu.memory_space<vmem>>, %arg6: memref<1x32xf32, #tpu.memory_space<vmem>>, %arg7: memref<32x32xf32, #tpu.memory_space<vmem>>, %arg8: memref<1x32xf32, #tpu.memory_space<vmem>>, %arg9: memref<1x32xf32, #tpu.memory_space<vmem>>, %arg10: memref<1x32xf32, #tpu.memory_space<vmem>>, %arg11: memref<32x32xf32, #tpu.memory_space<vmem>>, %arg12: memref<1x32xf32, #tpu.memory_space<vmem>>, %arg13: memref<32x32xf32, #tpu.memory_space<vmem>>, %arg14: memref<1x32xf32, #tpu.memory_space<vmem>>, %arg15: memref<1x32xf32, #tpu.memory_space<vmem>>, %arg16: memref<1x32xf32, #tpu.memory_space<vmem>>, %arg17: memref<32x64xf32, #tpu.memory_space<vmem>>, %arg18: memref<1x64xf32, #tpu.memory_space<vmem>>, %arg19: memref<64x32xf32, #tpu.memory_space<vmem>>, %arg20: memref<1x32xf32, #tpu.memory_space<vmem>>, %arg21: memref<1x32xf32, #tpu.memory_space<vmem>>, %arg22: memref<1x32xf32, #tpu.memory_space<vmem>>, %arg23: memref<1x8x32xf32, #tpu.memory_space<vmem>>) attributes {dimension_semantics = [#tpu.dimension_semantics<parallel>], iteration_bounds = array<i64: 2>, scalar_prefetch = 0 : i64, scratch_operands = 0 : i64, tpu.core_type = #tpu.core_type<tc>, window_params = [{transform_indices = @transform_0, window_bounds = array<i64: 1, 8, 32>}, {transform_indices = @transform_1, window_bounds = array<i64: 1, 8, 32>}, {transform_indices = @transform_2, window_bounds = array<i64: 1, 1, 8, 8>}, {transform_indices = @transform_3, window_bounds = array<i64: 1, 1, 1, 8>}, {pipeline_mode = #tpu.pipeline_mode<synchronous>, transform_indices = @transform_4, window_bounds = array<i64: 32, 32>}, {pipeline_mode = #tpu.pipeline_mode<synchronous>, transform_indices = @transform_5, window_bounds = array<i64: 1, 32>}, {pipeline_mode = #tpu.pipeline_mode<synchronous>, transform_indices = @transform_6, window_bounds = array<i64: 32, 32>}, {pipeline_mode = #tpu.pipeline_mode<synchronous>, transform_indices = @transform_7, window_bounds = array<i64: 1, 32>}, {pipeline_mode = #tpu.pipeline_mode<synchronous>, transform_indices = @transform_8, window_bounds = array<i64: 1, 32>}, {pipeline_mode = #tpu.pipeline_mode<synchronous>, transform_indices = @transform_9, window_bounds = array<i64: 1, 32>}, {pipeline_mode = #tpu.pipeline_mode<synchronous>, transform_indices = @transform_10, window_bounds = array<i64: 32, 32>}, {pipeline_mode = #tpu.pipeline_mode<synchronous>, transform_indices = @transform_11, window_bounds = array<i64: 1, 32>}, {pipeline_mode = #tpu.pipeline_mode<synchronous>, transform_indices = @transform_12, window_bounds = array<i64: 32, 32>}, {pipeline_mode = #tpu.pipeline_mode<synchronous>, transform_indices = @transform_13, window_bounds = array<i64: 1, 32>}, {pipeline_mode = #tpu.pipeline_mode<synchronous>, transform_indices = @transform_14, window_bounds = array<i64: 1, 32>}, {pipeline_mode = #tpu.pipeline_mode<synchronous>, transform_indices = @transform_15, window_bounds = array<i64: 1, 32>}, {pipeline_mode = #tpu.pipeline_mode<synchronous>, transform_indices = @transform_16, window_bounds = array<i64: 32, 64>}, {pipeline_mode = #tpu.pipeline_mode<synchronous>, transform_indices = @transform_17, window_bounds = array<i64: 1, 64>}, {pipeline_mode = #tpu.pipeline_mode<synchronous>, transform_indices = @transform_18, window_bounds = array<i64: 64, 32>}, {pipeline_mode = #tpu.pipeline_mode<synchronous>, transform_indices = @transform_19, window_bounds = array<i64: 1, 32>}, {pipeline_mode = #tpu.pipeline_mode<synchronous>, transform_indices = @transform_20, window_bounds = array<i64: 1, 32>}, {pipeline_mode = #tpu.pipeline_mode<synchronous>, transform_indices = @transform_21, window_bounds = array<i64: 1, 32>}, {transform_indices = @transform_22, window_bounds = array<i64: 1, 8, 32>}]} {
    %c0 = arith.constant 0 : index
    %c0_0 = arith.constant 0 : index
    %c0_1 = arith.constant 0 : index
    %0 = vector.load %arg1[%c0, %c0_0, %c0_1] : memref<1x8x32xf32, #tpu.memory_space<vmem>>, vector<1x8x32xf32>
    %1 = vector.shape_cast %0 : vector<1x8x32xf32> to vector<8x32xf32>
    %c0_2 = arith.constant 0 : index
    %c0_3 = arith.constant 0 : index
    %c0_4 = arith.constant 0 : index
    %2 = vector.load %arg2[%c0_2, %c0_3, %c0_4] : memref<1x8x32xf32, #tpu.memory_space<vmem>>, vector<1x8x32xf32>
    %3 = vector.shape_cast %2 : vector<1x8x32xf32> to vector<8x32xf32>
    %c0_5 = arith.constant 0 : index
    %c0_6 = arith.constant 0 : index
    %c0_7 = arith.constant 0 : index
    %c0_8 = arith.constant 0 : index
    %4 = vector.load %arg3[%c0_5, %c0_6, %c0_7, %c0_8] : memref<1x1x8x8xf32, #tpu.memory_space<vmem>>, vector<1x1x8x8xf32>
    %5 = vector.shape_cast %4 : vector<1x1x8x8xf32> to vector<8x8xf32>
    %c0_9 = arith.constant 0 : index
    %c0_10 = arith.constant 0 : index
    %c0_11 = arith.constant 0 : index
    %c0_12 = arith.constant 0 : index
    %6 = vector.load %arg4[%c0_9, %c0_10, %c0_11, %c0_12] : memref<1x1x1x8xf32, #tpu.memory_space<vmem>>, vector<1x1x1x8xf32>
    %7 = vector.shape_cast %6 : vector<1x1x1x8xf32> to vector<1x8xf32>
    %c0_13 = arith.constant 0 : index
    %c0_14 = arith.constant 0 : index
    %8 = vector.load %arg5[%c0_13, %c0_14] : memref<32x32xf32, #tpu.memory_space<vmem>>, vector<32x32xf32>
    %cst = arith.constant dense<0.000000e+00> : vector<8x32xf32>
    %9 = tpu.matmul %1, %8, %cst {dimension_numbers = #tpu.dot_dimension_numbers<[1], [0], [0], [1], [0, 0, 1, 1], [], []>} : vector<8x32xf32>, vector<32x32xf32>, vector<8x32xf32> -> vector<8x32xf32>
    %c0_15 = arith.constant 0 : index
    %c0_16 = arith.constant 0 : index
    %10 = vector.load %arg6[%c0_15, %c0_16] : memref<1x32xf32, #tpu.memory_space<vmem>>, vector<1x32xf32>
    %11 = vector.broadcast %10 : vector<1x32xf32> to vector<8x32xf32>
    %12 = arith.addf %9, %11 : vector<8x32xf32>
    %c0_17 = arith.constant 0 : index
    %c0_18 = arith.constant 0 : index
    %13 = vector.load %arg7[%c0_17, %c0_18] : memref<32x32xf32, #tpu.memory_space<vmem>>, vector<32x32xf32>
    %c0_19 = arith.constant 0 : index
    %c0_20 = arith.constant 0 : index
    %14 = vector.load %arg8[%c0_19, %c0_20] : memref<1x32xf32, #tpu.memory_space<vmem>>, vector<1x32xf32>
    %cst_21 = arith.constant dense<0.000000e+00> : vector<32xf32>
    %15 = vector.multi_reduction <add>, %12, %cst_21 [0] : vector<8x32xf32> to vector<32xf32>
    %16 = vector.shape_cast %15 : vector<32xf32> to vector<1x32xf32>
    %17 = vector.extract_strided_slice %12 {offsets = [0, 0], sizes = [8, 8], strides = [1, 1]} : vector<8x32xf32> to vector<8x8xf32>
    %18 = vector.extract_strided_slice %12 {offsets = [0, 0], sizes = [8, 8], strides = [1, 1]} : vector<8x32xf32> to vector<8x8xf32>
    %19 = tpu.transpose %18, [1, 0] : vector<8x8xf32> -> vector<8x8xf32>
    %cst_22 = arith.constant dense<0.000000e+00> : vector<8x8xf32>
    %20 = tpu.matmul %17, %19, %cst_22 {dimension_numbers = #tpu.dot_dimension_numbers<[1], [0], [0], [1], [0, 0, 1, 1], [], []>} : vector<8x8xf32>, vector<8x8xf32>, vector<8x8xf32> -> vector<8x8xf32>
    %cst_23 = arith.constant 0.000000e+00 : f32
    %21 = vector.broadcast %cst_23 : f32 to vector<8x8xf32>
    %22 = arith.cmpf oeq, %5, %21 : vector<8x8xf32>
    %cst_24 = arith.constant 0xFF800000 : f32
    %23 = vector.broadcast %cst_24 : f32 to vector<8x8xf32>
    %24 = arith.select %22, %23, %20 : vector<8x8xi1>, vector<8x8xf32>
    %cst_25 = arith.constant 0.353553385 : f32
    %25 = vector.broadcast %cst_25 : f32 to vector<8x8xf32>
    %26 = arith.mulf %24, %25 : vector<8x8xf32>
    %cst_26 = arith.constant dense<0xFF800000> : vector<8xf32>
    %27 = vector.multi_reduction <maximumf>, %26, %cst_26 [1] : vector<8x8xf32> to vector<8xf32>
    %28 = vector.shape_cast %27 : vector<8xf32> to vector<8x1xf32>
    %29 = vector.broadcast %28 : vector<8x1xf32> to vector<8x8xf32>
    %30 = arith.subf %26, %29 : vector<8x8xf32>
    %31 = math.exp %30 : vector<8x8xf32>
    %cst_27 = arith.constant dense<0.000000e+00> : vector<8xf32>
    %32 = vector.multi_reduction <add>, %31, %cst_27 [1] : vector<8x8xf32> to vector<8xf32>
    %33 = vector.shape_cast %32 : vector<8xf32> to vector<8x1xf32>
    %34 = vector.broadcast %33 : vector<8x1xf32> to vector<8x8xf32>
    %35 = arith.divf %31, %34 : vector<8x8xf32>
    %cst_28 = arith.constant dense<0.000000e+00> : vector<8xf32>
    %36 = vector.multi_reduction <add>, %35, %cst_28 [1] : vector<8x8xf32> to vector<8xf32>
    %37 = vector.shape_cast %36 : vector<8xf32> to vector<8x1xf32>
    %38 = vector.extract_strided_slice %16 {offsets = [0, 0], sizes = [1, 8], strides = [1, 1]} : vector<1x32xf32> to vector<1x8xf32>
    %39 = vector.broadcast %37 : vector<8x1xf32> to vector<8x8xf32>
    %40 = vector.broadcast %38 : vector<1x8xf32> to vector<8x8xf32>
    %41 = arith.mulf %39, %40 : vector<8x8xf32>
    %42 = vector.extract_strided_slice %12 {offsets = [0, 8], sizes = [8, 8], strides = [1, 1]} : vector<8x32xf32> to vector<8x8xf32>
    %43 = vector.extract_strided_slice %12 {offsets = [0, 8], sizes = [8, 8], strides = [1, 1]} : vector<8x32xf32> to vector<8x8xf32>
    %44 = tpu.transpose %43, [1, 0] : vector<8x8xf32> -> vector<8x8xf32>
    %cst_29 = arith.constant dense<0.000000e+00> : vector<8x8xf32>
    %45 = tpu.matmul %42, %44, %cst_29 {dimension_numbers = #tpu.dot_dimension_numbers<[1], [0], [0], [1], [0, 0, 1, 1], [], []>} : vector<8x8xf32>, vector<8x8xf32>, vector<8x8xf32> -> vector<8x8xf32>
    %cst_30 = arith.constant 0.000000e+00 : f32
    %46 = vector.broadcast %cst_30 : f32 to vector<8x8xf32>
    %47 = arith.cmpf oeq, %5, %46 : vector<8x8xf32>
    %cst_31 = arith.constant 0xFF800000 : f32
    %48 = vector.broadcast %cst_31 : f32 to vector<8x8xf32>
    %49 = arith.select %47, %48, %45 : vector<8x8xi1>, vector<8x8xf32>
    %cst_32 = arith.constant 0.353553385 : f32
    %50 = vector.broadcast %cst_32 : f32 to vector<8x8xf32>
    %51 = arith.mulf %49, %50 : vector<8x8xf32>
    %cst_33 = arith.constant dense<0xFF800000> : vector<8xf32>
    %52 = vector.multi_reduction <maximumf>, %51, %cst_33 [1] : vector<8x8xf32> to vector<8xf32>
    %53 = vector.shape_cast %52 : vector<8xf32> to vector<8x1xf32>
    %54 = vector.broadcast %53 : vector<8x1xf32> to vector<8x8xf32>
    %55 = arith.subf %51, %54 : vector<8x8xf32>
    %56 = math.exp %55 : vector<8x8xf32>
    %cst_34 = arith.constant dense<0.000000e+00> : vector<8xf32>
    %57 = vector.multi_reduction <add>, %56, %cst_34 [1] : vector<8x8xf32> to vector<8xf32>
    %58 = vector.shape_cast %57 : vector<8xf32> to vector<8x1xf32>
    %59 = vector.broadcast %58 : vector<8x1xf32> to vector<8x8xf32>
    %60 = arith.divf %56, %59 : vector<8x8xf32>
    %cst_35 = arith.constant dense<0.000000e+00> : vector<8xf32>
    %61 = vector.multi_reduction <add>, %60, %cst_35 [1] : vector<8x8xf32> to vector<8xf32>
    %62 = vector.shape_cast %61 : vector<8xf32> to vector<8x1xf32>
    %63 = vector.extract_strided_slice %16 {offsets = [0, 8], sizes = [1, 8], strides = [1, 1]} : vector<1x32xf32> to vector<1x8xf32>
    %64 = vector.broadcast %62 : vector<8x1xf32> to vector<8x8xf32>
    %65 = vector.broadcast %63 : vector<1x8xf32> to vector<8x8xf32>
    %66 = arith.mulf %64, %65 : vector<8x8xf32>
    %67 = vector.extract_strided_slice %12 {offsets = [0, 16], sizes = [8, 8], strides = [1, 1]} : vector<8x32xf32> to vector<8x8xf32>
    %68 = vector.extract_strided_slice %12 {offsets = [0, 16], sizes = [8, 8], strides = [1, 1]} : vector<8x32xf32> to vector<8x8xf32>
    %69 = tpu.transpose %68, [1, 0] : vector<8x8xf32> -> vector<8x8xf32>
    %cst_36 = arith.constant dense<0.000000e+00> : vector<8x8xf32>
    %70 = tpu.matmul %67, %69, %cst_36 {dimension_numbers = #tpu.dot_dimension_numbers<[1], [0], [0], [1], [0, 0, 1, 1], [], []>} : vector<8x8xf32>, vector<8x8xf32>, vector<8x8xf32> -> vector<8x8xf32>
    %cst_37 = arith.constant 0.000000e+00 : f32
    %71 = vector.broadcast %cst_37 : f32 to vector<8x8xf32>
    %72 = arith.cmpf oeq, %5, %71 : vector<8x8xf32>
    %cst_38 = arith.constant 0xFF800000 : f32
    %73 = vector.broadcast %cst_38 : f32 to vector<8x8xf32>
    %74 = arith.select %72, %73, %70 : vector<8x8xi1>, vector<8x8xf32>
    %cst_39 = arith.constant 0.353553385 : f32
    %75 = vector.broadcast %cst_39 : f32 to vector<8x8xf32>
    %76 = arith.mulf %74, %75 : vector<8x8xf32>
    %cst_40 = arith.constant dense<0xFF800000> : vector<8xf32>
    %77 = vector.multi_reduction <maximumf>, %76, %cst_40 [1] : vector<8x8xf32> to vector<8xf32>
    %78 = vector.shape_cast %77 : vector<8xf32> to vector<8x1xf32>
    %79 = vector.broadcast %78 : vector<8x1xf32> to vector<8x8xf32>
    %80 = arith.subf %76, %79 : vector<8x8xf32>
    %81 = math.exp %80 : vector<8x8xf32>
    %cst_41 = arith.constant dense<0.000000e+00> : vector<8xf32>
    %82 = vector.multi_reduction <add>, %81, %cst_41 [1] : vector<8x8xf32> to vector<8xf32>
    %83 = vector.shape_cast %82 : vector<8xf32> to vector<8x1xf32>
    %84 = vector.broadcast %83 : vector<8x1xf32> to vector<8x8xf32>
    %85 = arith.divf %81, %84 : vector<8x8xf32>
    %cst_42 = arith.constant dense<0.000000e+00> : vector<8xf32>
    %86 = vector.multi_reduction <add>, %85, %cst_42 [1] : vector<8x8xf32> to vector<8xf32>
    %87 = vector.shape_cast %86 : vector<8xf32> to vector<8x1xf32>
    %88 = vector.extract_strided_slice %16 {offsets = [0, 16], sizes = [1, 8], strides = [1, 1]} : vector<1x32xf32> to vector<1x8xf32>
    %89 = vector.broadcast %87 : vector<8x1xf32> to vector<8x8xf32>
    %90 = vector.broadcast %88 : vector<1x8xf32> to vector<8x8xf32>
    %91 = arith.mulf %89, %90 : vector<8x8xf32>
    %92 = vector.extract_strided_slice %12 {offsets = [0, 24], sizes = [8, 8], strides = [1, 1]} : vector<8x32xf32> to vector<8x8xf32>
    %93 = vector.extract_strided_slice %12 {offsets = [0, 24], sizes = [8, 8], strides = [1, 1]} : vector<8x32xf32> to vector<8x8xf32>
    %94 = tpu.transpose %93, [1, 0] : vector<8x8xf32> -> vector<8x8xf32>
    %cst_43 = arith.constant dense<0.000000e+00> : vector<8x8xf32>
    %95 = tpu.matmul %92, %94, %cst_43 {dimension_numbers = #tpu.dot_dimension_numbers<[1], [0], [0], [1], [0, 0, 1, 1], [], []>} : vector<8x8xf32>, vector<8x8xf32>, vector<8x8xf32> -> vector<8x8xf32>
    %cst_44 = arith.constant 0.000000e+00 : f32
    %96 = vector.broadcast %cst_44 : f32 to vector<8x8xf32>
    %97 = arith.cmpf oeq, %5, %96 : vector<8x8xf32>
    %cst_45 = arith.constant 0xFF800000 : f32
    %98 = vector.broadcast %cst_45 : f32 to vector<8x8xf32>
    %99 = arith.select %97, %98, %95 : vector<8x8xi1>, vector<8x8xf32>
    %cst_46 = arith.constant 0.353553385 : f32
    %100 = vector.broadcast %cst_46 : f32 to vector<8x8xf32>
    %101 = arith.mulf %99, %100 : vector<8x8xf32>
    %cst_47 = arith.constant dense<0xFF800000> : vector<8xf32>
    %102 = vector.multi_reduction <maximumf>, %101, %cst_47 [1] : vector<8x8xf32> to vector<8xf32>
    %103 = vector.shape_cast %102 : vector<8xf32> to vector<8x1xf32>
    %104 = vector.broadcast %103 : vector<8x1xf32> to vector<8x8xf32>
    %105 = arith.subf %101, %104 : vector<8x8xf32>
    %106 = math.exp %105 : vector<8x8xf32>
    %cst_48 = arith.constant dense<0.000000e+00> : vector<8xf32>
    %107 = vector.multi_reduction <add>, %106, %cst_48 [1] : vector<8x8xf32> to vector<8xf32>
    %108 = vector.shape_cast %107 : vector<8xf32> to vector<8x1xf32>
    %109 = vector.broadcast %108 : vector<8x1xf32> to vector<8x8xf32>
    %110 = arith.divf %106, %109 : vector<8x8xf32>
    %cst_49 = arith.constant dense<0.000000e+00> : vector<8xf32>
    %111 = vector.multi_reduction <add>, %110, %cst_49 [1] : vector<8x8xf32> to vector<8xf32>
    %112 = vector.shape_cast %111 : vector<8xf32> to vector<8x1xf32>
    %113 = vector.extract_strided_slice %16 {offsets = [0, 24], sizes = [1, 8], strides = [1, 1]} : vector<1x32xf32> to vector<1x8xf32>
    %114 = vector.broadcast %112 : vector<8x1xf32> to vector<8x8xf32>
    %115 = vector.broadcast %113 : vector<1x8xf32> to vector<8x8xf32>
    %116 = arith.mulf %114, %115 : vector<8x8xf32>
    %117 = tpu.concatenate %41, %66, %91, %116 in 1 : vector<8x8xf32>, vector<8x8xf32>, vector<8x8xf32>, vector<8x8xf32> -> vector<8x32xf32>
    %cst_50 = arith.constant dense<0.000000e+00> : vector<8x32xf32>
    %118 = tpu.matmul %117, %13, %cst_50 {dimension_numbers = #tpu.dot_dimension_numbers<[1], [0], [0], [1], [0, 0, 1, 1], [], []>} : vector<8x32xf32>, vector<32x32xf32>, vector<8x32xf32> -> vector<8x32xf32>
    %119 = vector.broadcast %14 : vector<1x32xf32> to vector<8x32xf32>
    %120 = arith.addf %118, %119 : vector<8x32xf32>
    %c0_51 = arith.constant 0 : index
    %c0_52 = arith.constant 0 : index
    %121 = vector.load %arg9[%c0_51, %c0_52] : memref<1x32xf32, #tpu.memory_space<vmem>>, vector<1x32xf32>
    %c0_53 = arith.constant 0 : index
    %c0_54 = arith.constant 0 : index
    %122 = vector.load %arg10[%c0_53, %c0_54] : memref<1x32xf32, #tpu.memory_space<vmem>>, vector<1x32xf32>
    %123 = arith.addf %1, %120 : vector<8x32xf32>
    %cst_55 = arith.constant dense<0.000000e+00> : vector<8xf32>
    %124 = vector.multi_reduction <add>, %123, %cst_55 [1] : vector<8x32xf32> to vector<8xf32>
    %125 = vector.shape_cast %124 : vector<8xf32> to vector<8x1xf32>
    %cst_56 = arith.constant 3.200000e+01 : f32
    %126 = vector.broadcast %cst_56 : f32 to vector<8x1xf32>
    %127 = arith.divf %125, %126 : vector<8x1xf32>
    %128 = vector.broadcast %127 : vector<8x1xf32> to vector<8x32xf32>
    %129 = arith.subf %123, %128 : vector<8x32xf32>
    %130 = arith.mulf %129, %129 : vector<8x32xf32>
    %cst_57 = arith.constant dense<0.000000e+00> : vector<8xf32>
    %131 = vector.multi_reduction <add>, %130, %cst_57 [1] : vector<8x32xf32> to vector<8xf32>
    %132 = vector.shape_cast %131 : vector<8xf32> to vector<8x1xf32>
    %cst_58 = arith.constant 3.200000e+01 : f32
    %133 = vector.broadcast %cst_58 : f32 to vector<8x1xf32>
    %134 = arith.divf %132, %133 : vector<8x1xf32>
    %135 = vector.broadcast %127 : vector<8x1xf32> to vector<8x32xf32>
    %136 = arith.subf %123, %135 : vector<8x32xf32>
    %cst_59 = arith.constant 9.99999974E-6 : f32
    %137 = vector.broadcast %cst_59 : f32 to vector<8x1xf32>
    %138 = arith.addf %134, %137 : vector<8x1xf32>
    %139 = math.rsqrt %138 : vector<8x1xf32>
    %140 = vector.broadcast %139 : vector<8x1xf32> to vector<8x32xf32>
    %141 = arith.mulf %136, %140 : vector<8x32xf32>
    %142 = vector.broadcast %121 : vector<1x32xf32> to vector<8x32xf32>
    %143 = arith.mulf %141, %142 : vector<8x32xf32>
    %144 = vector.broadcast %122 : vector<1x32xf32> to vector<8x32xf32>
    %145 = arith.addf %143, %144 : vector<8x32xf32>
    %c0_60 = arith.constant 0 : index
    %c0_61 = arith.constant 0 : index
    %146 = vector.load %arg11[%c0_60, %c0_61] : memref<32x32xf32, #tpu.memory_space<vmem>>, vector<32x32xf32>
    %c0_62 = arith.constant 0 : index
    %c0_63 = arith.constant 0 : index
    %147 = vector.load %arg12[%c0_62, %c0_63] : memref<1x32xf32, #tpu.memory_space<vmem>>, vector<1x32xf32>
    %cst_64 = arith.constant dense<0.000000e+00> : vector<8x32xf32>
    %148 = tpu.matmul %145, %146, %cst_64 {dimension_numbers = #tpu.dot_dimension_numbers<[1], [0], [0], [1], [0, 0, 1, 1], [], []>} : vector<8x32xf32>, vector<32x32xf32>, vector<8x32xf32> -> vector<8x32xf32>
    %149 = vector.broadcast %147 : vector<1x32xf32> to vector<8x32xf32>
    %150 = arith.addf %148, %149 : vector<8x32xf32>
    %cst_65 = arith.constant dense<0.000000e+00> : vector<8x32xf32>
    %151 = tpu.matmul %3, %146, %cst_65 {dimension_numbers = #tpu.dot_dimension_numbers<[1], [0], [0], [1], [0, 0, 1, 1], [], []>} : vector<8x32xf32>, vector<32x32xf32>, vector<8x32xf32> -> vector<8x32xf32>
    %152 = vector.broadcast %147 : vector<1x32xf32> to vector<8x32xf32>
    %153 = arith.addf %151, %152 : vector<8x32xf32>
    %c0_66 = arith.constant 0 : index
    %c0_67 = arith.constant 0 : index
    %154 = vector.load %arg13[%c0_66, %c0_67] : memref<32x32xf32, #tpu.memory_space<vmem>>, vector<32x32xf32>
    %c0_68 = arith.constant 0 : index
    %c0_69 = arith.constant 0 : index
    %155 = vector.load %arg14[%c0_68, %c0_69] : memref<1x32xf32, #tpu.memory_space<vmem>>, vector<1x32xf32>
    %156 = vector.shape_cast %7 : vector<1x8xf32> to vector<1x8xf32>
    %157 = vector.broadcast %156 : vector<1x8xf32> to vector<8x8xf32>
    %cst_70 = arith.constant dense<0.000000e+00> : vector<32xf32>
    %158 = vector.multi_reduction <add>, %153, %cst_70 [0] : vector<8x32xf32> to vector<32xf32>
    %159 = vector.shape_cast %158 : vector<32xf32> to vector<1x32xf32>
    %160 = vector.extract_strided_slice %150 {offsets = [0, 0], sizes = [8, 8], strides = [1, 1]} : vector<8x32xf32> to vector<8x8xf32>
    %161 = vector.extract_strided_slice %153 {offsets = [0, 0], sizes = [8, 8], strides = [1, 1]} : vector<8x32xf32> to vector<8x8xf32>
    %162 = tpu.transpose %161, [1, 0] : vector<8x8xf32> -> vector<8x8xf32>
    %cst_71 = arith.constant dense<0.000000e+00> : vector<8x8xf32>
    %163 = tpu.matmul %160, %162, %cst_71 {dimension_numbers = #tpu.dot_dimension_numbers<[1], [0], [0], [1], [0, 0, 1, 1], [], []>} : vector<8x8xf32>, vector<8x8xf32>, vector<8x8xf32> -> vector<8x8xf32>
    %cst_72 = arith.constant 0.000000e+00 : f32
    %164 = vector.broadcast %cst_72 : f32 to vector<8x8xf32>
    %165 = arith.cmpf oeq, %157, %164 : vector<8x8xf32>
    %cst_73 = arith.constant 0xFF800000 : f32
    %166 = vector.broadcast %cst_73 : f32 to vector<8x8xf32>
    %167 = arith.select %165, %166, %163 : vector<8x8xi1>, vector<8x8xf32>
    %cst_74 = arith.constant 0.353553385 : f32
    %168 = vector.broadcast %cst_74 : f32 to vector<8x8xf32>
    %169 = arith.mulf %167, %168 : vector<8x8xf32>
    %cst_75 = arith.constant dense<0xFF800000> : vector<8xf32>
    %170 = vector.multi_reduction <maximumf>, %169, %cst_75 [1] : vector<8x8xf32> to vector<8xf32>
    %171 = vector.shape_cast %170 : vector<8xf32> to vector<8x1xf32>
    %172 = vector.broadcast %171 : vector<8x1xf32> to vector<8x8xf32>
    %173 = arith.subf %169, %172 : vector<8x8xf32>
    %174 = math.exp %173 : vector<8x8xf32>
    %cst_76 = arith.constant dense<0.000000e+00> : vector<8xf32>
    %175 = vector.multi_reduction <add>, %174, %cst_76 [1] : vector<8x8xf32> to vector<8xf32>
    %176 = vector.shape_cast %175 : vector<8xf32> to vector<8x1xf32>
    %177 = vector.broadcast %176 : vector<8x1xf32> to vector<8x8xf32>
    %178 = arith.divf %174, %177 : vector<8x8xf32>
    %cst_77 = arith.constant dense<0.000000e+00> : vector<8xf32>
    %179 = vector.multi_reduction <add>, %178, %cst_77 [1] : vector<8x8xf32> to vector<8xf32>
    %180 = vector.shape_cast %179 : vector<8xf32> to vector<8x1xf32>
    %181 = vector.extract_strided_slice %159 {offsets = [0, 0], sizes = [1, 8], strides = [1, 1]} : vector<1x32xf32> to vector<1x8xf32>
    %182 = vector.broadcast %180 : vector<8x1xf32> to vector<8x8xf32>
    %183 = vector.broadcast %181 : vector<1x8xf32> to vector<8x8xf32>
    %184 = arith.mulf %182, %183 : vector<8x8xf32>
    %185 = vector.extract_strided_slice %150 {offsets = [0, 8], sizes = [8, 8], strides = [1, 1]} : vector<8x32xf32> to vector<8x8xf32>
    %186 = vector.extract_strided_slice %153 {offsets = [0, 8], sizes = [8, 8], strides = [1, 1]} : vector<8x32xf32> to vector<8x8xf32>
    %187 = tpu.transpose %186, [1, 0] : vector<8x8xf32> -> vector<8x8xf32>
    %cst_78 = arith.constant dense<0.000000e+00> : vector<8x8xf32>
    %188 = tpu.matmul %185, %187, %cst_78 {dimension_numbers = #tpu.dot_dimension_numbers<[1], [0], [0], [1], [0, 0, 1, 1], [], []>} : vector<8x8xf32>, vector<8x8xf32>, vector<8x8xf32> -> vector<8x8xf32>
    %cst_79 = arith.constant 0.000000e+00 : f32
    %189 = vector.broadcast %cst_79 : f32 to vector<8x8xf32>
    %190 = arith.cmpf oeq, %157, %189 : vector<8x8xf32>
    %cst_80 = arith.constant 0xFF800000 : f32
    %191 = vector.broadcast %cst_80 : f32 to vector<8x8xf32>
    %192 = arith.select %190, %191, %188 : vector<8x8xi1>, vector<8x8xf32>
    %cst_81 = arith.constant 0.353553385 : f32
    %193 = vector.broadcast %cst_81 : f32 to vector<8x8xf32>
    %194 = arith.mulf %192, %193 : vector<8x8xf32>
    %cst_82 = arith.constant dense<0xFF800000> : vector<8xf32>
    %195 = vector.multi_reduction <maximumf>, %194, %cst_82 [1] : vector<8x8xf32> to vector<8xf32>
    %196 = vector.shape_cast %195 : vector<8xf32> to vector<8x1xf32>
    %197 = vector.broadcast %196 : vector<8x1xf32> to vector<8x8xf32>
    %198 = arith.subf %194, %197 : vector<8x8xf32>
    %199 = math.exp %198 : vector<8x8xf32>
    %cst_83 = arith.constant dense<0.000000e+00> : vector<8xf32>
    %200 = vector.multi_reduction <add>, %199, %cst_83 [1] : vector<8x8xf32> to vector<8xf32>
    %201 = vector.shape_cast %200 : vector<8xf32> to vector<8x1xf32>
    %202 = vector.broadcast %201 : vector<8x1xf32> to vector<8x8xf32>
    %203 = arith.divf %199, %202 : vector<8x8xf32>
    %cst_84 = arith.constant dense<0.000000e+00> : vector<8xf32>
    %204 = vector.multi_reduction <add>, %203, %cst_84 [1] : vector<8x8xf32> to vector<8xf32>
    %205 = vector.shape_cast %204 : vector<8xf32> to vector<8x1xf32>
    %206 = vector.extract_strided_slice %159 {offsets = [0, 8], sizes = [1, 8], strides = [1, 1]} : vector<1x32xf32> to vector<1x8xf32>
    %207 = vector.broadcast %205 : vector<8x1xf32> to vector<8x8xf32>
    %208 = vector.broadcast %206 : vector<1x8xf32> to vector<8x8xf32>
    %209 = arith.mulf %207, %208 : vector<8x8xf32>
    %210 = vector.extract_strided_slice %150 {offsets = [0, 16], sizes = [8, 8], strides = [1, 1]} : vector<8x32xf32> to vector<8x8xf32>
    %211 = vector.extract_strided_slice %153 {offsets = [0, 16], sizes = [8, 8], strides = [1, 1]} : vector<8x32xf32> to vector<8x8xf32>
    %212 = tpu.transpose %211, [1, 0] : vector<8x8xf32> -> vector<8x8xf32>
    %cst_85 = arith.constant dense<0.000000e+00> : vector<8x8xf32>
    %213 = tpu.matmul %210, %212, %cst_85 {dimension_numbers = #tpu.dot_dimension_numbers<[1], [0], [0], [1], [0, 0, 1, 1], [], []>} : vector<8x8xf32>, vector<8x8xf32>, vector<8x8xf32> -> vector<8x8xf32>
    %cst_86 = arith.constant 0.000000e+00 : f32
    %214 = vector.broadcast %cst_86 : f32 to vector<8x8xf32>
    %215 = arith.cmpf oeq, %157, %214 : vector<8x8xf32>
    %cst_87 = arith.constant 0xFF800000 : f32
    %216 = vector.broadcast %cst_87 : f32 to vector<8x8xf32>
    %217 = arith.select %215, %216, %213 : vector<8x8xi1>, vector<8x8xf32>
    %cst_88 = arith.constant 0.353553385 : f32
    %218 = vector.broadcast %cst_88 : f32 to vector<8x8xf32>
    %219 = arith.mulf %217, %218 : vector<8x8xf32>
    %cst_89 = arith.constant dense<0xFF800000> : vector<8xf32>
    %220 = vector.multi_reduction <maximumf>, %219, %cst_89 [1] : vector<8x8xf32> to vector<8xf32>
    %221 = vector.shape_cast %220 : vector<8xf32> to vector<8x1xf32>
    %222 = vector.broadcast %221 : vector<8x1xf32> to vector<8x8xf32>
    %223 = arith.subf %219, %222 : vector<8x8xf32>
    %224 = math.exp %223 : vector<8x8xf32>
    %cst_90 = arith.constant dense<0.000000e+00> : vector<8xf32>
    %225 = vector.multi_reduction <add>, %224, %cst_90 [1] : vector<8x8xf32> to vector<8xf32>
    %226 = vector.shape_cast %225 : vector<8xf32> to vector<8x1xf32>
    %227 = vector.broadcast %226 : vector<8x1xf32> to vector<8x8xf32>
    %228 = arith.divf %224, %227 : vector<8x8xf32>
    %cst_91 = arith.constant dense<0.000000e+00> : vector<8xf32>
    %229 = vector.multi_reduction <add>, %228, %cst_91 [1] : vector<8x8xf32> to vector<8xf32>
    %230 = vector.shape_cast %229 : vector<8xf32> to vector<8x1xf32>
    %231 = vector.extract_strided_slice %159 {offsets = [0, 16], sizes = [1, 8], strides = [1, 1]} : vector<1x32xf32> to vector<1x8xf32>
    %232 = vector.broadcast %230 : vector<8x1xf32> to vector<8x8xf32>
    %233 = vector.broadcast %231 : vector<1x8xf32> to vector<8x8xf32>
    %234 = arith.mulf %232, %233 : vector<8x8xf32>
    %235 = vector.extract_strided_slice %150 {offsets = [0, 24], sizes = [8, 8], strides = [1, 1]} : vector<8x32xf32> to vector<8x8xf32>
    %236 = vector.extract_strided_slice %153 {offsets = [0, 24], sizes = [8, 8], strides = [1, 1]} : vector<8x32xf32> to vector<8x8xf32>
    %237 = tpu.transpose %236, [1, 0] : vector<8x8xf32> -> vector<8x8xf32>
    %cst_92 = arith.constant dense<0.000000e+00> : vector<8x8xf32>
    %238 = tpu.matmul %235, %237, %cst_92 {dimension_numbers = #tpu.dot_dimension_numbers<[1], [0], [0], [1], [0, 0, 1, 1], [], []>} : vector<8x8xf32>, vector<8x8xf32>, vector<8x8xf32> -> vector<8x8xf32>
    %cst_93 = arith.constant 0.000000e+00 : f32
    %239 = vector.broadcast %cst_93 : f32 to vector<8x8xf32>
    %240 = arith.cmpf oeq, %157, %239 : vector<8x8xf32>
    %cst_94 = arith.constant 0xFF800000 : f32
    %241 = vector.broadcast %cst_94 : f32 to vector<8x8xf32>
    %242 = arith.select %240, %241, %238 : vector<8x8xi1>, vector<8x8xf32>
    %cst_95 = arith.constant 0.353553385 : f32
    %243 = vector.broadcast %cst_95 : f32 to vector<8x8xf32>
    %244 = arith.mulf %242, %243 : vector<8x8xf32>
    %cst_96 = arith.constant dense<0xFF800000> : vector<8xf32>
    %245 = vector.multi_reduction <maximumf>, %244, %cst_96 [1] : vector<8x8xf32> to vector<8xf32>
    %246 = vector.shape_cast %245 : vector<8xf32> to vector<8x1xf32>
    %247 = vector.broadcast %246 : vector<8x1xf32> to vector<8x8xf32>
    %248 = arith.subf %244, %247 : vector<8x8xf32>
    %249 = math.exp %248 : vector<8x8xf32>
    %cst_97 = arith.constant dense<0.000000e+00> : vector<8xf32>
    %250 = vector.multi_reduction <add>, %249, %cst_97 [1] : vector<8x8xf32> to vector<8xf32>
    %251 = vector.shape_cast %250 : vector<8xf32> to vector<8x1xf32>
    %252 = vector.broadcast %251 : vector<8x1xf32> to vector<8x8xf32>
    %253 = arith.divf %249, %252 : vector<8x8xf32>
    %cst_98 = arith.constant dense<0.000000e+00> : vector<8xf32>
    %254 = vector.multi_reduction <add>, %253, %cst_98 [1] : vector<8x8xf32> to vector<8xf32>
    %255 = vector.shape_cast %254 : vector<8xf32> to vector<8x1xf32>
    %256 = vector.extract_strided_slice %159 {offsets = [0, 24], sizes = [1, 8], strides = [1, 1]} : vector<1x32xf32> to vector<1x8xf32>
    %257 = vector.broadcast %255 : vector<8x1xf32> to vector<8x8xf32>
    %258 = vector.broadcast %256 : vector<1x8xf32> to vector<8x8xf32>
    %259 = arith.mulf %257, %258 : vector<8x8xf32>
    %260 = tpu.concatenate %184, %209, %234, %259 in 1 : vector<8x8xf32>, vector<8x8xf32>, vector<8x8xf32>, vector<8x8xf32> -> vector<8x32xf32>
    %cst_99 = arith.constant dense<0.000000e+00> : vector<8x32xf32>
    %261 = tpu.matmul %260, %154, %cst_99 {dimension_numbers = #tpu.dot_dimension_numbers<[1], [0], [0], [1], [0, 0, 1, 1], [], []>} : vector<8x32xf32>, vector<32x32xf32>, vector<8x32xf32> -> vector<8x32xf32>
    %262 = vector.broadcast %155 : vector<1x32xf32> to vector<8x32xf32>
    %263 = arith.addf %261, %262 : vector<8x32xf32>
    %c0_100 = arith.constant 0 : index
    %c0_101 = arith.constant 0 : index
    %264 = vector.load %arg15[%c0_100, %c0_101] : memref<1x32xf32, #tpu.memory_space<vmem>>, vector<1x32xf32>
    %c0_102 = arith.constant 0 : index
    %c0_103 = arith.constant 0 : index
    %265 = vector.load %arg16[%c0_102, %c0_103] : memref<1x32xf32, #tpu.memory_space<vmem>>, vector<1x32xf32>
    %266 = arith.addf %145, %263 : vector<8x32xf32>
    %cst_104 = arith.constant dense<0.000000e+00> : vector<8xf32>
    %267 = vector.multi_reduction <add>, %266, %cst_104 [1] : vector<8x32xf32> to vector<8xf32>
    %268 = vector.shape_cast %267 : vector<8xf32> to vector<8x1xf32>
    %cst_105 = arith.constant 3.200000e+01 : f32
    %269 = vector.broadcast %cst_105 : f32 to vector<8x1xf32>
    %270 = arith.divf %268, %269 : vector<8x1xf32>
    %271 = vector.broadcast %270 : vector<8x1xf32> to vector<8x32xf32>
    %272 = arith.subf %266, %271 : vector<8x32xf32>
    %273 = arith.mulf %272, %272 : vector<8x32xf32>
    %cst_106 = arith.constant dense<0.000000e+00> : vector<8xf32>
    %274 = vector.multi_reduction <add>, %273, %cst_106 [1] : vector<8x32xf32> to vector<8xf32>
    %275 = vector.shape_cast %274 : vector<8xf32> to vector<8x1xf32>
    %cst_107 = arith.constant 3.200000e+01 : f32
    %276 = vector.broadcast %cst_107 : f32 to vector<8x1xf32>
    %277 = arith.divf %275, %276 : vector<8x1xf32>
    %278 = vector.broadcast %270 : vector<8x1xf32> to vector<8x32xf32>
    %279 = arith.subf %266, %278 : vector<8x32xf32>
    %cst_108 = arith.constant 9.99999974E-6 : f32
    %280 = vector.broadcast %cst_108 : f32 to vector<8x1xf32>
    %281 = arith.addf %277, %280 : vector<8x1xf32>
    %282 = math.rsqrt %281 : vector<8x1xf32>
    %283 = vector.broadcast %282 : vector<8x1xf32> to vector<8x32xf32>
    %284 = arith.mulf %279, %283 : vector<8x32xf32>
    %285 = vector.broadcast %264 : vector<1x32xf32> to vector<8x32xf32>
    %286 = arith.mulf %284, %285 : vector<8x32xf32>
    %287 = vector.broadcast %265 : vector<1x32xf32> to vector<8x32xf32>
    %288 = arith.addf %286, %287 : vector<8x32xf32>
    %c0_109 = arith.constant 0 : index
    %c0_110 = arith.constant 0 : index
    %289 = vector.load %arg17[%c0_109, %c0_110] : memref<32x64xf32, #tpu.memory_space<vmem>>, vector<32x64xf32>
    %cst_111 = arith.constant dense<0.000000e+00> : vector<8x64xf32>
    %290 = tpu.matmul %288, %289, %cst_111 {dimension_numbers = #tpu.dot_dimension_numbers<[1], [0], [0], [1], [0, 0, 1, 1], [], []>} : vector<8x32xf32>, vector<32x64xf32>, vector<8x64xf32> -> vector<8x64xf32>
    %c0_112 = arith.constant 0 : index
    %c0_113 = arith.constant 0 : index
    %291 = vector.load %arg18[%c0_112, %c0_113] : memref<1x64xf32, #tpu.memory_space<vmem>>, vector<1x64xf32>
    %292 = vector.broadcast %291 : vector<1x64xf32> to vector<8x64xf32>
    %293 = arith.addf %290, %292 : vector<8x64xf32>
    %cst_114 = arith.constant 0.000000e+00 : f32
    %294 = vector.broadcast %cst_114 : f32 to vector<8x64xf32>
    %295 = arith.maximumf %293, %294 : vector<8x64xf32>
    %c0_115 = arith.constant 0 : index
    %c0_116 = arith.constant 0 : index
    %296 = vector.load %arg19[%c0_115, %c0_116] : memref<64x32xf32, #tpu.memory_space<vmem>>, vector<64x32xf32>
    %cst_117 = arith.constant dense<0.000000e+00> : vector<8x32xf32>
    %297 = tpu.matmul %295, %296, %cst_117 {dimension_numbers = #tpu.dot_dimension_numbers<[1], [0], [0], [1], [0, 0, 1, 1], [], []>} : vector<8x64xf32>, vector<64x32xf32>, vector<8x32xf32> -> vector<8x32xf32>
    %c0_118 = arith.constant 0 : index
    %c0_119 = arith.constant 0 : index
    %298 = vector.load %arg20[%c0_118, %c0_119] : memref<1x32xf32, #tpu.memory_space<vmem>>, vector<1x32xf32>
    %299 = vector.broadcast %298 : vector<1x32xf32> to vector<8x32xf32>
    %300 = arith.addf %297, %299 : vector<8x32xf32>
    %c0_120 = arith.constant 0 : index
    %c0_121 = arith.constant 0 : index
    %301 = vector.load %arg21[%c0_120, %c0_121] : memref<1x32xf32, #tpu.memory_space<vmem>>, vector<1x32xf32>
    %c0_122 = arith.constant 0 : index
    %c0_123 = arith.constant 0 : index
    %302 = vector.load %arg22[%c0_122, %c0_123] : memref<1x32xf32, #tpu.memory_space<vmem>>, vector<1x32xf32>
    %303 = arith.addf %288, %300 : vector<8x32xf32>
    %cst_124 = arith.constant dense<0.000000e+00> : vector<8xf32>
    %304 = vector.multi_reduction <add>, %303, %cst_124 [1] : vector<8x32xf32> to vector<8xf32>
    %305 = vector.shape_cast %304 : vector<8xf32> to vector<8x1xf32>
    %cst_125 = arith.constant 3.200000e+01 : f32
    %306 = vector.broadcast %cst_125 : f32 to vector<8x1xf32>
    %307 = arith.divf %305, %306 : vector<8x1xf32>
    %308 = vector.broadcast %307 : vector<8x1xf32> to vector<8x32xf32>
    %309 = arith.subf %303, %308 : vector<8x32xf32>
    %310 = arith.mulf %309, %309 : vector<8x32xf32>
    %cst_126 = arith.constant dense<0.000000e+00> : vector<8xf32>
    %311 = vector.multi_reduction <add>, %310, %cst_126 [1] : vector<8x32xf32> to vector<8xf32>
    %312 = vector.shape_cast %311 : vector<8xf32> to vector<8x1xf32>
    %cst_127 = arith.constant 3.200000e+01 : f32
    %313 = vector.broadcast %cst_127 : f32 to vector<8x1xf32>
    %314 = arith.divf %312, %313 : vector<8x1xf32>
    %315 = vector.broadcast %307 : vector<8x1xf32> to vector<8x32xf32>
    %316 = arith.subf %303, %315 : vector<8x32xf32>
    %cst_128 = arith.constant 9.99999974E-6 : f32
    %317 = vector.broadcast %cst_128 : f32 to vector<8x1xf32>
    %318 = arith.addf %314, %317 : vector<8x1xf32>
    %319 = math.rsqrt %318 : vector<8x1xf32>
    %320 = vector.broadcast %319 : vector<8x1xf32> to vector<8x32xf32>
    %321 = arith.mulf %316, %320 : vector<8x32xf32>
    %322 = vector.broadcast %301 : vector<1x32xf32> to vector<8x32xf32>
    %323 = arith.mulf %321, %322 : vector<8x32xf32>
    %324 = vector.broadcast %302 : vector<1x32xf32> to vector<8x32xf32>
    %325 = arith.addf %323, %324 : vector<8x32xf32>
    %c0_129 = arith.constant 0 : index
    %c0_130 = arith.constant 0 : index
    %c0_131 = arith.constant 0 : index
    %326 = vector.load %arg23[%c0_129, %c0_130, %c0_131] : memref<1x8x32xf32, #tpu.memory_space<vmem>>, vector<1x8x32xf32>
    %327 = vector.shape_cast %326 : vector<1x8x32xf32> to vector<8x32xf32>
    %328 = vector.shape_cast %325 : vector<8x32xf32> to vector<1x8x32xf32>
    tpu.vector_store %arg23[%c0_129, %c0_130, %c0_131], %328 {strides = array<i32>} : memref<1x8x32xf32, #tpu.memory_space<vmem>>, vector<1x8x32xf32>,
    return
  }
  func.func @transform_0(%arg0: i32) -> (i32, i32, i32) {
    %c0_i32 = arith.constant 0 : i32
    %c0_i32_0 = arith.constant 0 : i32
    %c0_i32_1 = arith.constant 0 : i32
    return %arg0, %c0_i32, %c0_i32_0 : i32, i32, i32
  }
  func.func @transform_1(%arg0: i32) -> (i32, i32, i32) {
    %c0_i32 = arith.constant 0 : i32
    %c0_i32_0 = arith.constant 0 : i32
    %c0_i32_1 = arith.constant 0 : i32
    return %arg0, %c0_i32, %c0_i32_0 : i32, i32, i32
  }
  func.func @transform_2(%arg0: i32) -> (i32, i32, i32, i32) {
    %c0_i32 = arith.constant 0 : i32
    %c0_i32_0 = arith.constant 0 : i32
    %c0_i32_1 = arith.constant 0 : i32
    %c0_i32_2 = arith.constant 0 : i32
    return %arg0, %c0_i32, %c0_i32_0, %c0_i32_1 : i32, i32, i32, i32
  }
  func.func @transform_3(%arg0: i32) -> (i32, i32, i32, i32) {
    %c0_i32 = arith.constant 0 : i32
    %c0_i32_0 = arith.constant 0 : i32
    %c0_i32_1 = arith.constant 0 : i32
    %c0_i32_2 = arith.constant 0 : i32
    return %arg0, %c0_i32, %c0_i32_0, %c0_i32_1 : i32, i32, i32, i32
  }
  func.func @transform_4(%arg0: i32) -> (i32, i32) {
    %c0_i32 = arith.constant 0 : i32
    %c0_i32_0 = arith.constant 0 : i32
    %c0_i32_1 = arith.constant 0 : i32
    return %c0_i32, %c0_i32_0 : i32, i32
  }
  func.func @transform_5(%arg0: i32) -> (i32, i32) {
    %c0_i32 = arith.constant 0 : i32
    %c0_i32_0 = arith.constant 0 : i32
    %c0_i32_1 = arith.constant 0 : i32
    return %c0_i32, %c0_i32_0 : i32, i32
  }
  func.func @transform_6(%arg0: i32) -> (i32, i32) {
    %c0_i32 = arith.constant 0 : i32
    %c0_i32_0 = arith.constant 0 : i32
    %c0_i32_1 = arith.constant 0 : i32
    return %c0_i32, %c0_i32_0 : i32, i32
  }
  func.func @transform_7(%arg0: i32) -> (i32, i32) {
    %c0_i32 = arith.constant 0 : i32
    %c0_i32_0 = arith.constant 0 : i32
    %c0_i32_1 = arith.constant 0 : i32
    return %c0_i32, %c0_i32_0 : i32, i32
  }
  func.func @transform_8(%arg0: i32) -> (i32, i32) {
    %c0_i32 = arith.constant 0 : i32
    %c0_i32_0 = arith.constant 0 : i32
    %c0_i32_1 = arith.constant 0 : i32
    return %c0_i32, %c0_i32_0 : i32, i32
  }
  func.func @transform_9(%arg0: i32) -> (i32, i32) {
    %c0_i32 = arith.constant 0 : i32
    %c0_i32_0 = arith.constant 0 : i32
    %c0_i32_1 = arith.constant 0 : i32
    return %c0_i32, %c0_i32_0 : i32, i32
  }
  func.func @transform_10(%arg0: i32) -> (i32, i32) {
    %c0_i32 = arith.constant 0 : i32
    %c0_i32_0 = arith.constant 0 : i32
    %c0_i32_1 = arith.constant 0 : i32
    return %c0_i32, %c0_i32_0 : i32, i32
  }
  func.func @transform_11(%arg0: i32) -> (i32, i32) {
    %c0_i32 = arith.constant 0 : i32
    %c0_i32_0 = arith.constant 0 : i32
    %c0_i32_1 = arith.constant 0 : i32
    return %c0_i32, %c0_i32_0 : i32, i32
  }
  func.func @transform_12(%arg0: i32) -> (i32, i32) {
    %c0_i32 = arith.constant 0 : i32
    %c0_i32_0 = arith.constant 0 : i32
    %c0_i32_1 = arith.constant 0 : i32
    return %c0_i32, %c0_i32_0 : i32, i32
  }
  func.func @transform_13(%arg0: i32) -> (i32, i32) {
    %c0_i32 = arith.constant 0 : i32
    %c0_i32_0 = arith.constant 0 : i32
    %c0_i32_1 = arith.constant 0 : i32
    return %c0_i32, %c0_i32_0 : i32, i32
  }
  func.func @transform_14(%arg0: i32) -> (i32, i32) {
    %c0_i32 = arith.constant 0 : i32
    %c0_i32_0 = arith.constant 0 : i32
    %c0_i32_1 = arith.constant 0 : i32
    return %c0_i32, %c0_i32_0 : i32, i32
  }
  func.func @transform_15(%arg0: i32) -> (i32, i32) {
    %c0_i32 = arith.constant 0 : i32
    %c0_i32_0 = arith.constant 0 : i32
    %c0_i32_1 = arith.constant 0 : i32
    return %c0_i32, %c0_i32_0 : i32, i32
  }
  func.func @transform_16(%arg0: i32) -> (i32, i32) {
    %c0_i32 = arith.constant 0 : i32
    %c0_i32_0 = arith.constant 0 : i32
    %c0_i32_1 = arith.constant 0 : i32
    return %c0_i32, %c0_i32_0 : i32, i32
  }
  func.func @transform_17(%arg0: i32) -> (i32, i32) {
    %c0_i32 = arith.constant 0 : i32
    %c0_i32_0 = arith.constant 0 : i32
    %c0_i32_1 = arith.constant 0 : i32
    return %c0_i32, %c0_i32_0 : i32, i32
  }
  func.func @transform_18(%arg0: i32) -> (i32, i32) {
    %c0_i32 = arith.constant 0 : i32
    %c0_i32_0 = arith.constant 0 : i32
    %c0_i32_1 = arith.constant 0 : i32
    return %c0_i32, %c0_i32_0 : i32, i32
  }
  func.func @transform_19(%arg0: i32) -> (i32, i32) {
    %c0_i32 = arith.constant 0 : i32
    %c0_i32_0 = arith.constant 0 : i32
    %c0_i32_1 = arith.constant 0 : i32
    return %c0_i32, %c0_i32_0 : i32, i32
  }
  func.func @transform_20(%arg0: i32) -> (i32, i32) {
    %c0_i32 = arith.constant 0 : i32
    %c0_i32_0 = arith.constant 0 : i32
    %c0_i32_1 = arith.constant 0 : i32
    return %c0_i32, %c0_i32_0 : i32, i32
  }
  func.func @transform_21(%arg0: i32) -> (i32, i32) {
    %c0_i32 = arith.constant 0 : i32
    %c0_i32_0 = arith.constant 0 : i32
    %c0_i32_1 = arith.constant 0 : i32
    return %c0_i32, %c0_i32_0 : i32, i32
  }
  func.func @transform_22(%arg0: i32) -> (i32, i32, i32) {
    %c0_i32 = arith.constant 0 : i32
    %c0_i32_0 = arith.constant 0 : i32
    %c0_i32_1 = arith.constant 0 : i32
    return %arg0, %c0_i32, %c0_i32_0 : i32, i32, i32
  }
}

module attributes {stable_mosaic.version = 11 : i64} {
  func.func @_linear_kernel(%arg0: i32, %arg1: memref<16x32xf32, #tpu.memory_space<vmem>>, %arg2: memref<32x128xf32, #tpu.memory_space<vmem>>, %arg3: memref<1x128xf32, #tpu.memory_space<vmem>>, %arg4: memref<16x128xf32, #tpu.memory_space<vmem>>) attributes {dimension_semantics = [#tpu.dimension_semantics<arbitrary>], iteration_bounds = array<i64: 1>, scalar_prefetch = 0 : i64, scratch_operands = 0 : i64, tpu.core_type = #tpu.core_type<tc>, window_params = [{pipeline_mode = #tpu.pipeline_mode<synchronous>, transform_indices = @transform_0, window_bounds = array<i64: 16, 32>}, {pipeline_mode = #tpu.pipeline_mode<synchronous>, transform_indices = @transform_1, window_bounds = array<i64: 32, 128>}, {pipeline_mode = #tpu.pipeline_mode<synchronous>, transform_indices = @transform_2, window_bounds = array<i64: 1, 128>}, {pipeline_mode = #tpu.pipeline_mode<synchronous>, transform_indices = @transform_3, window_bounds = array<i64: 16, 128>}]} {
    %c0 = arith.constant 0 : index
    %c0_0 = arith.constant 0 : index
    %0 = vector.load %arg1[%c0, %c0_0] : memref<16x32xf32, #tpu.memory_space<vmem>>, vector<16x32xf32>
    %c0_1 = arith.constant 0 : index
    %c0_2 = arith.constant 0 : index
    %1 = vector.load %arg2[%c0_1, %c0_2] : memref<32x128xf32, #tpu.memory_space<vmem>>, vector<32x128xf32>
    %cst = arith.constant dense<0.000000e+00> : vector<16x128xf32>
    %2 = tpu.matmul %0, %1, %cst {dimension_numbers = #tpu.dot_dimension_numbers<[1], [0], [0], [1], [0, 0, 1, 1], [], []>} : vector<16x32xf32>, vector<32x128xf32>, vector<16x128xf32> -> vector<16x128xf32>
    %c0_3 = arith.constant 0 : index
    %c0_4 = arith.constant 0 : index
    %3 = vector.load %arg3[%c0_3, %c0_4] : memref<1x128xf32, #tpu.memory_space<vmem>>, vector<1x128xf32>
    %4 = vector.broadcast %3 : vector<1x128xf32> to vector<16x128xf32>
    %5 = arith.addf %2, %4 : vector<16x128xf32>
    %c0_5 = arith.constant 0 : index
    %c0_6 = arith.constant 0 : index
    %6 = vector.load %arg4[%c0_5, %c0_6] : memref<16x128xf32, #tpu.memory_space<vmem>>, vector<16x128xf32>
    tpu.vector_store %arg4[%c0_5, %c0_6], %5 {strides = array<i32>} : memref<16x128xf32, #tpu.memory_space<vmem>>, vector<16x128xf32>,
    return
  }
  func.func @transform_0(%arg0: i32) -> (i32, i32) {
    %c0_i32 = arith.constant 0 : i32
    %c0_i32_0 = arith.constant 0 : i32
    %c0_i32_1 = arith.constant 0 : i32
    return %c0_i32, %c0_i32_0 : i32, i32
  }
  func.func @transform_1(%arg0: i32) -> (i32, i32) {
    %c0_i32 = arith.constant 0 : i32
    %c0_i32_0 = arith.constant 0 : i32
    %c0_i32_1 = arith.constant 0 : i32
    return %c0_i32, %c0_i32_0 : i32, i32
  }
  func.func @transform_2(%arg0: i32) -> (i32, i32) {
    %c0_i32 = arith.constant 0 : i32
    %c0_i32_0 = arith.constant 0 : i32
    %c0_i32_1 = arith.constant 0 : i32
    return %c0_i32, %c0_i32_0 : i32, i32
  }
  func.func @transform_3(%arg0: i32) -> (i32, i32) {
    %c0_i32 = arith.constant 0 : i32
    %c0_i32_0 = arith.constant 0 : i32
    %c0_i32_1 = arith.constant 0 : i32
    return %c0_i32, %c0_i32_0 : i32, i32
  }
}

</mosaic_0001>

<bundles_post_ra>
// kernel: decoder_forward.5
= control target key start
LH: loop header
LB: loop body
LE: loop exit
PB: predicated region body
PF: predicated region fallthrough
CT: control target
= control target key end

     0   :  { %vm24_vm0 = vcmask 261120   ;;  %s114_s1 = inlined_call_operand.vmem [shape: f32[32,128], index: 1, kind: input, shape index: {}]   ;;  %s115_s2 = inlined_call_operand.vmem [shape: f32[1,128], index: 2, kind: input, shape index: {}]   ;;  %s116_s0 = inlined_call_operand.vmem [shape: f32[16,32], index: 0, kind: input, shape index: {}]   ;;  %s117_s3 = inlined_call_operand.vmem [shape: f32[16,128], index: 3, kind: output, shape index: {}]  }
   0x1   :  { %v19_v0 = vld [vmem:[%s114_s1 + $0x18] sm:$0xff]  ;;  %v18_v1 = vld [vmem:[%s114_s1 + $0x10] sm:$0xff]  ;;  %v17_v2 = vld [vmem:[%s114_s1 + $0x8] sm:$0xff] }
   0x2   :  { %43 = vmatpush.msra.mxu0 %v19_v0  ;;  %62 = vmatpush.msra.mxu1 %v19_v0  ;;  %v16_v3 = vld [vmem:[%s114_s1] sm:$0xff]  ;;  %v15_v5 = vld [vmem:[%s116_s0 + $0x8] sm:$0xff] }
   0x3   :  { %v14_v4 = vld [vmem:[%s116_s0] sm:$0xff] }
   0x4   :  { %44 = vmatpush.msra.mxu0 %v18_v1  ;;  %63 = vmatpush.msra.mxu1 %v18_v1  ;;  %v66_v6 = vld [vmem:[%s115_s2] ss:$0 sm:$0xff] }
   0x6   :  { %45 = vmatpush.msra.mxu0 %v17_v2  ;;  %64 = vmatpush.msra.mxu1 %v17_v2 }
   0x8   :  { %46 = vmatpush.msra.mxu0 %v16_v3  ;;  %65 = vmatpush.msra.mxu1 %v16_v3 }
   0x9   :  { %60 = vmatmul.msk.f32.vlgmr.msra.gmra.mxu0 %vm24_vm0, %v14_v4  ;;  %61 = vmatmul.msk.f32.vlgmr.msra.gmra.mxu1 %vm24_vm0, %v15_v5 }
  0x86   :  { %v48_v7 = vpop.f32.mrf.mxu0  ;;  %v51_v8 = vpop.f32.mrf.mxu1 }
  0x87   :  { %v49_v9 = vadd.f32 %v66_v6, %v48_v7  ;;  %v52_v10 = vadd.f32 %v66_v6, %v51_v8 }
  0x89   :  { %54 = vst [vmem:[%s117_s3] sm:$0xff] %v49_v9 }
  0x8a   :  { %55 = vst [vmem:[%s117_s3 + $0x8] sm:$0xff] %v52_v10 }

// kernel: decoder_forward.3
= control target key start
LH: loop header
LB: loop body
LE: loop exit
PB: predicated region body
PF: predicated region fallthrough
CT: control target
= control target key end

     0   :  { %s2116_s0 = inlined_call_operand.vmem [shape: f32[2,8,32], index: 0, kind: input, shape index: {}]   ;;  %s2117_s1 = inlined_call_operand.vmem [shape: f32[2,8,32], index: 1, kind: input, shape index: {}]   ;;  %s2118_s2 = inlined_call_operand.vmem [shape: f32[2,1,8,8], index: 2, kind: input, shape index: {}]   ;;  %s2119_s3 = inlined_call_operand.vmem [shape: f32[2,1,1,8], index: 3, kind: input, shape index: {}]   ;;  %s2120_s4 = inlined_call_operand.vmem [shape: f32[32,32], index: 4, kind: input, shape index: {}]   ;;  %s2121_s5 = inlined_call_operand.vmem [shape: f32[1,32], index: 5, kind: input, shape index: {}]   ;;  %s2122_s6 = inlined_call_operand.vmem [shape: f32[32,32], index: 6, kind: input, shape index: {}]   ;;  %s2123_s7 = inlined_call_operand.vmem [shape: f32[1,32], index: 7, kind: input, shape index: {}]   ;;  %s2124_s8 = inlined_call_operand.vmem [shape: f32[1,32], index: 8, kind: input, shape index: {}]   ;;  %s2125_s9 = inlined_call_operand.vmem [shape: f32[1,32], index: 9, kind: input, shape index: {}]   ;;  %s2126_s10 = inlined_call_operand.vmem [shape: f32[32,32], index: 10, kind: input, shape index: {}]   ;;  %s2127_s11 = inlined_call_operand.vmem [shape: f32[1,32], index: 11, kind: input, shape index: {}]   ;;  %s2128_s12 = inlined_call_operand.vmem [shape: f32[32,32], index: 12, kind: input, shape index: {}]   ;;  %s2129_s13 = inlined_call_operand.vmem [shape: f32[1,32], index: 13, kind: input, shape index: {}]   ;;  %s2130_s14 = inlined_call_operand.vmem [shape: f32[1,32], index: 14, kind: input, shape index: {}]   ;;  %s2131_s15 = inlined_call_operand.vmem [shape: f32[1,32], index: 15, kind: input, shape index: {}]   ;;  %s2132_s16 = inlined_call_operand.vmem [shape: f32[32,64], index: 16, kind: input, shape index: {}]   ;;  %s2133_s17 = inlined_call_operand.vmem [shape: f32[1,64], index: 17, kind: input, shape index: {}]   ;;  %s2134_s18 = inlined_call_operand.vmem [shape: f32[64,32], index: 18, kind: input, shape index: {}]   ;;  %s2135_s19 = inlined_call_operand.vmem [shape: f32[1,32], index: 19, kind: input, shape index: {}]   ;;  %s2136_s20 = inlined_call_operand.vmem [shape: f32[1,32], index: 20, kind: input, shape index: {}]   ;;  %s2137_s21 = inlined_call_operand.vmem [shape: f32[1,32], index: 21, kind: input, shape index: {}]   ;;  %s2138_s22 = inlined_call_operand.vmem [shape: f32[2,8,32], index: 22, kind: output, shape index: {}]  }
   0x1   :  { %2147 = sst [smem:[#allocation2_spill]] %s2116_s0 }
   0x2   :  { %2148 = sst [smem:[#allocation3_spill]] %s2117_s1 }
   0x3   :  { %2149 = sst [smem:[#allocation4_spill]] %s2118_s2 }
   0x4   :  { %2150 = sst [smem:[#allocation5_spill]] %s2119_s3  ;;  %s1839_s3 = smov 0  }
   0x5   :  { %2151 = sst [smem:[#allocation6_spill]] %s2120_s4 }
   0x6   :  { %2152 = sst [smem:[#allocation7_spill]] %s2121_s5 }
   0x7   :  { %2153 = sst [smem:[#allocation8_spill]] %s2122_s6 }
   0x8 LB: > { %s1613_s28 = sadd.s32 4294967295, %s1718_s3   ;;  %p1617_p0 = scmp.ge.s32.totalorder %s1718_s3, 1  ;;  %s1718_s3 = sphi %s1839_s3, %s32_s3  }
   0x9   : > { %p637_p1 = scmp.lt.s32.totalorder %s1718_s3, 3 }
   0xb   : > { %p638_p2 = pnand %p1617_p0, %p637_p1 }
   0xc   : > { %s2154_s4 = sld [smem:[#allocation6_spill]] (!%p638_p2)  ;;  %p708_p3 = scmp.lt.s32.totalorder (!%p638_p2), %s1613_s28, 1 }
   0xd   : > { %641 = sbr.rel (%p638_p2) target bundleno = 2928 (0xb70), region = 108  ;;  %s2155_s27 = sld [smem:[#allocation2_spill]] (!%p638_p2) }
   0xe   : > { %s2156_s23 = sld [smem:[#allocation7_spill]] (!%p638_p2)  ;;  %s2141_s1 = smov (!%p638_p2), 104  }
   0xf   : > { %s2145_s5 = smov (!%p638_p2), 120   ;;  %s2143_s24 = smov (!%p638_p2), 112  }
  0x10   : > { %s2157_s2 = sld [smem:[#allocation4_spill]] (!%p638_p2)  ;;  %s2162_s30 = smov (!%p638_p2), 104  }
  0x11   : > { %s2158_s0 = sld [smem:[#allocation8_spill]] (!%p638_p2) }
  0x12   : > { %v734_v0 = vld [vmem:[%s2154_s4 + $0x18] sm:$0xff]  ;;  %v733_v1 = vld [vmem:[%s2154_s4 + $0x10] sm:$0xff]  ;;  %v732_v2 = vld [vmem:[%s2154_s4 + $0x8] sm:$0xff]  ;;  %s2165_s28 = smov (!%p708_p3, %s1613_s28), 1  ;;  %vm739_vm0 = vcmask 261120   ;;  %vm775_vm1 = vcmask 64512  }
  0x13   : > { %755 = vmatpush.msra.mxu0 %v734_v0  ;;  %v731_v3 = vld [vmem:[%s2154_s4] sm:$0xff]  ;;  %s1862_s25 = sshll.u32 %s2165_s28, 3 }
  0x14   : > { %s711_s29 = scalar_lea.vmem %s2155_s27, %s1862_s25  ;;  %v1659_v5 = vld [vmem:[%s2156_s23] ss:$0 sm:$0xff] }
  0x15   : > { %756 = vmatpush.msra.mxu0 %v733_v1  ;;  %v1868_v4 = vld [vmem:[%s711_s29] sm:$0xff]  ;;  %s2161_s29 = smov 112  }
  0x16   : > { %s719_s27 = scalar_lea.vmem %s2157_s2, %s1862_s25 }
  0x17   : > { %757 = vmatpush.msra.mxu0 %v732_v2  ;;  %v729_v11 = vld [vmem:[%s719_s27] sm:$0xff] }
  0x18   : > { %vm799_vm2 = vcmp.eq.f32.partialorder %v729_v11, 0.0 }
  0x19   : > { %758 = vmatpush.msra.mxu0 %v731_v3 }
  0x1a   : > { %1622 = vmatmul.msk.f32.vlgmr.msra.gmra.mxu0 %vm739_vm0, %v1868_v4 }
  0x97   : > { %v760_v6 = vpop.f32.mrf.mxu0 }
  0x98   : > { %v1875_v7 = vadd.f32 %v1659_v5, %v760_v6 }
  0x9a   : > { %938 = vrot.lane.b32.xlu1 %v1875_v7, %s2141_s1  ;;  %830 = vrot.lane.b32.xlu0 %v1875_v7, %s2145_s5  ;;  %s2160_s1 = smov 120  }
  0x9b   : > { %1623 = vmatpush.xpose.msk.msra.mxu1 %vm775_vm1, %v1875_v7 }
  0x9e   : > { %1624 = vmatmul.msk.f32.vlgmr.msra.gmra.mxu1 %vm775_vm1, %v1875_v7 }
  0xa2   : > { %884 = vrot.lane.b32.xlu0 %v1875_v7, %s2143_s24  ;;  %s2159_s24 = sld [smem:[#allocation3_spill]] }
  0xa8   : > { %s715_s5 = scalar_lea.vmem %s2159_s24, %s1862_s25 }
 0x10c   : > { %v939_v8 = vpop.permute.xlu1 %938  ;;  %v831_v9 = vpop.permute.xlu0 %830 }
 0x10d   : > { %1625 = vmatpush.xpose.msk.msra.mxu2 %vm775_vm1, %v831_v9  ;;  %1629 = vmatpush.xpose.msk.msrb.mxu1 %vm775_vm1, %v939_v8 }
 0x110   : > { %1626 = vmatmul.msk.f32.vlgmr.msra.gmra.mxu2 %vm775_vm1, %v831_v9  ;;  %1630 = vmatmul.msk.f32.vlgmr.msrb.gmra.mxu1 %vm775_vm1, %v939_v8 }
 0x114   : > { %v885_v10 = vpop.permute.xlu0 %884 }
 0x115   : > { %1627 = vmatpush.xpose.msk.msrb.mxu0 %vm775_vm1, %v885_v10 }
 0x118   : > { %1628 = vmatmul.msk.f32.vlgmr.msrb.gmra.mxu0 %vm775_vm1, %v885_v10 }
 0x11b   : > { %v796_v12 = vpop.f32.mrf.mxu1 }
 0x11c   : > { %v800_v13 = vsel %vm799_vm2, -inf, %v796_v12 }
 0x11d   : > { %v801_v14 = vmul.f32 0.35355338, %v800_v13 }
 0x11f   : > { %v802_v15 = vsel %vm775_vm1, %v801_v14, -inf }
 0x120   : > { %803 = vmax.xlane.f32.xlu1 %v802_v15 }
 0x18d   : > { %v959_v16 = vpop.f32.mrf.mxu1 }
 0x18e   : > { %v962_v17 = vsel %vm799_vm2, -inf, %v959_v16 }
 0x18f   : > { %v963_v18 = vmul.f32 0.35355338, %v962_v17 }
 0x191   : > { %v964_v19 = vsel %vm775_vm1, %v963_v18, -inf }
 0x192   : > { %965 = vmax.xlane.f32.xlu0 %v964_v19 }
 0x193   : > { %v804_v20 = vpop.xlane.xlu1 %803  ;;  %v851_v21 = vpop.f32.mrf.mxu2 }
 0x194   : > { %v854_v22 = vsel %vm799_vm2, -inf, %v851_v21  ;;  %v805_v25 = vsub.f32 %v801_v14, %v804_v20 }
 0x195   : > { %v855_v23 = vmul.f32 0.35355338, %v854_v22  ;;  %v905_v24 = vpop.f32.mrf.mxu0 }
 0x196   : > { %v908_v27 = vsel %vm799_vm2, -inf, %v905_v24  ;;  %v806_v28 = vmul.f32 1.442695, %v805_v25 }
 0x197   : > { %v856_v26 = vsel %vm775_vm1, %v855_v23, -inf  ;;  %v909_v29 = vmul.f32 0.35355338, %v908_v27 }
 0x198   : > { %857 = vmax.xlane.f32.xlu2 %v856_v26  ;;  %1672 = vpow2.f32 %v806_v28 }
 0x199   : > { %v910_v30 = vsel %vm775_vm1, %v909_v29, -inf }
 0x19e   : > { %v1673_v31 = vpop.eup %1672 }
 0x19f   : > { %v808_v32 = vsel %vm775_vm1, %v1673_v31, 0.0 }
 0x1a0   : > { %911 = vmax.xlane.f32.xlu2 %v910_v30 }
 0x1a8   : > { %809 = vadd.xlane.f32.xlu2 %v808_v32 }
 0x205   : > { %v966_v39 = vpop.xlane.xlu0 %965 }
 0x206   : > { %v967_v42 = vsub.f32 %v963_v18, %v966_v39  ;;  %v765_v39 = vld [vmem:[%s2158_s0 + $0x10] sm:$0xff] }
 0x208   : > { %v968_v45 = vmul.f32 1.442695, %v967_v42  ;;  %v768_v42 = vsel %vm739_vm0, %v1875_v7, 0.0 }
 0x20b   : > { %v858_v33 = vpop.xlane.xlu2 %857 }
 0x20c   : > { %v859_v36 = vsub.f32 %v855_v23, %v858_v33 }
 0x20e   : > { %v860_v38 = vmul.f32 1.442695, %v859_v36 }
 0x213   : > { %v912_v34 = vpop.xlane.xlu2 %911 }
 0x214   : > { %v913_v35 = vsub.f32 %v909_v29, %v912_v34 }
 0x216   : > { %v914_v37 = vmul.f32 1.442695, %v913_v35 }
 0x218   : > { %1674 = vpow2.f32 %v914_v37 }
 0x21b   : > { %v810_v40 = vpop.xlane.xlu2 %809 }
 0x21c   : > { %1676 = vrcp.f32 %v810_v40  ;;  %v822_v52 = vand.u32 2147483648, %v810_v40  ;;  %vm816_vm4 = vweird.f32 %v810_v40  ;;  %v820_v53 = vand.u32 2147483647, %v810_v40 }
 0x21d   : > { %1678 = vpow2.f32 %v860_v38  ;;  %v766_v38 = vld [vmem:[%s2158_s0 + $0x18] sm:$0xff] }
 0x21e   : > { %v1675_v41 = vpop.eup %1674  ;;  %1680 = vpow2.f32 %v968_v45  ;;  %v823_v56 = vor.u32 1.1754944e-38, %v822_v52  ;;  %vm821_vm6 = vcmp.eq.f32.partialorder %v820_v53, 8.507059e+37  ;;  %1015 = vmatpush.msrb.mxu2 %v766_v38 }
 0x21f   : > { %v916_v43 = vsel %vm775_vm1, %v1675_v41, 0.0 }
 0x220   : > { %917 = vadd.xlane.f32.xlu2 %v916_v43  ;;  %1016 = vmatpush.msrb.mxu2 %v765_v39  ;;  %v769_v43 = vrot.slane %v768_v42, 4 }
 0x222   : > { %v1677_v44 = vpop.eup %1676 }
 0x223   : > { %v812_v46 = vmul.f32 %v1677_v44, %v810_v40  ;;  %v1679_v47 = vpop.eup %1678  ;;  %vm817_vm3 = vweird.f32 %v1677_v44  ;;  %v764_v40 = vld [vmem:[%s2158_s0 + $0x8] sm:$0xff] }
 0x224   : > { %v862_v50 = vsel %vm775_vm1, %v1679_v47, 0.0  ;;  %v1908_v54 = vpop.eup %1680  ;;  %vm818_vm5 = vmor %vm816_vm4, %vm817_vm3  ;;  %1017 = vmatpush.msrb.mxu2 %v764_v40 }
 0x225   : > { %v813_v48 = vsub.f32 1.0, %v812_v46  ;;  %v970_v57 = vsel %vm775_vm1, %v1908_v54, 0.0 }
 0x227   : > { %v814_v49 = vmul.f32 %v1677_v44, %v813_v48 }
 0x228   : > { %863 = vadd.xlane.f32.xlu2 %v862_v50 }
 0x229   : > { %v815_v51 = vadd.f32 %v1677_v44, %v814_v49 }
 0x22b   : > { %v819_v55 = vsel %vm818_vm5, %v1677_v44, %v815_v51  ;;  %v770_v44 = vadd.f32 %v769_v43, %v768_v42  ;;  %vm993_vm5 = vcmask 130048  }
 0x22c   : > { %v824_v58 = vsel %vm821_vm6, %v823_v56, %v819_v55  ;;  %vm995_vm6 = vcmask 195584  }
 0x22d   : > { %v825_v59 = vmul.f32 %v1673_v31, %v824_v58  ;;  %v771_v45 = vrot.slane %v770_v44, 2 }
 0x22f   : > { %v826_v60 = vsel %vm775_vm1, %v825_v59, 0.0  ;;  %v772_v46 = vadd.f32 %v771_v45, %v770_v44  ;;  %v1660_v59 = vld [vmem:[%s2123_s7] ss:$0 sm:$0xff] }
 0x230   : > { %971 = vadd.xlane.f32.xlu2 %v970_v57 }
 0x231   : > { %v773_v48 = vrot.slane %v772_v46, 1 }
 0x233   : > { %v774_v50 = vadd.f32 %v773_v48, %v772_v46 }
 0x238   : > { %827 = vadd.xlane.f32.xlu2 %v826_v60 }
 0x293   : > { %v918_v61 = vpop.xlane.xlu2 %917 }
 0x294   : > { %1682 = vrcp.f32 %v918_v61  ;;  %v930_v2 = vand.u32 2147483648, %v918_v61  ;;  %v928_v5 = vand.u32 2147483647, %v918_v61  ;;  %vm924_vm8 = vweird.f32 %v918_v61 }
 0x296   : > { %v931_v9 = vor.u32 1.1754944e-38, %v930_v2  ;;  %vm929_vm10 = vcmp.eq.f32.partialorder %v928_v5, 8.507059e+37 }
 0x29a   : > { %v1683_v62 = vpop.eup %1682 }
 0x29b   : > { %v920_v63 = vmul.f32 %v1683_v62, %v918_v61  ;;  %v864_v0 = vpop.xlane.xlu2 %863  ;;  %vm925_vm7 = vweird.f32 %v1683_v62 }
 0x29c   : > { %1684 = vrcp.f32 %v864_v0  ;;  %vm926_vm9 = vmor %vm924_vm8, %vm925_vm7  ;;  %v876_v16 = vand.u32 2147483648, %v864_v0  ;;  %v874_v19 = vand.u32 2147483647, %v864_v0  ;;  %vm870_vm12 = vweird.f32 %v864_v0 }
 0x29d   : > { %v921_v1 = vsub.f32 1.0, %v920_v63 }
 0x29e   : > { %v877_v22 = vor.u32 1.1754944e-38, %v876_v16  ;;  %vm875_vm14 = vcmp.eq.f32.partialorder %v874_v19, 8.507059e+37  ;;  %v1063_v16 = vld [vmem:[%s2126_s10] sm:$0xff] }
 0x29f   : > { %v922_v3 = vmul.f32 %v1683_v62, %v921_v1 }
 0x2a1   : > { %v923_v6 = vadd.f32 %v1683_v62, %v922_v3 }
 0x2a2   : > { %v1685_v8 = vpop.eup %1684 }
 0x2a3   : > { %v866_v10 = vmul.f32 %v1685_v8, %v864_v0  ;;  %v972_v11 = vpop.xlane.xlu2 %971  ;;  %v927_v12 = vsel %vm926_vm9, %v1683_v62, %v923_v6  ;;  %vm871_vm11 = vweird.f32 %v1685_v8  ;;  %v1723_v0 = vmov 32.0  }
 0x2a4   : > { %1686 = vrcp.f32 %v972_v11  ;;  %v932_v13 = vsel %vm929_vm10, %v931_v9, %v927_v12  ;;  %vm872_vm13 = vmor %vm870_vm12, %vm871_vm11  ;;  %v984_v28 = vand.u32 2147483648, %v972_v11  ;;  %v982_v31 = vand.u32 2147483647, %v972_v11 }
 0x2a5   : > { %v867_v14 = vsub.f32 1.0, %v866_v10  ;;  %v933_v15 = vmul.f32 %v1675_v41, %v932_v13  ;;  %vm978_vm2 = vweird.f32 %v972_v11  ;;  %v763_v41 = vld [vmem:[%s2158_s0] sm:$0xff]  ;;  %1688 = vrcp.f32 %v1723_v0  ;;  %v1066_v13 = vld [vmem:[%s2126_s10 + $0x18] sm:$0xff] }
 0x2a6   : > { %v985_v33 = vor.u32 1.1754944e-38, %v984_v28  ;;  %vm983_vm4 = vcmp.eq.f32.partialorder %v982_v31, 8.507059e+37  ;;  %1018 = vmatpush.msrb.mxu2 %v763_v41  ;;  %1109 = vmatpush.msra.mxu0 %v1066_v13 }
 0x2a7   : > { %v868_v17 = vmul.f32 %v1685_v8, %v867_v14  ;;  %v934_v18 = vsel %vm775_vm1, %v933_v15, 0.0  ;;  %1086 = vmatpush.msra.mxu3 %v1066_v13  ;;  %v1065_v14 = vld [vmem:[%s2126_s10 + $0x10] sm:$0xff]  ;;  %v1064_v15 = vld [vmem:[%s2126_s10 + $0x8] sm:$0xff] }
 0x2a8   : > { %935 = vadd.xlane.f32.xlu2 %v934_v18  ;;  %1110 = vmatpush.msra.mxu0 %v1065_v14 }
 0x2a9   : > { %v869_v20 = vadd.f32 %v1685_v8, %v868_v17  ;;  %1087 = vmatpush.msra.mxu3 %v1065_v14  ;;  %v728_v17 = vld [vmem:[%s715_s5] sm:$0xff]  ;;  %s2163_s5 = sld [smem:[#allocation5_spill]] }
 0x2aa   : > { %v1687_v21 = vpop.eup %1686  ;;  %1111 = vmatpush.msra.mxu0 %v1064_v15 }
 0x2ab   : > { %v974_v23 = vmul.f32 %v1687_v21, %v972_v11  ;;  %v873_v24 = vsel %vm872_vm13, %v1685_v8, %v869_v20  ;;  %vm979_vm15 = vweird.f32 %v1687_v21  ;;  %v1689_v1 = vpop.eup %1688  ;;  %1088 = vmatpush.msra.mxu3 %v1064_v15 }
 0x2ac   : > { %v878_v25 = vsel %vm875_vm14, %v877_v22, %v873_v24  ;;  %vm980_vm3 = vmor %vm978_vm2, %vm979_vm15  ;;  %v1030_v2 = vmul.f32 32.0, %v1689_v1  ;;  %vm1034_vm7 = vweird.f32 %v1689_v1  ;;  %1112 = vmatpush.msra.mxu0 %v1063_v16 }
 0x2ad   : > { %v975_v26 = vsub.f32 1.0, %v974_v23  ;;  %v879_v27 = vmul.f32 %v1679_v47, %v878_v25  ;;  %v828_v47 = vpop.xlane.xlu2 %827  ;;  %1089 = vmatpush.msra.mxu3 %v1063_v16  ;;  %1633 = vmatmul.msk.f32.vlgmr.msra.gmra.mxu0 %vm739_vm0, %v728_v17 }
 0x2ae   : > { %v829_v52 = vmul.f32 %v828_v47, %v774_v50  ;;  %v1031_v3 = vsub.f32 1.0, %v1030_v2 }
 0x2af   : > { %v976_v29 = vmul.f32 %v1687_v21, %v975_v26  ;;  %v880_v30 = vsel %vm775_vm1, %v879_v27, 0.0  ;;  %v1661_v27 = vld [vmem:[%s2124_s8] ss:$0 sm:$0xff]  ;;  %s722_s6 = scalar_lea.vmem %s2163_s5, %s2165_s28 }
 0x2b0   : > { %881 = vadd.xlane.f32.xlu1 %v880_v30  ;;  %v1032_v5 = vmul.f32 %v1689_v1, %v1031_v3  ;;  %v1662_v30 = vld [vmem:[%s2125_s9] ss:$0 sm:$0xff] }
 0x2b1   : > { %v977_v32 = vadd.f32 %v1687_v21, %v976_v29  ;;  %v1664_v43 = vld [vmem:[%s722_s6] ss:$0 sm:$0xff] }
 0x2b2   : > { %v1033_v6 = vadd.f32 %v1689_v1, %v1032_v5  ;;  %vm1158_vm11 = vcmp.eq.f32.partialorder %v1664_v43, 0.0 }
 0x2b3   : > { %v981_v34 = vsel %vm980_vm3, %v1687_v21, %v977_v32 }
 0x2b4   : > { %v986_v35 = vsel %vm983_vm4, %v985_v33, %v981_v34  ;;  %v1940_v8 = vsel %vm1034_vm7, %v1689_v1, %v1033_v6  ;;  %v1663_v33 = vld [vmem:[%s2127_s11] ss:$0 sm:$0xff] }
 0x2b5   : > { %v987_v36 = vmul.f32 %v1908_v54, %v986_v35 }
 0x2b7   : > { %v988_v37 = vsel %vm775_vm1, %v987_v36, 0.0 }
 0x2b8   : > { %989 = vadd.xlane.f32.xlu0 %v988_v37 }
 0x31b   : > { %v936_v53 = vpop.xlane.xlu2 %935 }
 0x31c   : > { %v937_v55 = vmul.f32 %v936_v53, %v774_v50 }
 0x323   : > { %v882_v49 = vpop.xlane.xlu1 %881 }
 0x324   : > { %v883_v51 = vmul.f32 %v882_v49, %v774_v50 }
 0x326   : > { %v992_v54 = vsel %vm775_vm1, %v829_v52, %v883_v51 }
 0x327   : > { %v994_v7 = vsel %vm993_vm5, %v992_v54, %v937_v55 }
 0x32a   : > { %v1114_v34 = vpop.f32.mrf.mxu0 }
 0x32b   : > { %v990_v56 = vpop.xlane.xlu0 %989  ;;  %v1975_v35 = vadd.f32 %v1663_v33, %v1114_v34 }
 0x32c   : > { %v991_v57 = vmul.f32 %v990_v56, %v774_v50 }
 0x32d   : > { %1191 = vrot.lane.b32.xlu0 %v1975_v35, %s2160_s1  ;;  %1634 = vmatpush.xpose.msk.msra.mxu1 %vm775_vm1, %v1975_v35 }
 0x32e   : > { %v996_v58 = vsel %vm995_vm6, %v994_v7, %v991_v57 }
 0x32f   : > { %1631 = vmatmul.msk.f32.vlgmr.msrb.gmra.mxu2 %vm739_vm0, %v996_v58 }
 0x39f   : > { %v1192_v38 = vpop.permute.xlu0 %1191 }
 0x3a0   : > { %1636 = vmatpush.xpose.msk.msra.mxu2 %vm775_vm1, %v1192_v38 }
 0x3b2   : > { %v1020_v60 = vpop.f32.mrf.mxu2 }
 0x3b3   : > { %v1021_v61 = vadd.f32 %v1660_v59, %v1020_v60 }
 0x3b5   : > { %v1025_v62 = vadd.f32 %v1021_v61, %v1868_v4 }
 0x3b7   : > { %v1026_v63 = vsel %vm739_vm0, %v1025_v62, 0.0 }
 0x3b8   : > { %1027 = vadd.xlane.f32.xlu1 %v1026_v63 }
 0x3d1   : > { %1249 = vrot.lane.b32.xlu1 %v1975_v35, %s2161_s29 }
 0x3d9   : > { %1307 = vrot.lane.b32.xlu1 %v1975_v35, %s2162_s30 }
 0x42b   : > { %v1028_v9 = vpop.xlane.xlu1 %1027 }
 0x42c   : > { %v1036_v10 = vmul.f32 %v1940_v8, %v1028_v9 }
 0x42e   : > { %v1037_v11 = vsub.f32 %v1025_v62, %v1036_v10 }
 0x430   : > { %v1038_v12 = vmul.f32 %v1037_v11, %v1037_v11 }
 0x432   : > { %v1039_v4 = vsel %vm739_vm0, %v1038_v12, 0.0 }
 0x433   : > { %1040 = vadd.xlane.f32.xlu2 %v1039_v4 }
 0x443   : > { %v1250_v39 = vpop.permute.xlu1 %1249 }
 0x444   : > { %1638 = vmatpush.xpose.msk.msrb.mxu3 %vm775_vm1, %v1250_v39 }
 0x44b   : > { %v1308_v40 = vpop.permute.xlu1 %1307 }
 0x44c   : > { %1640 = vmatpush.xpose.msk.msrb.mxu0 %vm775_vm1, %v1308_v40 }
 0x4a6   : > { %v1041_v18 = vpop.xlane.xlu2 %1040 }
 0x4a7   : > { %v1042_v19 = vmul.f32 %v1041_v18, %v1940_v8 }
 0x4a9   : > { %v1043_v20 = vadd.f32 1e-05, %v1042_v19 }
 0x4ab   : > { %1690 = vrsqrt.f32 %v1043_v20  ;;  %vm1050_vm9 = vweird.f32 %v1043_v20 }
 0x4b1   : > { %v1691_v21 = vpop.eup %1690 }
 0x4b2   : > { %v1045_v22 = vmul.f32 %v1691_v21, %v1043_v20  ;;  %vm1051_vm8 = vweird.f32 %v1691_v21 }
 0x4b3   : > { %vm1052_vm10 = vmor %vm1050_vm9, %vm1051_vm8 }
 0x4b4   : > { %v1046_v23 = vmul.f32 %v1691_v21, %v1045_v22 }
 0x4b6   : > { %v1047_v24 = vmul.f32 0.5, %v1046_v23 }
 0x4b8   : > { %v1048_v25 = vsub.f32 1.5, %v1047_v24 }
 0x4ba   : > { %v1049_v26 = vmul.f32 %v1691_v21, %v1048_v25 }
 0x4bc   : > { %v1053_v28 = vsel %vm1052_vm10, %v1691_v21, %v1049_v26 }
 0x4bd   : > { %v1054_v29 = vmul.f32 %v1053_v28, %v1037_v11 }
 0x4bf   : > { %v1058_v31 = vmul.f32 %v1661_v27, %v1054_v29 }
 0x4c1   : > { %v1968_v32 = vadd.f32 %v1662_v30, %v1058_v31 }
 0x4c3   : > { %1632 = vmatmul.msk.f32.vlgmr.msra.gmra.mxu3 %vm739_vm0, %v1968_v32 }
 0x546   : > { %v1091_v36 = vpop.f32.mrf.mxu3 }
 0x547   : > { %v1092_v37 = vadd.f32 %v1663_v33, %v1091_v36 }
 0x549   : > { %1247 = vrot.lane.b32.xlu0 %v1092_v37, %s2161_s29  ;;  %1189 = vrot.lane.b32.xlu2 %v1092_v37, %s2160_s1  ;;  %s726_s1 = scalar_lea.vmem %s2138_s22, %s1862_s25 }
 0x54a   : > { %1635 = vmatmul.msk.f32.vlgmr.msra.gmra.mxu1 %vm775_vm1, %v1092_v37 }
 0x551   : > { %1305 = vrot.lane.b32.xlu0 %v1092_v37, %s2162_s30 }
 0x5a3   : > { %v1190_v41 = vpop.permute.xlu2 %1189 }
 0x5a4   : > { %1637 = vmatmul.msk.f32.vlgmr.msra.gmra.mxu2 %vm775_vm1, %v1190_v41 }
 0x5bb   : > { %v1248_v42 = vpop.permute.xlu0 %1247 }
 0x5bc   : > { %1639 = vmatmul.msk.f32.vlgmr.msrb.gmra.mxu3 %vm775_vm1, %v1248_v42 }
 0x5c3   : > { %v1306_v44 = vpop.permute.xlu0 %1305 }
 0x5c4   : > { %1641 = vmatmul.msk.f32.vlgmr.msrb.gmra.mxu0 %vm775_vm1, %v1306_v44 }
 0x5c7   : > { %v1155_v45 = vpop.f32.mrf.mxu1 }
 0x5c8   : > { %v1159_v46 = vsel %vm1158_vm11, -inf, %v1155_v45 }
 0x5c9   : > { %v1160_v47 = vmul.f32 0.35355338, %v1159_v46 }
 0x5cb   : > { %v1161_v48 = vsel %vm775_vm1, %v1160_v47, -inf }
 0x5cc   : > { %1162 = vmax.xlane.f32.xlu2 %v1161_v48 }
 0x627   : > { %v1214_v49 = vpop.f32.mrf.mxu2 }
 0x628   : > { %v1217_v50 = vsel %vm1158_vm11, -inf, %v1214_v49 }
 0x629   : > { %v1218_v51 = vmul.f32 0.35355338, %v1217_v50 }
 0x62b   : > { %v1219_v52 = vsel %vm775_vm1, %v1218_v51, -inf }
 0x62c   : > { %1220 = vmax.xlane.f32.xlu1 %v1219_v52 }
 0x63f   : > { %v1163_v53 = vpop.xlane.xlu2 %1162  ;;  %v1272_v54 = vpop.f32.mrf.mxu3 }
 0x640   : > { %v1164_v55 = vsub.f32 %v1160_v47, %v1163_v53  ;;  %v1275_v56 = vsel %vm1158_vm11, -inf, %v1272_v54 }
 0x641   : > { %v1276_v57 = vmul.f32 0.35355338, %v1275_v56  ;;  %v1330_v7 = vpop.f32.mrf.mxu0 }
 0x642   : > { %v1165_v58 = vmul.f32 1.442695, %v1164_v55  ;;  %v1333_v59 = vsel %vm1158_vm11, -inf, %v1330_v7 }
 0x643   : > { %v1334_v60 = vmul.f32 0.35355338, %v1333_v59  ;;  %v1277_v61 = vsel %vm775_vm1, %v1276_v57, -inf }
 0x644   : > { %1692 = vpow2.f32 %v1165_v58  ;;  %1278 = vmax.xlane.f32.xlu0 %v1277_v61 }
 0x645   : > { %v1335_v62 = vsel %vm775_vm1, %v1334_v60, -inf }
 0x646   : > { %1336 = vmax.xlane.f32.xlu2 %v1335_v62 }
 0x64a   : > { %v1693_v63 = vpop.eup %1692 }
 0x64b   : > { %v1167_v0 = vsel %vm775_vm1, %v1693_v63, 0.0 }
 0x64c   : > { %1168 = vadd.xlane.f32.xlu1 %v1167_v0 }
 0x69f   : > { %v1221_v1 = vpop.xlane.xlu1 %1220 }
 0x6a0   : > { %v1222_v2 = vsub.f32 %v1218_v51, %v1221_v1 }
 0x6a2   : > { %v1223_v3 = vmul.f32 1.442695, %v1222_v2 }
 0x6a4   : > { %1694 = vpow2.f32 %v1223_v3 }
 0x6aa   : > { %v1695_v5 = vpop.eup %1694 }
 0x6ab   : > { %v1225_v6 = vsel %vm775_vm1, %v1695_v5, 0.0 }
 0x6ac   : > { %1226 = vadd.xlane.f32.xlu0 %v1225_v6 }
 0x6b7   : > { %v1279_v9 = vpop.xlane.xlu0 %1278 }
 0x6b8   : > { %v1280_v10 = vsub.f32 %v1276_v57, %v1279_v9 }
 0x6b9   : > { %v1337_v11 = vpop.xlane.xlu2 %1336 }
 0x6ba   : > { %v1281_v12 = vmul.f32 1.442695, %v1280_v10  ;;  %v1338_v4 = vsub.f32 %v1334_v60, %v1337_v11  ;;  %v1120_v10 = vld [vmem:[%s2128_s12 + $0x18] sm:$0xff]  ;;  %v1119_v11 = vld [vmem:[%s2128_s12 + $0x10] sm:$0xff] }
 0x6bb   : > { %1384 = vmatpush.msrb.mxu1 %v1120_v10  ;;  %v1669_v10 = vld [vmem:[%s2135_s19] ss:$0 sm:$0xff] }
 0x6bc   : > { %1696 = vpow2.f32 %v1281_v12  ;;  %v1339_v13 = vmul.f32 1.442695, %v1338_v4  ;;  %v1118_v12 = vld [vmem:[%s2128_s12 + $0x8] sm:$0xff]  ;;  %v1125_v4 = vsel %vm739_vm0, %v1975_v35, 0.0 }
 0x6bd   : > { %1385 = vmatpush.msrb.mxu1 %v1119_v11 }
 0x6be   : > { %1698 = vpow2.f32 %v1339_v13  ;;  %v1117_v13 = vld [vmem:[%s2128_s12] sm:$0xff] }
 0x6bf   : > { %v1169_v14 = vpop.xlane.xlu1 %1168  ;;  %1386 = vmatpush.msrb.mxu1 %v1118_v12 }
 0x6c0   : > { %1700 = vrcp.f32 %v1169_v14  ;;  %v1181_v22 = vand.u32 2147483648, %v1169_v14  ;;  %v1179_v24 = vand.u32 2147483647, %v1169_v14  ;;  %vm1175_vm13 = vweird.f32 %v1169_v14 }
 0x6c1   : > { %1387 = vmatpush.msrb.mxu1 %v1117_v13 }
 0x6c2   : > { %v2009_v15 = vpop.eup %1696  ;;  %v1182_v26 = vor.u32 1.1754944e-38, %v1181_v22  ;;  %vm1180_vm15 = vcmp.eq.f32.partialorder %v1179_v24, 8.507059e+37 }
 0x6c3   : > { %v1283_v16 = vsel %vm775_vm1, %v2009_v15, 0.0 }
 0x6c4   : > { %v2013_v17 = vpop.eup %1698  ;;  %1284 = vadd.xlane.f32.xlu2 %v1283_v16 }
 0x6c5   : > { %v1341_v18 = vsel %vm775_vm1, %v2013_v17, 0.0 }
 0x6c6   : > { %v1701_v19 = vpop.eup %1700  ;;  %1342 = vadd.xlane.f32.xlu1 %v1341_v18 }
 0x6c7   : > { %v1171_v20 = vmul.f32 %v1701_v19, %v1169_v14  ;;  %vm1176_vm12 = vweird.f32 %v1701_v19  ;;  %v1126_v14 = vrot.slane %v1125_v4, 4 }
 0x6c8   : > { %vm1177_vm14 = vmor %vm1175_vm13, %vm1176_vm12 }
 0x6c9   : > { %v1172_v21 = vsub.f32 1.0, %v1171_v20 }
 0x6cb   : > { %v1173_v23 = vmul.f32 %v1701_v19, %v1172_v21 }
 0x6cd   : > { %v1174_v25 = vadd.f32 %v1701_v19, %v1173_v23 }
 0x6cf   : > { %v1178_v27 = vsel %vm1177_vm14, %v1701_v19, %v1174_v25 }
 0x6d0   : > { %v1183_v28 = vsel %vm1180_vm15, %v1182_v26, %v1178_v27 }
 0x6d1   : > { %v1184_v29 = vmul.f32 %v1693_v63, %v1183_v28 }
 0x6d3   : > { %v1185_v30 = vsel %vm775_vm1, %v1184_v29, 0.0 }
 0x6d4   : > { %1186 = vadd.xlane.f32.xlu0 %v1185_v30  ;;  %v1665_v30 = vld [vmem:[%s2129_s13] ss:$0 sm:$0xff] }
 0x71f   : > { %v1227_v31 = vpop.xlane.xlu0 %1226 }
 0x720   : > { %1702 = vrcp.f32 %v1227_v31  ;;  %v1239_v37 = vand.u32 2147483648, %v1227_v31  ;;  %v1237_v39 = vand.u32 2147483647, %v1227_v31  ;;  %vm1233_vm3 = vweird.f32 %v1227_v31 }
 0x722   : > { %v1240_v41 = vor.u32 1.1754944e-38, %v1239_v37  ;;  %vm1238_vm7 = vcmp.eq.f32.partialorder %v1237_v39, 8.507059e+37 }
 0x726   : > { %v1703_v33 = vpop.eup %1702 }
 0x727   : > { %v1229_v34 = vmul.f32 %v1703_v33, %v1227_v31  ;;  %vm1234_vm2 = vweird.f32 %v1703_v33 }
 0x728   : > { %vm1235_vm4 = vmor %vm1233_vm3, %vm1234_vm2  ;;  %vm1469_vm2 = vcmask 523264  }
 0x729   : > { %v1230_v36 = vsub.f32 1.0, %v1229_v34 }
 0x72b   : > { %v1231_v38 = vmul.f32 %v1703_v33, %v1230_v36 }
 0x72d   : > { %v1232_v40 = vadd.f32 %v1703_v33, %v1231_v38 }
 0x72f   : > { %v1236_v42 = vsel %vm1235_vm4, %v1703_v33, %v1232_v40 }
 0x730   : > { %v1241_v43 = vsel %vm1238_vm7, %v1240_v41, %v1236_v42  ;;  %v1428_v42 = vld [vmem:[%s2132_s16 + $0x18] sm:$0xff] }
 0x731   : > { %v1242_v44 = vmul.f32 %v1695_v5, %v1241_v43  ;;  %1448 = vmatpush.msrb.mxu2 %v1428_v42  ;;  %v1426_v43 = vld [vmem:[%s2132_s16 + $0x8] sm:$0xff] }
 0x733   : > { %v1243_v45 = vsel %vm775_vm1, %v1242_v44, 0.0  ;;  %v1425_v44 = vld [vmem:[%s2132_s16] sm:$0xff] }
 0x734   : > { %1244 = vadd.xlane.f32.xlu2 %v1243_v45  ;;  %v1464_v45 = vld [vmem:[%s2134_s18 + $0x38] sm:$0xff] }
 0x735   : > { %1481 = vmatpush.msra.mxu3 %v1464_v45 }
 0x737   : > { %v1285_v46 = vpop.xlane.xlu2 %1284 }
 0x738   : > { %1704 = vrcp.f32 %v1285_v46  ;;  %v1297_v53 = vand.u32 2147483648, %v1285_v46  ;;  %v1295_v56 = vand.u32 2147483647, %v1285_v46  ;;  %vm1291_vm9 = vweird.f32 %v1285_v46 }
 0x739   : > { %v1343_v47 = vpop.xlane.xlu1 %1342 }
 0x73a   : > { %1706 = vrcp.f32 %v1343_v47  ;;  %v1355_v57 = vand.u32 2147483648, %v1343_v47  ;;  %v1353_v59 = vand.u32 2147483647, %v1343_v47  ;;  %v1298_v60 = vor.u32 1.1754944e-38, %v1297_v53 }
 0x73b   : > { %vm1349_vm12 = vweird.f32 %v1343_v47  ;;  %vm1296_vm13 = vcmp.eq.f32.partialorder %v1295_v56, 8.507059e+37 }
 0x73c   : > { %v1356_v0 = vor.u32 1.1754944e-38, %v1355_v57  ;;  %vm1354_vm15 = vcmp.eq.f32.partialorder %v1353_v59, 8.507059e+37 }
 0x73e   : > { %v1705_v48 = vpop.eup %1704 }
 0x73f   : > { %v1287_v49 = vmul.f32 %v1705_v48, %v1285_v46  ;;  %vm1292_vm8 = vweird.f32 %v1705_v48  ;;  %v1463_v46 = vld [vmem:[%s2134_s18 + $0x30] sm:$0xff] }
 0x740   : > { %v1707_v50 = vpop.eup %1706  ;;  %vm1293_vm11 = vmor %vm1291_vm9, %vm1292_vm8  ;;  %1482 = vmatpush.msra.mxu3 %v1463_v46 }
 0x741   : > { %v1288_v51 = vsub.f32 1.0, %v1287_v49  ;;  %v1345_v52 = vmul.f32 %v1707_v50, %v1343_v47  ;;  %vm1350_vm10 = vweird.f32 %v1707_v50  ;;  %v1462_v47 = vld [vmem:[%s2134_s18 + $0x28] sm:$0xff] }
 0x742   : > { %vm1351_vm14 = vmor %vm1349_vm12, %vm1350_vm10  ;;  %1483 = vmatpush.msra.mxu3 %v1462_v47 }
 0x743   : > { %v1289_v54 = vmul.f32 %v1705_v48, %v1288_v51  ;;  %v1346_v55 = vsub.f32 1.0, %v1345_v52  ;;  %v1460_v52 = vld [vmem:[%s2134_s18 + $0x18] sm:$0xff] }
 0x745   : > { %v1347_v7 = vmul.f32 %v1707_v50, %v1346_v55  ;;  %v1290_v58 = vadd.f32 %v1705_v48, %v1289_v54 }
 0x747   : > { %v1294_v61 = vsel %vm1293_vm11, %v1705_v48, %v1290_v58  ;;  %v1348_v62 = vadd.f32 %v1707_v50, %v1347_v7  ;;  %v1187_v19 = vpop.xlane.xlu0 %1186  ;;  %v1666_v58 = vld [vmem:[%s2130_s14] ss:$0 sm:$0xff] }
 0x748   : > { %v1299_v63 = vsel %vm1296_vm13, %v1298_v60, %v1294_v61  ;;  %v1667_v61 = vld [vmem:[%s2131_s15] ss:$0 sm:$0xff] }
 0x749   : > { %v1300_v1 = vmul.f32 %v2009_v15, %v1299_v63  ;;  %v1352_v2 = vsel %vm1351_vm14, %v1707_v50, %v1348_v62  ;;  %v1127_v15 = vadd.f32 %v1126_v14, %v1125_v4  ;;  %v1461_v50 = vld [vmem:[%s2134_s18 + $0x20] sm:$0xff] }
 0x74a   : > { %v1357_v3 = vsel %vm1354_vm15, %v1356_v0, %v1352_v2  ;;  %1484 = vmatpush.msra.mxu3 %v1461_v50  ;;  %v1459_v0 = vld [vmem:[%s2134_s18 + $0x10] sm:$0xff]  ;;  %v1457_v2 = vld [vmem:[%s2134_s18] sm:$0xff] }
 0x74b   : > { %v1301_v5 = vsel %vm775_vm1, %v1300_v1, 0.0  ;;  %v1358_v6 = vmul.f32 %v2013_v17, %v1357_v3  ;;  %v1128_v16 = vrot.slane %v1127_v15, 2  ;;  %v1458_v1 = vld [vmem:[%s2134_s18 + $0x8] sm:$0xff]  ;;  %v1668_v3 = vld [vmem:[%s2133_s17] ss:$0 sm:$0xff] }
 0x74c   : > { %1302 = vadd.xlane.f32.xlu1 %v1301_v5  ;;  %1485 = vmatpush.msra.mxu3 %v1460_v52 }
 0x74d   : > { %v1359_v9 = vsel %vm775_vm1, %v1358_v6, 0.0  ;;  %v1129_v17 = vadd.f32 %v1128_v16, %v1127_v15 }
 0x74e   : > { %1360 = vadd.xlane.f32.xlu0 %v1359_v9  ;;  %1486 = vmatpush.msra.mxu3 %v1459_v0 }
 0x74f   : > { %v1130_v18 = vrot.slane %v1129_v17, 1 }
 0x750   : > { %1487 = vmatpush.msra.mxu3 %v1458_v1 }
 0x751   : > { %v1131_v21 = vadd.f32 %v1130_v18, %v1129_v17 }
 0x752   : > { %1488 = vmatpush.msra.mxu3 %v1457_v2 }
 0x753   : > { %v1188_v23 = vmul.f32 %v1187_v19, %v1131_v21 }
 0x7a7   : > { %v1245_v20 = vpop.xlane.xlu2 %1244 }
 0x7a8   : > { %v1246_v22 = vmul.f32 %v1245_v20, %v1131_v21 }
 0x7aa   : > { %v1363_v26 = vsel %vm775_vm1, %v1188_v23, %v1246_v22 }
 0x7bf   : > { %v1303_v24 = vpop.xlane.xlu1 %1302 }
 0x7c0   : > { %v1304_v25 = vmul.f32 %v1303_v24, %v1131_v21 }
 0x7c1   : > { %v1361_v35 = vpop.xlane.xlu0 %1360 }
 0x7c2   : > { %v1364_v27 = vsel %vm993_vm5, %v1363_v26, %v1304_v25  ;;  %v1362_v28 = vmul.f32 %v1361_v35, %v1131_v21 }
 0x7c4   : > { %v1365_v29 = vsel %vm995_vm6, %v1364_v27, %v1362_v28  ;;  %v1670_v27 = vld [vmem:[%s2136_s20] ss:$0 sm:$0xff] }
 0x7c5   : > { %1642 = vmatmul.msk.f32.vlgmr.msrb.gmra.mxu1 %vm739_vm0, %v1365_v29 }
 0x842   : > { %v1389_v31 = vpop.f32.mrf.mxu1 }
 0x843   : > { %v1390_v33 = vadd.f32 %v1665_v30, %v1389_v31 }
 0x845   : > { %v1394_v34 = vadd.f32 %v1390_v33, %v1968_v32  ;;  %v1427_v32 = vld [vmem:[%s2132_s16 + $0x10] sm:$0xff] }
 0x846   : > { %1449 = vmatpush.msrb.mxu2 %v1427_v32 }
 0x847   : > { %v1395_v36 = vsel %vm739_vm0, %v1394_v34, 0.0 }
 0x848   : > { %1396 = vadd.xlane.f32.xlu2 %v1395_v36  ;;  %1450 = vmatpush.msrb.mxu2 %v1426_v43 }
 0x84a   : > { %1451 = vmatpush.msrb.mxu2 %v1425_v44 }
 0x8bb   : > { %v1397_v37 = vpop.xlane.xlu2 %1396 }
 0x8bc   : > { %v1398_v38 = vmul.f32 %v1397_v37, %v1940_v8 }
 0x8be   : > { %v1399_v39 = vsub.f32 %v1394_v34, %v1398_v38 }
 0x8c0   : > { %v1400_v40 = vmul.f32 %v1399_v39, %v1399_v39 }
 0x8c2   : > { %v1401_v41 = vsel %vm739_vm0, %v1400_v40, 0.0 }
 0x8c3   : > { %1402 = vadd.xlane.f32.xlu1 %v1401_v41 }
 0x936   : > { %v1403_v48 = vpop.xlane.xlu1 %1402 }
 0x937   : > { %v1404_v49 = vmul.f32 %v1403_v48, %v1940_v8 }
 0x939   : > { %v1405_v51 = vadd.f32 1e-05, %v1404_v49 }
 0x93b   : > { %1708 = vrsqrt.f32 %v1405_v51  ;;  %vm1412_vm5 = vweird.f32 %v1405_v51 }
 0x941   : > { %v1709_v53 = vpop.eup %1708 }
 0x942   : > { %v1407_v54 = vmul.f32 %v1709_v53, %v1405_v51  ;;  %vm1413_vm1 = vweird.f32 %v1709_v53 }
 0x943   : > { %vm1414_vm6 = vmor %vm1412_vm5, %vm1413_vm1 }
 0x944   : > { %v1408_v55 = vmul.f32 %v1709_v53, %v1407_v54 }
 0x946   : > { %v1409_v56 = vmul.f32 0.5, %v1408_v55 }
 0x948   : > { %v1410_v57 = vsub.f32 1.5, %v1409_v56 }
 0x94a   : > { %v1411_v7 = vmul.f32 %v1709_v53, %v1410_v57 }
 0x94c   : > { %v1415_v59 = vsel %vm1414_vm6, %v1709_v53, %v1411_v7 }
 0x94d   : > { %v1416_v60 = vmul.f32 %v1415_v59, %v1399_v39 }
 0x94f   : > { %v1420_v62 = vmul.f32 %v1666_v58, %v1416_v60 }
 0x951   : > { %v1424_v63 = vadd.f32 %v1667_v61, %v1420_v62 }
 0x953   : > { %1643 = vmatmul.msk.f32.vlgmr.msrb.gmra.mxu2 %vm739_vm0, %v1424_v63 }
 0x9d6   : > { %v1453_v5 = vpop.f32.mrf.mxu2 }
 0x9d7   : > { %v1454_v6 = vadd.f32 %v1668_v3, %v1453_v5 }
 0x9d9   : > { %v1456_v9 = vmax.f32 %v1454_v6, 0.0 }
 0x9db   : > { %1644 = vmatmul.msk.f32.vlgmr.msra.gmra.mxu3 %vm1469_vm2, %v1456_v9 }
 0xa5e   : > { %v1490_v11 = vpop.f32.mrf.mxu3 }
 0xa5f   : > { %v1491_v12 = vadd.f32 %v1669_v10, %v1490_v11 }
 0xa61   : > { %v1495_v4 = vadd.f32 %v1491_v12, %v1424_v63 }
 0xa63   : > { %v1496_v13 = vsel %vm739_vm0, %v1495_v4, 0.0 }
 0xa64   : > { %1497 = vadd.xlane.f32.xlu0 %v1496_v13 }
 0xad7   : > { %v1498_v14 = vpop.xlane.xlu0 %1497 }
 0xad8   : > { %v1499_v15 = vmul.f32 %v1498_v14, %v1940_v8 }
 0xada   : > { %v1500_v16 = vsub.f32 %v1495_v4, %v1499_v15 }
 0xadc   : > { %v1501_v17 = vmul.f32 %v1500_v16, %v1500_v16 }
 0xade   : > { %v1502_v18 = vsel %vm739_vm0, %v1501_v17, 0.0 }
 0xadf   : > { %1503 = vadd.xlane.f32.xlu2 %v1502_v18 }
 0xb52   : > { %v1504_v19 = vpop.xlane.xlu2 %1503 }
 0xb53   : > { %v1505_v20 = vmul.f32 %v1504_v19, %v1940_v8  ;;  %v1671_v8 = vld [vmem:[%s2137_s21] ss:$0 sm:$0xff] }
 0xb55   : > { %v1506_v21 = vadd.f32 1e-05, %v1505_v20 }
 0xb57   : > { %1710 = vrsqrt.f32 %v1506_v21  ;;  %vm1513_vm4 = vweird.f32 %v1506_v21 }
 0xb5d   : > { %v1711_v22 = vpop.eup %1710 }
 0xb5e   : > { %v1508_v23 = vmul.f32 %v1711_v22, %v1506_v21  ;;  %vm1514_vm3 = vweird.f32 %v1711_v22 }
 0xb5f   : > { %vm1515_vm7 = vmor %vm1513_vm4, %vm1514_vm3 }
 0xb60   : > { %v1509_v24 = vmul.f32 %v1711_v22, %v1508_v23 }
 0xb62   : > { %v1510_v25 = vmul.f32 0.5, %v1509_v24 }
 0xb64   : > { %v1511_v26 = vsub.f32 1.5, %v1510_v25 }
 0xb66   : > { %v1512_v35 = vmul.f32 %v1711_v22, %v1511_v26 }
 0xb68   : > { %v1516_v28 = vsel %vm1515_vm7, %v1711_v22, %v1512_v35 }
 0xb69   : > { %v1517_v29 = vmul.f32 %v1516_v28, %v1500_v16 }
 0xb6b   : > { %v1521_v30 = vmul.f32 %v1670_v27, %v1517_v29 }
 0xb6d   : > { %v1525_v31 = vadd.f32 %v1671_v8, %v1521_v30 }
 0xb6f   : > { %1526 = vst.msk [vmem:[%s726_s1] sm:$0xff] %vm739_vm0, %v1525_v31 }
 0xb70 PF: > { %s32_s3 = sadd.s32 1, %s1718_s3  }
 0xb71   : > { %p29_p4 = scmp.ge.s32.totalorder %s32_s3, 4  }
 0xb73   :  { %31 = sbr.rel (!%p29_p4) target bundleno = 8 (0x8), region = 147 }

// kernel: decoder_forward.4
= control target key start
LH: loop header
LB: loop body
LE: loop exit
PB: predicated region body
PF: predicated region fallthrough
CT: control target
= control target key end

     0   :  { %s2191_s0 = inlined_call_operand.vmem [shape: f32[2,8,32], index: 0, kind: input, shape index: {}]   ;;  %s2192_s1 = inlined_call_operand.vmem [shape: f32[2,8,32], index: 1, kind: input, shape index: {}]   ;;  %s2193_s2 = inlined_call_operand.vmem [shape: f32[2,1,8,8], index: 2, kind: input, shape index: {}]   ;;  %s2194_s3 = inlined_call_operand.vmem [shape: f32[2,1,1,8], index: 3, kind: input, shape index: {}]   ;;  %s2195_s4 = inlined_call_operand.vmem [shape: f32[32,32], index: 4, kind: input, shape index: {}]   ;;  %s2196_s5 = inlined_call_operand.vmem [shape: f32[1,32], index: 5, kind: input, shape index: {}]   ;;  %s2197_s6 = inlined_call_operand.vmem [shape: f32[32,32], index: 6, kind: input, shape index: {}]   ;;  %s2198_s7 = inlined_call_operand.vmem [shape: f32[1,32], index: 7, kind: input, shape index: {}]   ;;  %s2199_s8 = inlined_call_operand.vmem [shape: f32[1,32], index: 8, kind: input, shape index: {}]   ;;  %s2200_s9 = inlined_call_operand.vmem [shape: f32[1,32], index: 9, kind: input, shape index: {}]   ;;  %s2201_s10 = inlined_call_operand.vmem [shape: f32[32,32], index: 10, kind: input, shape index: {}]   ;;  %s2202_s11 = inlined_call_operand.vmem [shape: f32[1,32], index: 11, kind: input, shape index: {}]   ;;  %s2203_s12 = inlined_call_operand.vmem [shape: f32[32,32], index: 12, kind: input, shape index: {}]   ;;  %s2204_s13 = inlined_call_operand.vmem [shape: f32[1,32], index: 13, kind: input, shape index: {}]   ;;  %s2205_s14 = inlined_call_operand.vmem [shape: f32[1,32], index: 14, kind: input, shape index: {}]   ;;  %s2206_s15 = inlined_call_operand.vmem [shape: f32[1,32], index: 15, kind: input, shape index: {}]   ;;  %s2207_s16 = inlined_call_operand.vmem [shape: f32[32,64], index: 16, kind: input, shape index: {}]   ;;  %s2208_s17 = inlined_call_operand.vmem [shape: f32[1,64], index: 17, kind: input, shape index: {}]   ;;  %s2209_s18 = inlined_call_operand.vmem [shape: f32[64,32], index: 18, kind: input, shape index: {}]   ;;  %s2210_s19 = inlined_call_operand.vmem [shape: f32[1,32], index: 19, kind: input, shape index: {}]   ;;  %s2211_s20 = inlined_call_operand.vmem [shape: f32[1,32], index: 20, kind: input, shape index: {}]   ;;  %s2212_s21 = inlined_call_operand.hbm [shape: f32[1,32], index: 21, kind: input, shape index: {}]   ;;  %s2213_s22 = inlined_call_operand.vmem [shape: f32[2,8,32], index: 22, kind: output, shape index: {}]  }
   0x1   :  { %2220 = sst [smem:[#allocation5_spill]] %s2191_s0 }
   0x2   :  { %2221 = sst [smem:[#allocation6_spill]] %s2192_s1 }
   0x3   :  { %2222 = sst [smem:[#allocation7_spill]] %s2193_s2 }
   0x4   :  { %2223 = sst [smem:[#allocation8_spill]] %s2194_s3 }
   0x5   :  { %2224 = sst [smem:[#allocation9_spill]] %s2195_s4 }
   0x6   :  { %2225 = sst [smem:[#allocation10_spill]] %s2196_s5 }
   0x7   :  { %2226 = sst [smem:[#allocation11_spill]] %s2197_s6 }
   0x8   :  { %2227 = sst [smem:[#allocation12_spill]] %s2212_s21 }
   0x9   :  { %27 = vsyncpa [#allocation3], 0  ;;  %s1914_s3 = smov 0  }
   0xa LB: > { %s1640_s28 = sadd.s32 4294967295, %s1792_s3   ;;  %p1642_p0 = scmp.ge.s32.totalorder %s1792_s3, 1  ;;  %s1792_s3 = sphi %s1914_s3, %s33_s3  }
   0xb   : > { %p546_p1 = scmp.lt.s32.totalorder %s1792_s3, 3  ;;  %s2228_s21 = sld [smem:[#allocation12_spill]] }
   0xc   : > { %p1684_p3 = scmp.eq.s32.totalorder %s1640_s28, 0  ;;  %s1794_s0 = smov [#allocation2]  }
   0xd   : > { %p547_p2 = pnand %p1642_p0, %p546_p1  ;;  %s611_s23 = sshll.u32 %s1794_s0, 4  ;;  %s612_s23 = int_to_ptr.vmem [resolvable:$true] %s611_s23 }
   0xf   : > { %p1680_p4 = pneg %p547_p2  ;;  %651 = sbr.rel (%p547_p2) target bundleno = 2937 (0xb79), region = 108 }
  0x11   : > { %s609_s4 = sshll.u32 %s2228_s21, 4  ;;  %p1681_p5 = pnand %p1684_p3, %p1680_p4  ;;  %s610_s4 = int_to_ptr.hbm [resolvable:$true] %s609_s4 }
  0x13   : > { %1683 = dma.hbm_to_vmem [thread:$0]  (!%p1681_p5), %s610_s4, 16, %s612_s23, [#allocation3]  }
  0x14   : > { %1787 = dma.done.wait (%p1684_p3), [#allocation3], 16  }
  0x15   : > { %1789 = vsyncadd (%p1684_p3), [#allocation3], 4294967280  ;;  %p723_p6 = scmp.lt.s32.totalorder %s1640_s28, 1  ;;  %s2229_s6 = sld [smem:[#allocation9_spill]]  ;;  %vm754_vm0 = vcmask 261120   ;;  %vm790_vm1 = vcmask 64512  }
  0x16   : > { %s2230_s29 = sld [smem:[#allocation5_spill]]  ;;  %s2216_s21 = smov 104  }
  0x17   : > { %s2239_s28 = smov (!%p723_p6, %s1640_s28), 1  ;;  %s2231_s25 = sld [smem:[#allocation10_spill]] }
  0x18   : > { %s1928_s1 = sshll.u32 %s2239_s28, 3  ;;  %s1796_s26 = smov 120  }
  0x19   : > { %s2218_s2 = smov 112   ;;  %s2233_s5 = sld [smem:[#allocation11_spill]] }
  0x1a   : > { %s2235_s0 = smov 112   ;;  %s2236_s23 = smov 104  }
  0x1b   : > { %v749_v0 = vld [vmem:[%s2229_s6 + $0x18] sm:$0xff]  ;;  %v748_v1 = vld [vmem:[%s2229_s6 + $0x10] sm:$0xff]  ;;  %v747_v2 = vld [vmem:[%s2229_s6 + $0x8] sm:$0xff] }
  0x1c   : > { %s726_s30 = scalar_lea.vmem %s2230_s29, %s1928_s1  ;;  %770 = vmatpush.msra.mxu0 %v749_v0  ;;  %v746_v3 = vld [vmem:[%s2229_s6] sm:$0xff] }
  0x1d   : > { %v1946_v4 = vld [vmem:[%s726_s30] sm:$0xff]  ;;  %s2232_s30 = sld [smem:[#allocation7_spill]] }
  0x1e   : > { %771 = vmatpush.msra.mxu0 %v748_v1  ;;  %v1699_v5 = vld [vmem:[%s2231_s25] ss:$0 sm:$0xff] }
  0x20   : > { %772 = vmatpush.msra.mxu0 %v747_v2 }
  0x22   : > { %773 = vmatpush.msra.mxu0 %v746_v3 }
  0x23   : > { %1651 = vmatmul.msk.f32.vlgmr.msra.gmra.mxu0 %vm754_vm0, %v1946_v4  ;;  %s734_s4 = scalar_lea.vmem %s2232_s30, %s1928_s1 }
  0x24   : > { %v744_v11 = vld [vmem:[%s734_s4] sm:$0xff] }
  0x25   : > { %vm814_vm2 = vcmp.eq.f32.partialorder %v744_v11, 0.0 }
  0xa0   : > { %v775_v6 = vpop.f32.mrf.mxu0 }
  0xa1   : > { %v1953_v7 = vadd.f32 %v1699_v5, %v775_v6 }
  0xa3   : > { %953 = vrot.lane.b32.xlu1 %v1953_v7, %s2216_s21  ;;  %845 = vrot.lane.b32.xlu0 %v1953_v7, %s1796_s26  ;;  %s2234_s21 = sld [smem:[#allocation6_spill]] }
  0xa4   : > { %1652 = vmatpush.xpose.msk.msra.mxu1 %vm790_vm1, %v1953_v7 }
  0xa7   : > { %1653 = vmatmul.msk.f32.vlgmr.msra.gmra.mxu1 %vm790_vm1, %v1953_v7 }
  0xab   : > { %899 = vrot.lane.b32.xlu0 %v1953_v7, %s2218_s2  ;;  %s730_s2 = scalar_lea.vmem %s2234_s21, %s1928_s1  ;;  %s2237_s21 = sld [smem:[#allocation8_spill]] }
 0x115   : > { %v954_v8 = vpop.permute.xlu1 %953  ;;  %v846_v9 = vpop.permute.xlu0 %845 }
 0x116   : > { %1654 = vmatpush.xpose.msk.msra.mxu2 %vm790_vm1, %v846_v9  ;;  %1658 = vmatpush.xpose.msk.msrb.mxu1 %vm790_vm1, %v954_v8 }
 0x119   : > { %1655 = vmatmul.msk.f32.vlgmr.msra.gmra.mxu2 %vm790_vm1, %v846_v9  ;;  %1659 = vmatmul.msk.f32.vlgmr.msrb.gmra.mxu1 %vm790_vm1, %v954_v8 }
 0x11d   : > { %v900_v10 = vpop.permute.xlu0 %899 }
 0x11e   : > { %1656 = vmatpush.xpose.msk.msrb.mxu0 %vm790_vm1, %v900_v10 }
 0x121   : > { %1657 = vmatmul.msk.f32.vlgmr.msrb.gmra.mxu0 %vm790_vm1, %v900_v10 }
 0x124   : > { %v811_v12 = vpop.f32.mrf.mxu1 }
 0x125   : > { %v815_v13 = vsel %vm814_vm2, -inf, %v811_v12 }
 0x126   : > { %v816_v14 = vmul.f32 0.35355338, %v815_v13 }
 0x128   : > { %v817_v15 = vsel %vm790_vm1, %v816_v14, -inf }
 0x129   : > { %818 = vmax.xlane.f32.xlu1 %v817_v15 }
 0x196   : > { %v974_v16 = vpop.f32.mrf.mxu1 }
 0x197   : > { %v977_v17 = vsel %vm814_vm2, -inf, %v974_v16 }
 0x198   : > { %v978_v18 = vmul.f32 0.35355338, %v977_v17 }
 0x19a   : > { %v979_v19 = vsel %vm790_vm1, %v978_v18, -inf }
 0x19b   : > { %980 = vmax.xlane.f32.xlu0 %v979_v19 }
 0x19c   : > { %v819_v20 = vpop.xlane.xlu1 %818  ;;  %v866_v21 = vpop.f32.mrf.mxu2 }
 0x19d   : > { %v869_v22 = vsel %vm814_vm2, -inf, %v866_v21  ;;  %v820_v25 = vsub.f32 %v816_v14, %v819_v20 }
 0x19e   : > { %v870_v23 = vmul.f32 0.35355338, %v869_v22  ;;  %v920_v24 = vpop.f32.mrf.mxu0 }
 0x19f   : > { %v923_v27 = vsel %vm814_vm2, -inf, %v920_v24  ;;  %v821_v28 = vmul.f32 1.442695, %v820_v25 }
 0x1a0   : > { %v871_v26 = vsel %vm790_vm1, %v870_v23, -inf  ;;  %v924_v29 = vmul.f32 0.35355338, %v923_v27 }
 0x1a1   : > { %872 = vmax.xlane.f32.xlu2 %v871_v26  ;;  %1712 = vpow2.f32 %v821_v28 }
 0x1a2   : > { %v925_v30 = vsel %vm790_vm1, %v924_v29, -inf }
 0x1a7   : > { %v1713_v31 = vpop.eup %1712 }
 0x1a8   : > { %v823_v32 = vsel %vm790_vm1, %v1713_v31, 0.0 }
 0x1a9   : > { %926 = vmax.xlane.f32.xlu2 %v925_v30 }
 0x1b1   : > { %824 = vadd.xlane.f32.xlu2 %v823_v32 }
 0x20e   : > { %v981_v39 = vpop.xlane.xlu0 %980 }
 0x20f   : > { %v982_v42 = vsub.f32 %v978_v18, %v981_v39  ;;  %v780_v39 = vld [vmem:[%s2233_s5 + $0x10] sm:$0xff] }
 0x211   : > { %v983_v45 = vmul.f32 1.442695, %v982_v42  ;;  %v783_v42 = vsel %vm754_vm0, %v1953_v7, 0.0 }
 0x214   : > { %v873_v33 = vpop.xlane.xlu2 %872 }
 0x215   : > { %v874_v36 = vsub.f32 %v870_v23, %v873_v33 }
 0x217   : > { %v875_v38 = vmul.f32 1.442695, %v874_v36 }
 0x21c   : > { %v927_v34 = vpop.xlane.xlu2 %926 }
 0x21d   : > { %v928_v35 = vsub.f32 %v924_v29, %v927_v34 }
 0x21f   : > { %v929_v37 = vmul.f32 1.442695, %v928_v35 }
 0x221   : > { %1714 = vpow2.f32 %v929_v37 }
 0x224   : > { %v825_v40 = vpop.xlane.xlu2 %824 }
 0x225   : > { %1716 = vrcp.f32 %v825_v40  ;;  %v837_v52 = vand.u32 2147483648, %v825_v40  ;;  %vm831_vm4 = vweird.f32 %v825_v40  ;;  %v835_v53 = vand.u32 2147483647, %v825_v40 }
 0x226   : > { %1718 = vpow2.f32 %v875_v38  ;;  %v781_v38 = vld [vmem:[%s2233_s5 + $0x18] sm:$0xff] }
 0x227   : > { %v1715_v41 = vpop.eup %1714  ;;  %1720 = vpow2.f32 %v983_v45  ;;  %v838_v56 = vor.u32 1.1754944e-38, %v837_v52  ;;  %vm836_vm6 = vcmp.eq.f32.partialorder %v835_v53, 8.507059e+37  ;;  %1030 = vmatpush.msrb.mxu2 %v781_v38 }
 0x228   : > { %v931_v43 = vsel %vm790_vm1, %v1715_v41, 0.0 }
 0x229   : > { %932 = vadd.xlane.f32.xlu2 %v931_v43  ;;  %1031 = vmatpush.msrb.mxu2 %v780_v39  ;;  %v784_v43 = vrot.slane %v783_v42, 4 }
 0x22b   : > { %v1717_v44 = vpop.eup %1716 }
 0x22c   : > { %v827_v46 = vmul.f32 %v1717_v44, %v825_v40  ;;  %v1719_v47 = vpop.eup %1718  ;;  %vm832_vm3 = vweird.f32 %v1717_v44  ;;  %v779_v40 = vld [vmem:[%s2233_s5 + $0x8] sm:$0xff] }
 0x22d   : > { %v877_v50 = vsel %vm790_vm1, %v1719_v47, 0.0  ;;  %v1986_v54 = vpop.eup %1720  ;;  %vm833_vm5 = vmor %vm831_vm4, %vm832_vm3  ;;  %1032 = vmatpush.msrb.mxu2 %v779_v40 }
 0x22e   : > { %v828_v48 = vsub.f32 1.0, %v827_v46  ;;  %v985_v57 = vsel %vm790_vm1, %v1986_v54, 0.0 }
 0x230   : > { %v829_v49 = vmul.f32 %v1717_v44, %v828_v48 }
 0x231   : > { %878 = vadd.xlane.f32.xlu2 %v877_v50 }
 0x232   : > { %v830_v51 = vadd.f32 %v1717_v44, %v829_v49 }
 0x234   : > { %v834_v55 = vsel %vm833_vm5, %v1717_v44, %v830_v51  ;;  %v785_v44 = vadd.f32 %v784_v43, %v783_v42  ;;  %vm1008_vm5 = vcmask 130048  }
 0x235   : > { %v839_v58 = vsel %vm836_vm6, %v838_v56, %v834_v55  ;;  %vm1010_vm6 = vcmask 195584  }
 0x236   : > { %v840_v59 = vmul.f32 %v1713_v31, %v839_v58  ;;  %v786_v45 = vrot.slane %v785_v44, 2 }
 0x238   : > { %v841_v60 = vsel %vm790_vm1, %v840_v59, 0.0  ;;  %v787_v46 = vadd.f32 %v786_v45, %v785_v44  ;;  %v1700_v59 = vld [vmem:[%s2198_s7] ss:$0 sm:$0xff] }
 0x239   : > { %986 = vadd.xlane.f32.xlu2 %v985_v57 }
 0x23a   : > { %v788_v48 = vrot.slane %v787_v46, 1 }
 0x23c   : > { %v789_v50 = vadd.f32 %v788_v48, %v787_v46 }
 0x241   : > { %842 = vadd.xlane.f32.xlu2 %v841_v60 }
 0x29c   : > { %v933_v61 = vpop.xlane.xlu2 %932 }
 0x29d   : > { %1722 = vrcp.f32 %v933_v61  ;;  %v945_v2 = vand.u32 2147483648, %v933_v61  ;;  %v943_v5 = vand.u32 2147483647, %v933_v61  ;;  %vm939_vm8 = vweird.f32 %v933_v61 }
 0x29f   : > { %v946_v9 = vor.u32 1.1754944e-38, %v945_v2  ;;  %vm944_vm10 = vcmp.eq.f32.partialorder %v943_v5, 8.507059e+37 }
 0x2a3   : > { %v1723_v62 = vpop.eup %1722 }
 0x2a4   : > { %v935_v63 = vmul.f32 %v1723_v62, %v933_v61  ;;  %v879_v0 = vpop.xlane.xlu2 %878  ;;  %vm940_vm7 = vweird.f32 %v1723_v62 }
 0x2a5   : > { %1724 = vrcp.f32 %v879_v0  ;;  %vm941_vm9 = vmor %vm939_vm8, %vm940_vm7  ;;  %v891_v16 = vand.u32 2147483648, %v879_v0  ;;  %v889_v19 = vand.u32 2147483647, %v879_v0  ;;  %vm885_vm12 = vweird.f32 %v879_v0 }
 0x2a6   : > { %v936_v1 = vsub.f32 1.0, %v935_v63 }
 0x2a7   : > { %v892_v22 = vor.u32 1.1754944e-38, %v891_v16  ;;  %vm890_vm14 = vcmp.eq.f32.partialorder %v889_v19, 8.507059e+37  ;;  %v1078_v16 = vld [vmem:[%s2201_s10] sm:$0xff] }
 0x2a8   : > { %v937_v3 = vmul.f32 %v1723_v62, %v936_v1 }
 0x2aa   : > { %v938_v6 = vadd.f32 %v1723_v62, %v937_v3 }
 0x2ab   : > { %v1725_v8 = vpop.eup %1724 }
 0x2ac   : > { %v881_v10 = vmul.f32 %v1725_v8, %v879_v0  ;;  %v987_v11 = vpop.xlane.xlu2 %986  ;;  %v942_v12 = vsel %vm941_vm9, %v1723_v62, %v938_v6  ;;  %vm886_vm11 = vweird.f32 %v1725_v8  ;;  %v1798_v0 = vmov 32.0  }
 0x2ad   : > { %1726 = vrcp.f32 %v987_v11  ;;  %v947_v13 = vsel %vm944_vm10, %v946_v9, %v942_v12  ;;  %vm887_vm13 = vmor %vm885_vm12, %vm886_vm11  ;;  %v999_v28 = vand.u32 2147483648, %v987_v11  ;;  %v997_v31 = vand.u32 2147483647, %v987_v11 }
 0x2ae   : > { %v882_v14 = vsub.f32 1.0, %v881_v10  ;;  %v948_v15 = vmul.f32 %v1715_v41, %v947_v13  ;;  %vm993_vm2 = vweird.f32 %v987_v11  ;;  %v778_v41 = vld [vmem:[%s2233_s5] sm:$0xff]  ;;  %1728 = vrcp.f32 %v1798_v0  ;;  %v1081_v13 = vld [vmem:[%s2201_s10 + $0x18] sm:$0xff] }
 0x2af   : > { %v1000_v33 = vor.u32 1.1754944e-38, %v999_v28  ;;  %vm998_vm4 = vcmp.eq.f32.partialorder %v997_v31, 8.507059e+37  ;;  %1033 = vmatpush.msrb.mxu2 %v778_v41  ;;  %1124 = vmatpush.msra.mxu0 %v1081_v13 }
 0x2b0   : > { %v883_v17 = vmul.f32 %v1725_v8, %v882_v14  ;;  %v949_v18 = vsel %vm790_vm1, %v948_v15, 0.0  ;;  %1101 = vmatpush.msra.mxu3 %v1081_v13  ;;  %v1080_v14 = vld [vmem:[%s2201_s10 + $0x10] sm:$0xff]  ;;  %v1079_v15 = vld [vmem:[%s2201_s10 + $0x8] sm:$0xff] }
 0x2b1   : > { %950 = vadd.xlane.f32.xlu2 %v949_v18  ;;  %1125 = vmatpush.msra.mxu0 %v1080_v14 }
 0x2b2   : > { %v884_v20 = vadd.f32 %v1725_v8, %v883_v17  ;;  %1102 = vmatpush.msra.mxu3 %v1080_v14  ;;  %v743_v17 = vld [vmem:[%s730_s2] sm:$0xff]  ;;  %s737_s2 = scalar_lea.vmem %s2237_s21, %s2239_s28  ;;  %s741_s21 = scalar_lea.vmem %s2213_s22, %s1928_s1 }
 0x2b3   : > { %v1727_v21 = vpop.eup %1726  ;;  %1126 = vmatpush.msra.mxu0 %v1079_v15  ;;  %v1704_v43 = vld [vmem:[%s737_s2] ss:$0 sm:$0xff] }
 0x2b4   : > { %v989_v23 = vmul.f32 %v1727_v21, %v987_v11  ;;  %v888_v24 = vsel %vm887_vm13, %v1725_v8, %v884_v20  ;;  %vm994_vm15 = vweird.f32 %v1727_v21  ;;  %v1729_v1 = vpop.eup %1728  ;;  %1103 = vmatpush.msra.mxu3 %v1079_v15  ;;  %vm1173_vm11 = vcmp.eq.f32.partialorder %v1704_v43, 0.0 }
 0x2b5   : > { %v893_v25 = vsel %vm890_vm14, %v892_v22, %v888_v24  ;;  %vm995_vm3 = vmor %vm993_vm2, %vm994_vm15  ;;  %v1045_v2 = vmul.f32 32.0, %v1729_v1  ;;  %vm1049_vm7 = vweird.f32 %v1729_v1  ;;  %1127 = vmatpush.msra.mxu0 %v1078_v16 }
 0x2b6   : > { %v990_v26 = vsub.f32 1.0, %v989_v23  ;;  %v894_v27 = vmul.f32 %v1719_v47, %v893_v25  ;;  %v843_v47 = vpop.xlane.xlu2 %842  ;;  %1104 = vmatpush.msra.mxu3 %v1078_v16  ;;  %1662 = vmatmul.msk.f32.vlgmr.msra.gmra.mxu0 %vm754_vm0, %v743_v17 }
 0x2b7   : > { %v844_v52 = vmul.f32 %v843_v47, %v789_v50  ;;  %v1046_v3 = vsub.f32 1.0, %v1045_v2 }
 0x2b8   : > { %v991_v29 = vmul.f32 %v1727_v21, %v990_v26  ;;  %v895_v30 = vsel %vm790_vm1, %v894_v27, 0.0  ;;  %v1701_v27 = vld [vmem:[%s2199_s8] ss:$0 sm:$0xff] }
 0x2b9   : > { %896 = vadd.xlane.f32.xlu1 %v895_v30  ;;  %v1047_v5 = vmul.f32 %v1729_v1, %v1046_v3  ;;  %v1702_v30 = vld [vmem:[%s2200_s9] ss:$0 sm:$0xff] }
 0x2ba   : > { %v992_v32 = vadd.f32 %v1727_v21, %v991_v29 }
 0x2bb   : > { %v1048_v6 = vadd.f32 %v1729_v1, %v1047_v5 }
 0x2bc   : > { %v996_v34 = vsel %vm995_vm3, %v1727_v21, %v992_v32 }
 0x2bd   : > { %v1001_v35 = vsel %vm998_vm4, %v1000_v33, %v996_v34  ;;  %v2018_v8 = vsel %vm1049_vm7, %v1729_v1, %v1048_v6  ;;  %v1703_v33 = vld [vmem:[%s2202_s11] ss:$0 sm:$0xff] }
 0x2be   : > { %v1002_v36 = vmul.f32 %v1986_v54, %v1001_v35 }
 0x2c0   : > { %v1003_v37 = vsel %vm790_vm1, %v1002_v36, 0.0 }
 0x2c1   : > { %1004 = vadd.xlane.f32.xlu0 %v1003_v37 }
 0x324   : > { %v951_v53 = vpop.xlane.xlu2 %950 }
 0x325   : > { %v952_v55 = vmul.f32 %v951_v53, %v789_v50 }
 0x32c   : > { %v897_v49 = vpop.xlane.xlu1 %896 }
 0x32d   : > { %v898_v51 = vmul.f32 %v897_v49, %v789_v50 }
 0x32f   : > { %v1007_v54 = vsel %vm790_vm1, %v844_v52, %v898_v51 }
 0x330   : > { %v1009_v7 = vsel %vm1008_vm5, %v1007_v54, %v952_v55 }
 0x333   : > { %v1129_v34 = vpop.f32.mrf.mxu0 }
 0x334   : > { %v1005_v56 = vpop.xlane.xlu0 %1004  ;;  %v2053_v35 = vadd.f32 %v1703_v33, %v1129_v34 }
 0x335   : > { %v1006_v57 = vmul.f32 %v1005_v56, %v789_v50 }
 0x336   : > { %1206 = vrot.lane.b32.xlu0 %v2053_v35, %s1796_s26  ;;  %1663 = vmatpush.xpose.msk.msra.mxu1 %vm790_vm1, %v2053_v35 }
 0x337   : > { %v1011_v58 = vsel %vm1010_vm6, %v1009_v7, %v1006_v57 }
 0x338   : > { %1660 = vmatmul.msk.f32.vlgmr.msrb.gmra.mxu2 %vm754_vm0, %v1011_v58 }
 0x3a8   : > { %v1207_v38 = vpop.permute.xlu0 %1206 }
 0x3a9   : > { %1665 = vmatpush.xpose.msk.msra.mxu2 %vm790_vm1, %v1207_v38 }
 0x3bb   : > { %v1035_v60 = vpop.f32.mrf.mxu2 }
 0x3bc   : > { %v1036_v61 = vadd.f32 %v1700_v59, %v1035_v60 }
 0x3be   : > { %v1040_v62 = vadd.f32 %v1036_v61, %v1946_v4 }
 0x3c0   : > { %v1041_v63 = vsel %vm754_vm0, %v1040_v62, 0.0 }
 0x3c1   : > { %1042 = vadd.xlane.f32.xlu1 %v1041_v63 }
 0x3da   : > { %1264 = vrot.lane.b32.xlu1 %v2053_v35, %s2235_s0 }
 0x3e2   : > { %1322 = vrot.lane.b32.xlu1 %v2053_v35, %s2236_s23 }
 0x434   : > { %v1043_v9 = vpop.xlane.xlu1 %1042 }
 0x435   : > { %v1051_v10 = vmul.f32 %v2018_v8, %v1043_v9 }
 0x437   : > { %v1052_v11 = vsub.f32 %v1040_v62, %v1051_v10 }
 0x439   : > { %v1053_v12 = vmul.f32 %v1052_v11, %v1052_v11 }
 0x43b   : > { %v1054_v4 = vsel %vm754_vm0, %v1053_v12, 0.0 }
 0x43c   : > { %1055 = vadd.xlane.f32.xlu2 %v1054_v4 }
 0x44c   : > { %v1265_v39 = vpop.permute.xlu1 %1264 }
 0x44d   : > { %1667 = vmatpush.xpose.msk.msrb.mxu3 %vm790_vm1, %v1265_v39 }
 0x454   : > { %v1323_v40 = vpop.permute.xlu1 %1322 }
 0x455   : > { %1669 = vmatpush.xpose.msk.msrb.mxu0 %vm790_vm1, %v1323_v40 }
 0x4af   : > { %v1056_v18 = vpop.xlane.xlu2 %1055 }
 0x4b0   : > { %v1057_v19 = vmul.f32 %v1056_v18, %v2018_v8 }
 0x4b2   : > { %v1058_v20 = vadd.f32 1e-05, %v1057_v19 }
 0x4b4   : > { %1730 = vrsqrt.f32 %v1058_v20  ;;  %vm1065_vm9 = vweird.f32 %v1058_v20 }
 0x4ba   : > { %v1731_v21 = vpop.eup %1730 }
 0x4bb   : > { %v1060_v22 = vmul.f32 %v1731_v21, %v1058_v20  ;;  %vm1066_vm8 = vweird.f32 %v1731_v21 }
 0x4bc   : > { %vm1067_vm10 = vmor %vm1065_vm9, %vm1066_vm8 }
 0x4bd   : > { %v1061_v23 = vmul.f32 %v1731_v21, %v1060_v22 }
 0x4bf   : > { %v1062_v24 = vmul.f32 0.5, %v1061_v23 }
 0x4c1   : > { %v1063_v25 = vsub.f32 1.5, %v1062_v24 }
 0x4c3   : > { %v1064_v26 = vmul.f32 %v1731_v21, %v1063_v25 }
 0x4c5   : > { %v1068_v28 = vsel %vm1067_vm10, %v1731_v21, %v1064_v26 }
 0x4c6   : > { %v1069_v29 = vmul.f32 %v1068_v28, %v1052_v11 }
 0x4c8   : > { %v1073_v31 = vmul.f32 %v1701_v27, %v1069_v29 }
 0x4ca   : > { %v2046_v32 = vadd.f32 %v1702_v30, %v1073_v31 }
 0x4cc   : > { %1661 = vmatmul.msk.f32.vlgmr.msra.gmra.mxu3 %vm754_vm0, %v2046_v32 }
 0x54f   : > { %v1106_v36 = vpop.f32.mrf.mxu3 }
 0x550   : > { %v1107_v37 = vadd.f32 %v1703_v33, %v1106_v36 }
 0x552   : > { %1262 = vrot.lane.b32.xlu0 %v1107_v37, %s2235_s0  ;;  %1204 = vrot.lane.b32.xlu2 %v1107_v37, %s1796_s26 }
 0x553   : > { %1664 = vmatmul.msk.f32.vlgmr.msra.gmra.mxu1 %vm790_vm1, %v1107_v37 }
 0x55a   : > { %1320 = vrot.lane.b32.xlu0 %v1107_v37, %s2236_s23 }
 0x5ac   : > { %v1205_v41 = vpop.permute.xlu2 %1204 }
 0x5ad   : > { %1666 = vmatmul.msk.f32.vlgmr.msra.gmra.mxu2 %vm790_vm1, %v1205_v41 }
 0x5c4   : > { %v1263_v42 = vpop.permute.xlu0 %1262 }
 0x5c5   : > { %1668 = vmatmul.msk.f32.vlgmr.msrb.gmra.mxu3 %vm790_vm1, %v1263_v42 }
 0x5cc   : > { %v1321_v44 = vpop.permute.xlu0 %1320 }
 0x5cd   : > { %1670 = vmatmul.msk.f32.vlgmr.msrb.gmra.mxu0 %vm790_vm1, %v1321_v44 }
 0x5d0   : > { %v1170_v45 = vpop.f32.mrf.mxu1 }
 0x5d1   : > { %v1174_v46 = vsel %vm1173_vm11, -inf, %v1170_v45 }
 0x5d2   : > { %v1175_v47 = vmul.f32 0.35355338, %v1174_v46 }
 0x5d4   : > { %v1176_v48 = vsel %vm790_vm1, %v1175_v47, -inf }
 0x5d5   : > { %1177 = vmax.xlane.f32.xlu2 %v1176_v48 }
 0x630   : > { %v1229_v49 = vpop.f32.mrf.mxu2 }
 0x631   : > { %v1232_v50 = vsel %vm1173_vm11, -inf, %v1229_v49 }
 0x632   : > { %v1233_v51 = vmul.f32 0.35355338, %v1232_v50 }
 0x634   : > { %v1234_v52 = vsel %vm790_vm1, %v1233_v51, -inf }
 0x635   : > { %1235 = vmax.xlane.f32.xlu1 %v1234_v52 }
 0x648   : > { %v1178_v53 = vpop.xlane.xlu2 %1177  ;;  %v1287_v54 = vpop.f32.mrf.mxu3 }
 0x649   : > { %v1179_v55 = vsub.f32 %v1175_v47, %v1178_v53  ;;  %v1290_v56 = vsel %vm1173_vm11, -inf, %v1287_v54 }
 0x64a   : > { %v1291_v57 = vmul.f32 0.35355338, %v1290_v56  ;;  %v1345_v7 = vpop.f32.mrf.mxu0 }
 0x64b   : > { %v1180_v58 = vmul.f32 1.442695, %v1179_v55  ;;  %v1348_v59 = vsel %vm1173_vm11, -inf, %v1345_v7 }
 0x64c   : > { %v1349_v60 = vmul.f32 0.35355338, %v1348_v59  ;;  %v1292_v61 = vsel %vm790_vm1, %v1291_v57, -inf }
 0x64d   : > { %1732 = vpow2.f32 %v1180_v58  ;;  %1293 = vmax.xlane.f32.xlu0 %v1292_v61 }
 0x64e   : > { %v1350_v62 = vsel %vm790_vm1, %v1349_v60, -inf }
 0x64f   : > { %1351 = vmax.xlane.f32.xlu2 %v1350_v62 }
 0x653   : > { %v1733_v63 = vpop.eup %1732 }
 0x654   : > { %v1182_v0 = vsel %vm790_vm1, %v1733_v63, 0.0 }
 0x655   : > { %1183 = vadd.xlane.f32.xlu1 %v1182_v0 }
 0x6a8   : > { %v1236_v1 = vpop.xlane.xlu1 %1235 }
 0x6a9   : > { %v1237_v2 = vsub.f32 %v1233_v51, %v1236_v1 }
 0x6ab   : > { %v1238_v3 = vmul.f32 1.442695, %v1237_v2 }
 0x6ad   : > { %1734 = vpow2.f32 %v1238_v3 }
 0x6b3   : > { %v1735_v5 = vpop.eup %1734 }
 0x6b4   : > { %v1240_v6 = vsel %vm790_vm1, %v1735_v5, 0.0 }
 0x6b5   : > { %1241 = vadd.xlane.f32.xlu0 %v1240_v6 }
 0x6c0   : > { %v1294_v9 = vpop.xlane.xlu0 %1293 }
 0x6c1   : > { %v1295_v10 = vsub.f32 %v1291_v57, %v1294_v9 }
 0x6c2   : > { %v1352_v11 = vpop.xlane.xlu2 %1351 }
 0x6c3   : > { %v1296_v12 = vmul.f32 1.442695, %v1295_v10  ;;  %v1353_v4 = vsub.f32 %v1349_v60, %v1352_v11  ;;  %v1135_v10 = vld [vmem:[%s2203_s12 + $0x18] sm:$0xff]  ;;  %v1134_v11 = vld [vmem:[%s2203_s12 + $0x10] sm:$0xff] }
 0x6c4   : > { %1399 = vmatpush.msrb.mxu1 %v1135_v10  ;;  %v1709_v10 = vld [vmem:[%s2210_s19] ss:$0 sm:$0xff] }
 0x6c5   : > { %1736 = vpow2.f32 %v1296_v12  ;;  %v1354_v13 = vmul.f32 1.442695, %v1353_v4  ;;  %v1133_v12 = vld [vmem:[%s2203_s12 + $0x8] sm:$0xff]  ;;  %v1140_v4 = vsel %vm754_vm0, %v2053_v35, 0.0 }
 0x6c6   : > { %1400 = vmatpush.msrb.mxu1 %v1134_v11 }
 0x6c7   : > { %1738 = vpow2.f32 %v1354_v13  ;;  %v1132_v13 = vld [vmem:[%s2203_s12] sm:$0xff] }
 0x6c8   : > { %v1184_v14 = vpop.xlane.xlu1 %1183  ;;  %1401 = vmatpush.msrb.mxu1 %v1133_v12 }
 0x6c9   : > { %1740 = vrcp.f32 %v1184_v14  ;;  %v1196_v22 = vand.u32 2147483648, %v1184_v14  ;;  %v1194_v24 = vand.u32 2147483647, %v1184_v14  ;;  %vm1190_vm13 = vweird.f32 %v1184_v14 }
 0x6ca   : > { %1402 = vmatpush.msrb.mxu1 %v1132_v13 }
 0x6cb   : > { %v2087_v15 = vpop.eup %1736  ;;  %v1197_v26 = vor.u32 1.1754944e-38, %v1196_v22  ;;  %vm1195_vm15 = vcmp.eq.f32.partialorder %v1194_v24, 8.507059e+37 }
 0x6cc   : > { %v1298_v16 = vsel %vm790_vm1, %v2087_v15, 0.0 }
 0x6cd   : > { %v2091_v17 = vpop.eup %1738  ;;  %1299 = vadd.xlane.f32.xlu2 %v1298_v16 }
 0x6ce   : > { %v1356_v18 = vsel %vm790_vm1, %v2091_v17, 0.0 }
 0x6cf   : > { %v1741_v19 = vpop.eup %1740  ;;  %1357 = vadd.xlane.f32.xlu1 %v1356_v18 }
 0x6d0   : > { %v1186_v20 = vmul.f32 %v1741_v19, %v1184_v14  ;;  %vm1191_vm12 = vweird.f32 %v1741_v19  ;;  %v1141_v14 = vrot.slane %v1140_v4, 4 }
 0x6d1   : > { %vm1192_vm14 = vmor %vm1190_vm13, %vm1191_vm12 }
 0x6d2   : > { %v1187_v21 = vsub.f32 1.0, %v1186_v20 }
 0x6d4   : > { %v1188_v23 = vmul.f32 %v1741_v19, %v1187_v21 }
 0x6d6   : > { %v1189_v25 = vadd.f32 %v1741_v19, %v1188_v23 }
 0x6d8   : > { %v1193_v27 = vsel %vm1192_vm14, %v1741_v19, %v1189_v25 }
 0x6d9   : > { %v1198_v28 = vsel %vm1195_vm15, %v1197_v26, %v1193_v27 }
 0x6da   : > { %v1199_v29 = vmul.f32 %v1733_v63, %v1198_v28 }
 0x6dc   : > { %v1200_v30 = vsel %vm790_vm1, %v1199_v29, 0.0 }
 0x6dd   : > { %1201 = vadd.xlane.f32.xlu0 %v1200_v30  ;;  %v1705_v30 = vld [vmem:[%s2204_s13] ss:$0 sm:$0xff] }
 0x728   : > { %v1242_v31 = vpop.xlane.xlu0 %1241 }
 0x729   : > { %1742 = vrcp.f32 %v1242_v31  ;;  %v1254_v37 = vand.u32 2147483648, %v1242_v31  ;;  %v1252_v39 = vand.u32 2147483647, %v1242_v31  ;;  %vm1248_vm3 = vweird.f32 %v1242_v31 }
 0x72b   : > { %v1255_v41 = vor.u32 1.1754944e-38, %v1254_v37  ;;  %vm1253_vm7 = vcmp.eq.f32.partialorder %v1252_v39, 8.507059e+37 }
 0x72f   : > { %v1743_v33 = vpop.eup %1742 }
 0x730   : > { %v1244_v34 = vmul.f32 %v1743_v33, %v1242_v31  ;;  %vm1249_vm2 = vweird.f32 %v1743_v33 }
 0x731   : > { %vm1250_vm4 = vmor %vm1248_vm3, %vm1249_vm2  ;;  %vm1484_vm2 = vcmask 523264  }
 0x732   : > { %v1245_v36 = vsub.f32 1.0, %v1244_v34 }
 0x734   : > { %v1246_v38 = vmul.f32 %v1743_v33, %v1245_v36 }
 0x736   : > { %v1247_v40 = vadd.f32 %v1743_v33, %v1246_v38 }
 0x738   : > { %v1251_v42 = vsel %vm1250_vm4, %v1743_v33, %v1247_v40 }
 0x739   : > { %v1256_v43 = vsel %vm1253_vm7, %v1255_v41, %v1251_v42  ;;  %v1443_v42 = vld [vmem:[%s2207_s16 + $0x18] sm:$0xff] }
 0x73a   : > { %v1257_v44 = vmul.f32 %v1735_v5, %v1256_v43  ;;  %1463 = vmatpush.msrb.mxu2 %v1443_v42  ;;  %v1441_v43 = vld [vmem:[%s2207_s16 + $0x8] sm:$0xff] }
 0x73c   : > { %v1258_v45 = vsel %vm790_vm1, %v1257_v44, 0.0  ;;  %v1440_v44 = vld [vmem:[%s2207_s16] sm:$0xff] }
 0x73d   : > { %1259 = vadd.xlane.f32.xlu2 %v1258_v45  ;;  %v1479_v45 = vld [vmem:[%s2209_s18 + $0x38] sm:$0xff] }
 0x73e   : > { %1496 = vmatpush.msra.mxu3 %v1479_v45 }
 0x740   : > { %v1300_v46 = vpop.xlane.xlu2 %1299 }
 0x741   : > { %1744 = vrcp.f32 %v1300_v46  ;;  %v1312_v53 = vand.u32 2147483648, %v1300_v46  ;;  %v1310_v56 = vand.u32 2147483647, %v1300_v46  ;;  %vm1306_vm9 = vweird.f32 %v1300_v46 }
 0x742   : > { %v1358_v47 = vpop.xlane.xlu1 %1357 }
 0x743   : > { %1746 = vrcp.f32 %v1358_v47  ;;  %v1370_v57 = vand.u32 2147483648, %v1358_v47  ;;  %v1368_v59 = vand.u32 2147483647, %v1358_v47  ;;  %v1313_v60 = vor.u32 1.1754944e-38, %v1312_v53 }
 0x744   : > { %vm1364_vm12 = vweird.f32 %v1358_v47  ;;  %vm1311_vm13 = vcmp.eq.f32.partialorder %v1310_v56, 8.507059e+37 }
 0x745   : > { %v1371_v0 = vor.u32 1.1754944e-38, %v1370_v57  ;;  %vm1369_vm15 = vcmp.eq.f32.partialorder %v1368_v59, 8.507059e+37 }
 0x747   : > { %v1745_v48 = vpop.eup %1744 }
 0x748   : > { %v1302_v49 = vmul.f32 %v1745_v48, %v1300_v46  ;;  %vm1307_vm8 = vweird.f32 %v1745_v48  ;;  %v1478_v46 = vld [vmem:[%s2209_s18 + $0x30] sm:$0xff] }
 0x749   : > { %v1747_v50 = vpop.eup %1746  ;;  %vm1308_vm11 = vmor %vm1306_vm9, %vm1307_vm8  ;;  %1497 = vmatpush.msra.mxu3 %v1478_v46 }
 0x74a   : > { %v1303_v51 = vsub.f32 1.0, %v1302_v49  ;;  %v1360_v52 = vmul.f32 %v1747_v50, %v1358_v47  ;;  %vm1365_vm10 = vweird.f32 %v1747_v50  ;;  %v1477_v47 = vld [vmem:[%s2209_s18 + $0x28] sm:$0xff] }
 0x74b   : > { %vm1366_vm14 = vmor %vm1364_vm12, %vm1365_vm10  ;;  %1498 = vmatpush.msra.mxu3 %v1477_v47 }
 0x74c   : > { %v1304_v54 = vmul.f32 %v1745_v48, %v1303_v51  ;;  %v1361_v55 = vsub.f32 1.0, %v1360_v52  ;;  %v1475_v52 = vld [vmem:[%s2209_s18 + $0x18] sm:$0xff] }
 0x74e   : > { %v1362_v7 = vmul.f32 %v1747_v50, %v1361_v55  ;;  %v1305_v58 = vadd.f32 %v1745_v48, %v1304_v54 }
 0x750   : > { %v1309_v61 = vsel %vm1308_vm11, %v1745_v48, %v1305_v58  ;;  %v1363_v62 = vadd.f32 %v1747_v50, %v1362_v7  ;;  %v1202_v19 = vpop.xlane.xlu0 %1201  ;;  %v1706_v58 = vld [vmem:[%s2205_s14] ss:$0 sm:$0xff] }
 0x751   : > { %v1314_v63 = vsel %vm1311_vm13, %v1313_v60, %v1309_v61  ;;  %v1707_v61 = vld [vmem:[%s2206_s15] ss:$0 sm:$0xff] }
 0x752   : > { %v1315_v1 = vmul.f32 %v2087_v15, %v1314_v63  ;;  %v1367_v2 = vsel %vm1366_vm14, %v1747_v50, %v1363_v62  ;;  %v1142_v15 = vadd.f32 %v1141_v14, %v1140_v4  ;;  %v1476_v50 = vld [vmem:[%s2209_s18 + $0x20] sm:$0xff] }
 0x753   : > { %v1372_v3 = vsel %vm1369_vm15, %v1371_v0, %v1367_v2  ;;  %1499 = vmatpush.msra.mxu3 %v1476_v50  ;;  %v1474_v0 = vld [vmem:[%s2209_s18 + $0x10] sm:$0xff]  ;;  %v1472_v2 = vld [vmem:[%s2209_s18] sm:$0xff] }
 0x754   : > { %v1316_v5 = vsel %vm790_vm1, %v1315_v1, 0.0  ;;  %v1373_v6 = vmul.f32 %v2091_v17, %v1372_v3  ;;  %v1143_v16 = vrot.slane %v1142_v15, 2  ;;  %v1473_v1 = vld [vmem:[%s2209_s18 + $0x8] sm:$0xff]  ;;  %v1708_v3 = vld [vmem:[%s2208_s17] ss:$0 sm:$0xff] }
 0x755   : > { %1317 = vadd.xlane.f32.xlu1 %v1316_v5  ;;  %1500 = vmatpush.msra.mxu3 %v1475_v52 }
 0x756   : > { %v1374_v9 = vsel %vm790_vm1, %v1373_v6, 0.0  ;;  %v1144_v17 = vadd.f32 %v1143_v16, %v1142_v15 }
 0x757   : > { %1375 = vadd.xlane.f32.xlu0 %v1374_v9  ;;  %1501 = vmatpush.msra.mxu3 %v1474_v0 }
 0x758   : > { %v1145_v18 = vrot.slane %v1144_v17, 1 }
 0x759   : > { %1502 = vmatpush.msra.mxu3 %v1473_v1 }
 0x75a   : > { %v1146_v21 = vadd.f32 %v1145_v18, %v1144_v17 }
 0x75b   : > { %1503 = vmatpush.msra.mxu3 %v1472_v2 }
 0x75c   : > { %v1203_v23 = vmul.f32 %v1202_v19, %v1146_v21 }
 0x7b0   : > { %v1260_v20 = vpop.xlane.xlu2 %1259 }
 0x7b1   : > { %v1261_v22 = vmul.f32 %v1260_v20, %v1146_v21 }
 0x7b3   : > { %v1378_v26 = vsel %vm790_vm1, %v1203_v23, %v1261_v22 }
 0x7c8   : > { %v1318_v24 = vpop.xlane.xlu1 %1317 }
 0x7c9   : > { %v1319_v25 = vmul.f32 %v1318_v24, %v1146_v21 }
 0x7ca   : > { %v1376_v35 = vpop.xlane.xlu0 %1375 }
 0x7cb   : > { %v1379_v27 = vsel %vm1008_vm5, %v1378_v26, %v1319_v25  ;;  %v1377_v28 = vmul.f32 %v1376_v35, %v1146_v21 }
 0x7cd   : > { %v1380_v29 = vsel %vm1010_vm6, %v1379_v27, %v1377_v28  ;;  %v1710_v27 = vld [vmem:[%s2211_s20] ss:$0 sm:$0xff] }
 0x7ce   : > { %1671 = vmatmul.msk.f32.vlgmr.msrb.gmra.mxu1 %vm754_vm0, %v1380_v29  ;;  %v1711_v29 = vld [vmem:[#allocation2] ss:$0 sm:$0xff] }
 0x84b   : > { %v1404_v31 = vpop.f32.mrf.mxu1 }
 0x84c   : > { %v1405_v33 = vadd.f32 %v1705_v30, %v1404_v31 }
 0x84e   : > { %v1409_v34 = vadd.f32 %v1405_v33, %v2046_v32  ;;  %v1442_v32 = vld [vmem:[%s2207_s16 + $0x10] sm:$0xff] }
 0x84f   : > { %1464 = vmatpush.msrb.mxu2 %v1442_v32 }
 0x850   : > { %v1410_v36 = vsel %vm754_vm0, %v1409_v34, 0.0 }
 0x851   : > { %1411 = vadd.xlane.f32.xlu2 %v1410_v36  ;;  %1465 = vmatpush.msrb.mxu2 %v1441_v43 }
 0x853   : > { %1466 = vmatpush.msrb.mxu2 %v1440_v44 }
 0x8c4   : > { %v1412_v37 = vpop.xlane.xlu2 %1411 }
 0x8c5   : > { %v1413_v38 = vmul.f32 %v1412_v37, %v2018_v8 }
 0x8c7   : > { %v1414_v39 = vsub.f32 %v1409_v34, %v1413_v38 }
 0x8c9   : > { %v1415_v40 = vmul.f32 %v1414_v39, %v1414_v39 }
 0x8cb   : > { %v1416_v41 = vsel %vm754_vm0, %v1415_v40, 0.0 }
 0x8cc   : > { %1417 = vadd.xlane.f32.xlu1 %v1416_v41 }
 0x93f   : > { %v1418_v48 = vpop.xlane.xlu1 %1417 }
 0x940   : > { %v1419_v49 = vmul.f32 %v1418_v48, %v2018_v8 }
 0x942   : > { %v1420_v51 = vadd.f32 1e-05, %v1419_v49 }
 0x944   : > { %1748 = vrsqrt.f32 %v1420_v51  ;;  %vm1427_vm5 = vweird.f32 %v1420_v51 }
 0x94a   : > { %v1749_v53 = vpop.eup %1748 }
 0x94b   : > { %v1422_v54 = vmul.f32 %v1749_v53, %v1420_v51  ;;  %vm1428_vm1 = vweird.f32 %v1749_v53 }
 0x94c   : > { %vm1429_vm6 = vmor %vm1427_vm5, %vm1428_vm1 }
 0x94d   : > { %v1423_v55 = vmul.f32 %v1749_v53, %v1422_v54 }
 0x94f   : > { %v1424_v56 = vmul.f32 0.5, %v1423_v55 }
 0x951   : > { %v1425_v57 = vsub.f32 1.5, %v1424_v56 }
 0x953   : > { %v1426_v7 = vmul.f32 %v1749_v53, %v1425_v57 }
 0x955   : > { %v1430_v59 = vsel %vm1429_vm6, %v1749_v53, %v1426_v7 }
 0x956   : > { %v1431_v60 = vmul.f32 %v1430_v59, %v1414_v39 }
 0x958   : > { %v1435_v62 = vmul.f32 %v1706_v58, %v1431_v60 }
 0x95a   : > { %v1439_v63 = vadd.f32 %v1707_v61, %v1435_v62 }
 0x95c   : > { %1672 = vmatmul.msk.f32.vlgmr.msrb.gmra.mxu2 %vm754_vm0, %v1439_v63 }
 0x9df   : > { %v1468_v5 = vpop.f32.mrf.mxu2 }
 0x9e0   : > { %v1469_v6 = vadd.f32 %v1708_v3, %v1468_v5 }
 0x9e2   : > { %v1471_v9 = vmax.f32 %v1469_v6, 0.0 }
 0x9e4   : > { %1673 = vmatmul.msk.f32.vlgmr.msra.gmra.mxu3 %vm1484_vm2, %v1471_v9 }
 0xa67   : > { %v1505_v11 = vpop.f32.mrf.mxu3 }
 0xa68   : > { %v1506_v12 = vadd.f32 %v1709_v10, %v1505_v11 }
 0xa6a   : > { %v1510_v4 = vadd.f32 %v1506_v12, %v1439_v63 }
 0xa6c   : > { %v1511_v13 = vsel %vm754_vm0, %v1510_v4, 0.0 }
 0xa6d   : > { %1512 = vadd.xlane.f32.xlu0 %v1511_v13 }
 0xae0   : > { %v1513_v14 = vpop.xlane.xlu0 %1512 }
 0xae1   : > { %v1514_v15 = vmul.f32 %v1513_v14, %v2018_v8 }
 0xae3   : > { %v1515_v16 = vsub.f32 %v1510_v4, %v1514_v15 }
 0xae5   : > { %v1516_v17 = vmul.f32 %v1515_v16, %v1515_v16 }
 0xae7   : > { %v1517_v18 = vsel %vm754_vm0, %v1516_v17, 0.0 }
 0xae8   : > { %1518 = vadd.xlane.f32.xlu2 %v1517_v18 }
 0xb5b   : > { %v1519_v19 = vpop.xlane.xlu2 %1518 }
 0xb5c   : > { %v1520_v20 = vmul.f32 %v1519_v19, %v2018_v8 }
 0xb5e   : > { %v1521_v21 = vadd.f32 1e-05, %v1520_v20 }
 0xb60   : > { %1750 = vrsqrt.f32 %v1521_v21  ;;  %vm1528_vm4 = vweird.f32 %v1521_v21 }
 0xb66   : > { %v1751_v22 = vpop.eup %1750 }
 0xb67   : > { %v1523_v23 = vmul.f32 %v1751_v22, %v1521_v21  ;;  %vm1529_vm3 = vweird.f32 %v1751_v22 }
 0xb68   : > { %vm1530_vm7 = vmor %vm1528_vm4, %vm1529_vm3 }
 0xb69   : > { %v1524_v24 = vmul.f32 %v1751_v22, %v1523_v23 }
 0xb6b   : > { %v1525_v25 = vmul.f32 0.5, %v1524_v24 }
 0xb6d   : > { %v1526_v26 = vsub.f32 1.5, %v1525_v25 }
 0xb6f   : > { %v1527_v35 = vmul.f32 %v1751_v22, %v1526_v26 }
 0xb71   : > { %v1531_v28 = vsel %vm1530_vm7, %v1751_v22, %v1527_v35 }
 0xb72   : > { %v1532_v30 = vmul.f32 %v1531_v28, %v1515_v16 }
 0xb74   : > { %v1536_v8 = vmul.f32 %v1710_v27, %v1532_v30 }
 0xb76   : > { %v1540_v31 = vadd.f32 %v1711_v29, %v1536_v8 }
 0xb78   : > { %1541 = vst.msk [vmem:[%s741_s21] sm:$0xff] %vm754_vm0, %v1540_v31 }
 0xb79 PF: > { %s33_s3 = sadd.s32 1, %s1792_s3  }
 0xb7a   : > { %p30_p7 = scmp.ge.s32.totalorder %s33_s3, 4  }
 0xb7c   :  { %32 = sbr.rel (!%p30_p7) target bundleno = 10 (0xa), region = 152 }
 0xb81   :  { %1561 = vsyncpa [#allocation3], 1 }
 0xb82   :  { %1563 = vsyncpa [#allocation3 + $0x1], 1 }

</bundles_post_ra>
